<compile_context>
chip_gen: v7x
topology: tpu7x:2x2x1
jax: 0.10.0
libtpu: 0.0.40
codegen_flags: <defaults>
</compile_context>

<pallas_src>
import functools

import jax
import jax.numpy as jnp
from jax.experimental import pallas as pl
from jax.experimental.pallas import tpu as pltpu


def _round_up(x, m):
    return (x + m - 1) // m * m


# ----------------------------- Pallas kernels ------------------------------ #

def lstm_recurrent_kernel(xp_ref, whh_ref, bias_ref, h_out_ref, h_sc, c_sc, *,
                          hp, t_chunk, t_total, unroll):
    """Runs t_chunk LSTM steps per grid iteration.

    xp_ref   : (t_chunk, Bp, 4*Hp) bf16  precomputed x @ W_ih (time-major stream)
    whh_ref  : (Hp, 4*Hp)          f32   hidden->gates weights (pre-transposed, resident)
    bias_ref : (1, 4*Hp)           f32   b_ih + b_hh
    h_out_ref: (Bp, Hp)            f32   final hidden state (written on last grid step)
    h_sc,c_sc: (Bp, Hp)            f32   VMEM scratch, persist across grid steps
    """
    t = pl.program_id(0)

    @pl.when(t == 0)
    def _init():
        h_sc[...] = jnp.zeros_like(h_sc)
        c_sc[...] = jnp.zeros_like(c_sc)

    whh = whh_ref[...]                 # loaded once per grid step (constant index map)
    bias = bias_ref[...]

    needs_mask = (t_total % t_chunk) != 0      # static (Python) condition
    base = t * t_chunk

    def step(i, carry):
        h, c = carry
        gates = (xp_ref[i].astype(jnp.float32) + bias
                 + jnp.dot(h, whh, preferred_element_type=jnp.float32))
        # PyTorch gate order i, f, g, o; every slice is 128-lane aligned (Hp % 128 == 0).
        # sigmoid(x) = 0.5*tanh(0.5*x) + 0.5  -> one EUP op per gate; i/f in one slab.
        if_slab = 0.5 * jnp.tanh(0.5 * gates[:, 0:2 * hp]) + 0.5
        i_g = if_slab[:, :hp]
        f_g = if_slab[:, hp:]
        g_g = jnp.tanh(gates[:, 2 * hp:3 * hp])
        o_g = 0.5 * jnp.tanh(0.5 * gates[:, 3 * hp:4 * hp]) + 0.5
        c_new = f_g * c + i_g * g_g
        h_new = o_g * jnp.tanh(c_new)
        if needs_mask:
            valid = (base + i) < t_total       # skip zero-padded time steps
            h_new = jnp.where(valid, h_new, h)
            c_new = jnp.where(valid, c_new, c)
        return h_new, c_new

    h, c = jax.lax.fori_loop(0, t_chunk, step, (h_sc[...], c_sc[...]),
                             unroll=unroll)
    h_sc[...] = h
    c_sc[...] = c

    @pl.when(t == pl.num_programs(0) - 1)
    def _finalize():
        h_out_ref[...] = h


def fc_kernel(h_ref, w_ref, b_ref, out_ref):
    """One V-tile of logits: (Bp,Hp)f32 @ (Hp,TILE_V)(bf16->f32) + (1,TILE_V)f32."""
    out_ref[...] = (jnp.dot(h_ref[...], w_ref[...].astype(jnp.float32),
                            preferred_element_type=jnp.float32)
                    + b_ref[...]).astype(out_ref.dtype)


# -------------------------------- wrapper ---------------------------------- #

@jax.jit
def lstm_model_forward(tokens, params):
    """tokens: (B, T) int32; params in PyTorch layout. Returns (B, V) f32 logits."""
    emb = params["embedding"]                          # (V, E)
    w_ih, w_hh = params["w_ih"], params["w_hh"]        # (4H, E), (4H, H)
    bias = params["b_ih"] + params["b_hh"]             # (4H,)
    w_fc, b_fc = params["w_fc"], params["b_fc"]        # (V, H), (V,)

    B, T = tokens.shape
    V, E = emb.shape
    H = w_hh.shape[1]

    # TPU-friendly padded dims (all pads are zeros).
    # NOTE(v6e/v7x): if the deployment batch grows, larger Bp (up to 128-256 rows)
    # rides the per-step MXU matmul nearly for free.
    Bp = _round_up(max(B, 8), 8)
    Ep = _round_up(E, 128)
    Hp = _round_up(H, 128)          # 150 -> 256: every gate block lane-aligned
    Vp = _round_up(V, 128)
    G = 4 * Hp

    # Weight re-layout: transpose + per-gate zero padding (kept under jit to stay
    # self-contained; prepare once outside in real code).
    def pad_gates(w_t, in_dim, in_pad):                # (in, 4H) -> (in_pad, 4Hp)
        w3 = w_t.reshape(in_dim, 4, H)
        w3 = jnp.pad(w3, ((0, in_pad - in_dim), (0, 0), (0, Hp - H)))
        return w3.reshape(in_pad, G)

    w_ih_p = pad_gates(w_ih.T, E, Ep)                                 # (Ep, 4Hp) f32
    w_hh_p = pad_gates(w_hh.T, H, Hp)                                 # (Hp, 4Hp) f32
    bias_p = jnp.pad(bias.reshape(4, H), ((0, 0), (0, Hp - H))).reshape(1, G)
    w_fc_p = jnp.pad(w_fc.T, ((0, Hp - H), (0, Vp - V))).astype(jnp.bfloat16)
    b_fc_p = jnp.pad(b_fc, (0, Vp - V)).reshape(1, Vp)

    # Recurrence chunking: big chunks amortize the ~0.35us per-grid-step overhead.
    t_chunk = min(64, T)
    T_pad = _round_up(T, t_chunk)
    unroll = min(8, t_chunk)

    # Glue: time-major embedding gather (no relayout) + hoisted input projection as
    # one big MXU matmul (f32 x f32 for portability), streamed to the kernel as bf16.
    x = jnp.take(emb, tokens.T, axis=0)                               # (T, B, E)
    x = jnp.pad(x, ((0, T_pad - T), (0, Bp - B), (0, Ep - E)))
    xp = jnp.einsum("tbe,ef->tbf", x, w_ih_p,
                    preferred_element_type=jnp.float32)               # (T_pad, Bp, 4Hp)
    xp = xp.astype(jnp.bfloat16)                                      # halve HBM stream

    h_last = pl.pallas_call(
        functools.partial(lstm_recurrent_kernel, hp=Hp, t_chunk=t_chunk,
                          t_total=T, unroll=unroll),
        out_shape=jax.ShapeDtypeStruct((Bp, Hp), jnp.float32),
        grid_spec=pltpu.PrefetchScalarGridSpec(
            num_scalar_prefetch=0,
            grid=(T_pad // t_chunk,),
            in_specs=[
                pl.BlockSpec((t_chunk, Bp, G), lambda t: (t, 0, 0)),  # xp chunk (bf16)
                pl.BlockSpec((Hp, G), lambda t: (0, 0)),              # W_hh^T (resident)
                pl.BlockSpec((1, G), lambda t: (0, 0)),               # bias (resident)
            ],
            out_specs=pl.BlockSpec((Bp, Hp), lambda t: (0, 0)),       # h_T (resident)
            scratch_shapes=[pltpu.VMEM((Bp, Hp), jnp.float32),        # h
                            pltpu.VMEM((Bp, Hp), jnp.float32)],       # c
        ),
        compiler_params=pltpu.CompilerParams(
            dimension_semantics=("arbitrary",)),                      # serial in T
    )(xp, w_hh_p, bias_p)

    # Final Linear: separate V-tiled Pallas matmul, W_fc streamed bf16 (HBM-bound),
    # lane-dense output tiles up to 2048 wide (~1 MiB bf16 weight tile).
    tile_v = next(tv for tv in (2048, 1024, 512, 256, 128) if Vp % tv == 0)
    logits_p = pl.pallas_call(
        fc_kernel,
        out_shape=jax.ShapeDtypeStruct((Bp, Vp), jnp.float32),
        grid_spec=pltpu.PrefetchScalarGridSpec(
            num_scalar_prefetch=0,
            grid=(Vp // tile_v,),
            in_specs=[
                pl.BlockSpec((Bp, Hp), lambda v: (0, 0)),             # h_T
                pl.BlockSpec((Hp, tile_v), lambda v: (0, v)),         # W_fc^T tile (bf16)
                pl.BlockSpec((1, tile_v), lambda v: (0, v)),          # b_fc tile
            ],
            out_specs=pl.BlockSpec((Bp, tile_v), lambda v: (0, v)),
        ),
        compiler_params=pltpu.CompilerParams(
            dimension_semantics=("parallel",)),
    )(h_last, w_fc_p, b_fc_p)

    return logits_p[:B, :V]


# ----------------------- pure-JAX reference (check) ------------------------ #

def reference_forward(tokens, params):
    emb = jnp.take(params["embedding"], tokens, axis=0)    # (B, T, E)
    H = params["w_hh"].shape[1]
    B = tokens.shape[0]
    w_ih_t = params["w_ih"].T
    w_hh_t = params["w_hh"].T
    bias = params["b_ih"] + params["b_hh"]
    h = jnp.zeros((B, H), jnp.float32)
    c = jnp.zeros((B, H), jnp.float32)

    def step(carry, x_t):
        h, c = carry
        gates = x_t @ w_ih_t + h @ w_hh_t + bias
        i_g = jax.nn.sigmoid(gates[:, 0 * H:1 * H])
        f_g = jax.nn.sigmoid(gates[:, 1 * H:2 * H])
        g_g = jnp.tanh(gates[:, 2 * H:3 * H])
        o_g = jax.nn.sigmoid(gates[:, 3 * H:4 * H])
        c = f_g * c + i_g * g_g
        h = o_g * jnp.tanh(c)
        return (h, c), None

    (h, c), _ = jax.lax.scan(step, (h, c), jnp.transpose(emb, (1, 0, 2)))
    return h @ params["w_fc"].T + params["b_fc"]


# ---------------------------------- main ----------------------------------- #

def init_params(key, vocab_size, embed_dim=100, hidden=150):
    k = jax.random.split(key, 7)
    s = 1.0 / jnp.sqrt(hidden)          # LSTM init bound
    sf = 1.0 / jnp.sqrt(hidden)         # Linear init bound (in_features = hidden)
    u = lambda kk, shape, b: jax.random.uniform(kk, shape, jnp.float32, -b, b)
    return {
        "embedding": jax.random.normal(k[0], (vocab_size, embed_dim), jnp.float32),
        # PyTorch layout; gate order i, f, g, o.
        "w_ih": u(k[1], (4 * hidden, embed_dim), s),
        "w_hh": u(k[2], (4 * hidden, hidden), s),
        "b_ih": u(k[3], (4 * hidden,), s),
        "b_hh": u(k[4], (4 * hidden,), s),
        "w_fc": u(k[5], (vocab_size, hidden), sf),
        "b_fc": u(k[6], (vocab_size,), sf),
    }


if __name__ == "__main__":
    VOCAB = 64
    B, T = 2, 8

    key = jax.random.PRNGKey(0)
    k_param, k_tok = jax.random.split(key)
    params = init_params(k_param, VOCAB)
    tokens = jax.random.randint(k_tok, (B, T), 0, VOCAB, dtype=jnp.int32)

    logits = jax.block_until_ready(lstm_model_forward(tokens, params))
    ref = jax.block_until_ready(reference_forward(tokens, params))

    assert logits.shape == (B, VOCAB)
    max_err = float(jnp.max(jnp.abs(logits - ref)))
    # bf16 storage of xp / W_fc (f32 math everywhere) vs a pure-f32 reference.
    assert jnp.allclose(logits, ref, rtol=2e-2, atol=2e-2), max_err

    print("KERNEL_OK")
</pallas_src>

<mosaic_0001>
module attributes {stable_mosaic.version = 11 : i64} {
  func.func @lstm_recurrent_kernel(%arg0: i32, %arg1: memref<8x8x1024xbf16, #tpu.memory_space<vmem>>, %arg2: memref<256x1024xf32, #tpu.memory_space<vmem>>, %arg3: memref<1x1024xf32, #tpu.memory_space<vmem>>, %arg4: memref<8x256xf32, #tpu.memory_space<vmem>>, %arg5: memref<8x256xf32, #tpu.memory_space<vmem>>, %arg6: memref<8x256xf32, #tpu.memory_space<vmem>>) attributes {dimension_semantics = [#tpu.dimension_semantics<arbitrary>], iteration_bounds = array<i64: 1>, scalar_prefetch = 0 : i64, scratch_operands = 2 : i64, tpu.core_type = #tpu.core_type<tc>, window_params = [{transform_indices = @transform_0, window_bounds = array<i64: 8, 8, 1024>}, {pipeline_mode = #tpu.pipeline_mode<synchronous>, transform_indices = @transform_1, window_bounds = array<i64: 256, 1024>}, {pipeline_mode = #tpu.pipeline_mode<synchronous>, transform_indices = @transform_2, window_bounds = array<i64: 1, 1024>}, {pipeline_mode = #tpu.pipeline_mode<synchronous>, transform_indices = @transform_3, window_bounds = array<i64: 8, 256>}]} {
    %c0_i32 = arith.constant 0 : i32
    %0 = arith.cmpi eq, %arg0, %c0_i32 : i32
    %1 = arith.extui %0 : i1 to i32
    %c0_i32_0 = arith.constant 0 : i32
    %2 = arith.cmpi ne, %1, %c0_i32_0 : i32
    scf.if %2 {
      %cst_86 = arith.constant 0.000000e+00 : f32
      %276 = vector.broadcast %cst_86 : f32 to vector<8x256xf32>
      %c0_87 = arith.constant 0 : index
      %c0_88 = arith.constant 0 : index
      %277 = vector.load %arg5[%c0_87, %c0_88] : memref<8x256xf32, #tpu.memory_space<vmem>>, vector<8x256xf32>
      tpu.vector_store %arg5[%c0_87, %c0_88], %276 {strides = array<i32>} : memref<8x256xf32, #tpu.memory_space<vmem>>, vector<8x256xf32>,
      %cst_89 = arith.constant 0.000000e+00 : f32
      %278 = vector.broadcast %cst_89 : f32 to vector<8x256xf32>
      %c0_90 = arith.constant 0 : index
      %c0_91 = arith.constant 0 : index
      %279 = vector.load %arg6[%c0_90, %c0_91] : memref<8x256xf32, #tpu.memory_space<vmem>>, vector<8x256xf32>
      tpu.vector_store %arg6[%c0_90, %c0_91], %278 {strides = array<i32>} : memref<8x256xf32, #tpu.memory_space<vmem>>, vector<8x256xf32>,
    } else {
    }
    %c0 = arith.constant 0 : index
    %c0_1 = arith.constant 0 : index
    %3 = vector.load %arg2[%c0, %c0_1] : memref<256x1024xf32, #tpu.memory_space<vmem>>, vector<256x1024xf32>
    %c0_2 = arith.constant 0 : index
    %c0_3 = arith.constant 0 : index
    %4 = vector.load %arg3[%c0_2, %c0_3] : memref<1x1024xf32, #tpu.memory_space<vmem>>, vector<1x1024xf32>
    %c0_4 = arith.constant 0 : index
    %c0_5 = arith.constant 0 : index
    %5 = vector.load %arg5[%c0_4, %c0_5] : memref<8x256xf32, #tpu.memory_space<vmem>>, vector<8x256xf32>
    %c0_6 = arith.constant 0 : index
    %c0_7 = arith.constant 0 : index
    %6 = vector.load %arg6[%c0_6, %c0_7] : memref<8x256xf32, #tpu.memory_space<vmem>>, vector<8x256xf32>
    %c0_i32_8 = arith.constant 0 : i32
    %7 = arith.index_cast %c0_i32_8 : i32 to index
    %c0_9 = arith.constant 0 : index
    %c0_10 = arith.constant 0 : index
    %8 = vector.load %arg1[%7, %c0_9, %c0_10] : memref<8x8x1024xbf16, #tpu.memory_space<vmem>>, vector<1x8x1024xbf16>
    %9 = vector.shape_cast %8 : vector<1x8x1024xbf16> to vector<8x1024xbf16>
    %10 = arith.extf %9 : vector<8x1024xbf16> to vector<8x1024xf32>
    %11 = vector.broadcast %4 : vector<1x1024xf32> to vector<8x1024xf32>
    %12 = arith.addf %10, %11 : vector<8x1024xf32>
    %cst = arith.constant dense<0.000000e+00> : vector<8x1024xf32>
    %13 = tpu.matmul %5, %3, %cst {dimension_numbers = #tpu.dot_dimension_numbers<[1], [0], [0], [1], [0, 0, 1, 1], [], []>} : vector<8x256xf32>, vector<256x1024xf32>, vector<8x1024xf32> -> vector<8x1024xf32>
    %14 = arith.addf %12, %13 : vector<8x1024xf32>
    %15 = vector.extract_strided_slice %14 {offsets = [0, 0], sizes = [8, 512], strides = [1, 1]} : vector<8x1024xf32> to vector<8x512xf32>
    %cst_11 = arith.constant 5.000000e-01 : f32
    %16 = vector.broadcast %cst_11 : f32 to vector<8x512xf32>
    %17 = arith.mulf %16, %15 : vector<8x512xf32>
    %18 = math.tanh %17 : vector<8x512xf32>
    %cst_12 = arith.constant 5.000000e-01 : f32
    %19 = vector.broadcast %cst_12 : f32 to vector<8x512xf32>
    %20 = arith.mulf %19, %18 : vector<8x512xf32>
    %cst_13 = arith.constant 5.000000e-01 : f32
    %21 = vector.broadcast %cst_13 : f32 to vector<8x512xf32>
    %22 = arith.addf %20, %21 : vector<8x512xf32>
    %23 = vector.extract_strided_slice %22 {offsets = [0, 0], sizes = [8, 256], strides = [1, 1]} : vector<8x512xf32> to vector<8x256xf32>
    %24 = vector.extract_strided_slice %22 {offsets = [0, 256], sizes = [8, 256], strides = [1, 1]} : vector<8x512xf32> to vector<8x256xf32>
    %25 = vector.extract_strided_slice %14 {offsets = [0, 512], sizes = [8, 256], strides = [1, 1]} : vector<8x1024xf32> to vector<8x256xf32>
    %26 = math.tanh %25 : vector<8x256xf32>
    %27 = vector.extract_strided_slice %14 {offsets = [0, 768], sizes = [8, 256], strides = [1, 1]} : vector<8x1024xf32> to vector<8x256xf32>
    %cst_14 = arith.constant 5.000000e-01 : f32
    %28 = vector.broadcast %cst_14 : f32 to vector<8x256xf32>
    %29 = arith.mulf %28, %27 : vector<8x256xf32>
    %30 = math.tanh %29 : vector<8x256xf32>
    %cst_15 = arith.constant 5.000000e-01 : f32
    %31 = vector.broadcast %cst_15 : f32 to vector<8x256xf32>
    %32 = arith.mulf %31, %30 : vector<8x256xf32>
    %cst_16 = arith.constant 5.000000e-01 : f32
    %33 = vector.broadcast %cst_16 : f32 to vector<8x256xf32>
    %34 = arith.addf %32, %33 : vector<8x256xf32>
    %35 = arith.mulf %24, %6 : vector<8x256xf32>
    %36 = arith.mulf %23, %26 : vector<8x256xf32>
    %37 = arith.addf %35, %36 : vector<8x256xf32>
    %38 = math.tanh %37 : vector<8x256xf32>
    %39 = arith.mulf %34, %38 : vector<8x256xf32>
    %c1_i32 = arith.constant 1 : i32
    %40 = arith.index_cast %c1_i32 : i32 to index
    %c0_17 = arith.constant 0 : index
    %c0_18 = arith.constant 0 : index
    %41 = vector.load %arg1[%40, %c0_17, %c0_18] : memref<8x8x1024xbf16, #tpu.memory_space<vmem>>, vector<1x8x1024xbf16>
    %42 = vector.shape_cast %41 : vector<1x8x1024xbf16> to vector<8x1024xbf16>
    %43 = arith.extf %42 : vector<8x1024xbf16> to vector<8x1024xf32>
    %44 = vector.broadcast %4 : vector<1x1024xf32> to vector<8x1024xf32>
    %45 = arith.addf %43, %44 : vector<8x1024xf32>
    %cst_19 = arith.constant dense<0.000000e+00> : vector<8x1024xf32>
    %46 = tpu.matmul %39, %3, %cst_19 {dimension_numbers = #tpu.dot_dimension_numbers<[1], [0], [0], [1], [0, 0, 1, 1], [], []>} : vector<8x256xf32>, vector<256x1024xf32>, vector<8x1024xf32> -> vector<8x1024xf32>
    %47 = arith.addf %45, %46 : vector<8x1024xf32>
    %48 = vector.extract_strided_slice %47 {offsets = [0, 0], sizes = [8, 512], strides = [1, 1]} : vector<8x1024xf32> to vector<8x512xf32>
    %cst_20 = arith.constant 5.000000e-01 : f32
    %49 = vector.broadcast %cst_20 : f32 to vector<8x512xf32>
    %50 = arith.mulf %49, %48 : vector<8x512xf32>
    %51 = math.tanh %50 : vector<8x512xf32>
    %cst_21 = arith.constant 5.000000e-01 : f32
    %52 = vector.broadcast %cst_21 : f32 to vector<8x512xf32>
    %53 = arith.mulf %52, %51 : vector<8x512xf32>
    %cst_22 = arith.constant 5.000000e-01 : f32
    %54 = vector.broadcast %cst_22 : f32 to vector<8x512xf32>
    %55 = arith.addf %53, %54 : vector<8x512xf32>
    %56 = vector.extract_strided_slice %55 {offsets = [0, 0], sizes = [8, 256], strides = [1, 1]} : vector<8x512xf32> to vector<8x256xf32>
    %57 = vector.extract_strided_slice %55 {offsets = [0, 256], sizes = [8, 256], strides = [1, 1]} : vector<8x512xf32> to vector<8x256xf32>
    %58 = vector.extract_strided_slice %47 {offsets = [0, 512], sizes = [8, 256], strides = [1, 1]} : vector<8x1024xf32> to vector<8x256xf32>
    %59 = math.tanh %58 : vector<8x256xf32>
    %60 = vector.extract_strided_slice %47 {offsets = [0, 768], sizes = [8, 256], strides = [1, 1]} : vector<8x1024xf32> to vector<8x256xf32>
    %cst_23 = arith.constant 5.000000e-01 : f32
    %61 = vector.broadcast %cst_23 : f32 to vector<8x256xf32>
    %62 = arith.mulf %61, %60 : vector<8x256xf32>
    %63 = math.tanh %62 : vector<8x256xf32>
    %cst_24 = arith.constant 5.000000e-01 : f32
    %64 = vector.broadcast %cst_24 : f32 to vector<8x256xf32>
    %65 = arith.mulf %64, %63 : vector<8x256xf32>
    %cst_25 = arith.constant 5.000000e-01 : f32
    %66 = vector.broadcast %cst_25 : f32 to vector<8x256xf32>
    %67 = arith.addf %65, %66 : vector<8x256xf32>
    %68 = arith.mulf %57, %37 : vector<8x256xf32>
    %69 = arith.mulf %56, %59 : vector<8x256xf32>
    %70 = arith.addf %68, %69 : vector<8x256xf32>
    %71 = math.tanh %70 : vector<8x256xf32>
    %72 = arith.mulf %67, %71 : vector<8x256xf32>
    %c2_i32 = arith.constant 2 : i32
    %73 = arith.index_cast %c2_i32 : i32 to index
    %c0_26 = arith.constant 0 : index
    %c0_27 = arith.constant 0 : index
    %74 = vector.load %arg1[%73, %c0_26, %c0_27] : memref<8x8x1024xbf16, #tpu.memory_space<vmem>>, vector<1x8x1024xbf16>
    %75 = vector.shape_cast %74 : vector<1x8x1024xbf16> to vector<8x1024xbf16>
    %76 = arith.extf %75 : vector<8x1024xbf16> to vector<8x1024xf32>
    %77 = vector.broadcast %4 : vector<1x1024xf32> to vector<8x1024xf32>
    %78 = arith.addf %76, %77 : vector<8x1024xf32>
    %cst_28 = arith.constant dense<0.000000e+00> : vector<8x1024xf32>
    %79 = tpu.matmul %72, %3, %cst_28 {dimension_numbers = #tpu.dot_dimension_numbers<[1], [0], [0], [1], [0, 0, 1, 1], [], []>} : vector<8x256xf32>, vector<256x1024xf32>, vector<8x1024xf32> -> vector<8x1024xf32>
    %80 = arith.addf %78, %79 : vector<8x1024xf32>
    %81 = vector.extract_strided_slice %80 {offsets = [0, 0], sizes = [8, 512], strides = [1, 1]} : vector<8x1024xf32> to vector<8x512xf32>
    %cst_29 = arith.constant 5.000000e-01 : f32
    %82 = vector.broadcast %cst_29 : f32 to vector<8x512xf32>
    %83 = arith.mulf %82, %81 : vector<8x512xf32>
    %84 = math.tanh %83 : vector<8x512xf32>
    %cst_30 = arith.constant 5.000000e-01 : f32
    %85 = vector.broadcast %cst_30 : f32 to vector<8x512xf32>
    %86 = arith.mulf %85, %84 : vector<8x512xf32>
    %cst_31 = arith.constant 5.000000e-01 : f32
    %87 = vector.broadcast %cst_31 : f32 to vector<8x512xf32>
    %88 = arith.addf %86, %87 : vector<8x512xf32>
    %89 = vector.extract_strided_slice %88 {offsets = [0, 0], sizes = [8, 256], strides = [1, 1]} : vector<8x512xf32> to vector<8x256xf32>
    %90 = vector.extract_strided_slice %88 {offsets = [0, 256], sizes = [8, 256], strides = [1, 1]} : vector<8x512xf32> to vector<8x256xf32>
    %91 = vector.extract_strided_slice %80 {offsets = [0, 512], sizes = [8, 256], strides = [1, 1]} : vector<8x1024xf32> to vector<8x256xf32>
    %92 = math.tanh %91 : vector<8x256xf32>
    %93 = vector.extract_strided_slice %80 {offsets = [0, 768], sizes = [8, 256], strides = [1, 1]} : vector<8x1024xf32> to vector<8x256xf32>
    %cst_32 = arith.constant 5.000000e-01 : f32
    %94 = vector.broadcast %cst_32 : f32 to vector<8x256xf32>
    %95 = arith.mulf %94, %93 : vector<8x256xf32>
    %96 = math.tanh %95 : vector<8x256xf32>
    %cst_33 = arith.constant 5.000000e-01 : f32
    %97 = vector.broadcast %cst_33 : f32 to vector<8x256xf32>
    %98 = arith.mulf %97, %96 : vector<8x256xf32>
    %cst_34 = arith.constant 5.000000e-01 : f32
    %99 = vector.broadcast %cst_34 : f32 to vector<8x256xf32>
    %100 = arith.addf %98, %99 : vector<8x256xf32>
    %101 = arith.mulf %90, %70 : vector<8x256xf32>
    %102 = arith.mulf %89, %92 : vector<8x256xf32>
    %103 = arith.addf %101, %102 : vector<8x256xf32>
    %104 = math.tanh %103 : vector<8x256xf32>
    %105 = arith.mulf %100, %104 : vector<8x256xf32>
    %c3_i32 = arith.constant 3 : i32
    %106 = arith.index_cast %c3_i32 : i32 to index
    %c0_35 = arith.constant 0 : index
    %c0_36 = arith.constant 0 : index
    %107 = vector.load %arg1[%106, %c0_35, %c0_36] : memref<8x8x1024xbf16, #tpu.memory_space<vmem>>, vector<1x8x1024xbf16>
    %108 = vector.shape_cast %107 : vector<1x8x1024xbf16> to vector<8x1024xbf16>
    %109 = arith.extf %108 : vector<8x1024xbf16> to vector<8x1024xf32>
    %110 = vector.broadcast %4 : vector<1x1024xf32> to vector<8x1024xf32>
    %111 = arith.addf %109, %110 : vector<8x1024xf32>
    %cst_37 = arith.constant dense<0.000000e+00> : vector<8x1024xf32>
    %112 = tpu.matmul %105, %3, %cst_37 {dimension_numbers = #tpu.dot_dimension_numbers<[1], [0], [0], [1], [0, 0, 1, 1], [], []>} : vector<8x256xf32>, vector<256x1024xf32>, vector<8x1024xf32> -> vector<8x1024xf32>
    %113 = arith.addf %111, %112 : vector<8x1024xf32>
    %114 = vector.extract_strided_slice %113 {offsets = [0, 0], sizes = [8, 512], strides = [1, 1]} : vector<8x1024xf32> to vector<8x512xf32>
    %cst_38 = arith.constant 5.000000e-01 : f32
    %115 = vector.broadcast %cst_38 : f32 to vector<8x512xf32>
    %116 = arith.mulf %115, %114 : vector<8x512xf32>
    %117 = math.tanh %116 : vector<8x512xf32>
    %cst_39 = arith.constant 5.000000e-01 : f32
    %118 = vector.broadcast %cst_39 : f32 to vector<8x512xf32>
    %119 = arith.mulf %118, %117 : vector<8x512xf32>
    %cst_40 = arith.constant 5.000000e-01 : f32
    %120 = vector.broadcast %cst_40 : f32 to vector<8x512xf32>
    %121 = arith.addf %119, %120 : vector<8x512xf32>
    %122 = vector.extract_strided_slice %121 {offsets = [0, 0], sizes = [8, 256], strides = [1, 1]} : vector<8x512xf32> to vector<8x256xf32>
    %123 = vector.extract_strided_slice %121 {offsets = [0, 256], sizes = [8, 256], strides = [1, 1]} : vector<8x512xf32> to vector<8x256xf32>
    %124 = vector.extract_strided_slice %113 {offsets = [0, 512], sizes = [8, 256], strides = [1, 1]} : vector<8x1024xf32> to vector<8x256xf32>
    %125 = math.tanh %124 : vector<8x256xf32>
    %126 = vector.extract_strided_slice %113 {offsets = [0, 768], sizes = [8, 256], strides = [1, 1]} : vector<8x1024xf32> to vector<8x256xf32>
    %cst_41 = arith.constant 5.000000e-01 : f32
    %127 = vector.broadcast %cst_41 : f32 to vector<8x256xf32>
    %128 = arith.mulf %127, %126 : vector<8x256xf32>
    %129 = math.tanh %128 : vector<8x256xf32>
    %cst_42 = arith.constant 5.000000e-01 : f32
    %130 = vector.broadcast %cst_42 : f32 to vector<8x256xf32>
    %131 = arith.mulf %130, %129 : vector<8x256xf32>
    %cst_43 = arith.constant 5.000000e-01 : f32
    %132 = vector.broadcast %cst_43 : f32 to vector<8x256xf32>
    %133 = arith.addf %131, %132 : vector<8x256xf32>
    %134 = arith.mulf %123, %103 : vector<8x256xf32>
    %135 = arith.mulf %122, %125 : vector<8x256xf32>
    %136 = arith.addf %134, %135 : vector<8x256xf32>
    %137 = math.tanh %136 : vector<8x256xf32>
    %138 = arith.mulf %133, %137 : vector<8x256xf32>
    %c4_i32 = arith.constant 4 : i32
    %139 = arith.index_cast %c4_i32 : i32 to index
    %c0_44 = arith.constant 0 : index
    %c0_45 = arith.constant 0 : index
    %140 = vector.load %arg1[%139, %c0_44, %c0_45] : memref<8x8x1024xbf16, #tpu.memory_space<vmem>>, vector<1x8x1024xbf16>
    %141 = vector.shape_cast %140 : vector<1x8x1024xbf16> to vector<8x1024xbf16>
    %142 = arith.extf %141 : vector<8x1024xbf16> to vector<8x1024xf32>
    %143 = vector.broadcast %4 : vector<1x1024xf32> to vector<8x1024xf32>
    %144 = arith.addf %142, %143 : vector<8x1024xf32>
    %cst_46 = arith.constant dense<0.000000e+00> : vector<8x1024xf32>
    %145 = tpu.matmul %138, %3, %cst_46 {dimension_numbers = #tpu.dot_dimension_numbers<[1], [0], [0], [1], [0, 0, 1, 1], [], []>} : vector<8x256xf32>, vector<256x1024xf32>, vector<8x1024xf32> -> vector<8x1024xf32>
    %146 = arith.addf %144, %145 : vector<8x1024xf32>
    %147 = vector.extract_strided_slice %146 {offsets = [0, 0], sizes = [8, 512], strides = [1, 1]} : vector<8x1024xf32> to vector<8x512xf32>
    %cst_47 = arith.constant 5.000000e-01 : f32
    %148 = vector.broadcast %cst_47 : f32 to vector<8x512xf32>
    %149 = arith.mulf %148, %147 : vector<8x512xf32>
    %150 = math.tanh %149 : vector<8x512xf32>
    %cst_48 = arith.constant 5.000000e-01 : f32
    %151 = vector.broadcast %cst_48 : f32 to vector<8x512xf32>
    %152 = arith.mulf %151, %150 : vector<8x512xf32>
    %cst_49 = arith.constant 5.000000e-01 : f32
    %153 = vector.broadcast %cst_49 : f32 to vector<8x512xf32>
    %154 = arith.addf %152, %153 : vector<8x512xf32>
    %155 = vector.extract_strided_slice %154 {offsets = [0, 0], sizes = [8, 256], strides = [1, 1]} : vector<8x512xf32> to vector<8x256xf32>
    %156 = vector.extract_strided_slice %154 {offsets = [0, 256], sizes = [8, 256], strides = [1, 1]} : vector<8x512xf32> to vector<8x256xf32>
    %157 = vector.extract_strided_slice %146 {offsets = [0, 512], sizes = [8, 256], strides = [1, 1]} : vector<8x1024xf32> to vector<8x256xf32>
    %158 = math.tanh %157 : vector<8x256xf32>
    %159 = vector.extract_strided_slice %146 {offsets = [0, 768], sizes = [8, 256], strides = [1, 1]} : vector<8x1024xf32> to vector<8x256xf32>
    %cst_50 = arith.constant 5.000000e-01 : f32
    %160 = vector.broadcast %cst_50 : f32 to vector<8x256xf32>
    %161 = arith.mulf %160, %159 : vector<8x256xf32>
    %162 = math.tanh %161 : vector<8x256xf32>
    %cst_51 = arith.constant 5.000000e-01 : f32
    %163 = vector.broadcast %cst_51 : f32 to vector<8x256xf32>
    %164 = arith.mulf %163, %162 : vector<8x256xf32>
    %cst_52 = arith.constant 5.000000e-01 : f32
    %165 = vector.broadcast %cst_52 : f32 to vector<8x256xf32>
    %166 = arith.addf %164, %165 : vector<8x256xf32>
    %167 = arith.mulf %156, %136 : vector<8x256xf32>
    %168 = arith.mulf %155, %158 : vector<8x256xf32>
    %169 = arith.addf %167, %168 : vector<8x256xf32>
    %170 = math.tanh %169 : vector<8x256xf32>
    %171 = arith.mulf %166, %170 : vector<8x256xf32>
    %c5_i32 = arith.constant 5 : i32
    %172 = arith.index_cast %c5_i32 : i32 to index
    %c0_53 = arith.constant 0 : index
    %c0_54 = arith.constant 0 : index
    %173 = vector.load %arg1[%172, %c0_53, %c0_54] : memref<8x8x1024xbf16, #tpu.memory_space<vmem>>, vector<1x8x1024xbf16>
    %174 = vector.shape_cast %173 : vector<1x8x1024xbf16> to vector<8x1024xbf16>
    %175 = arith.extf %174 : vector<8x1024xbf16> to vector<8x1024xf32>
    %176 = vector.broadcast %4 : vector<1x1024xf32> to vector<8x1024xf32>
    %177 = arith.addf %175, %176 : vector<8x1024xf32>
    %cst_55 = arith.constant dense<0.000000e+00> : vector<8x1024xf32>
    %178 = tpu.matmul %171, %3, %cst_55 {dimension_numbers = #tpu.dot_dimension_numbers<[1], [0], [0], [1], [0, 0, 1, 1], [], []>} : vector<8x256xf32>, vector<256x1024xf32>, vector<8x1024xf32> -> vector<8x1024xf32>
    %179 = arith.addf %177, %178 : vector<8x1024xf32>
    %180 = vector.extract_strided_slice %179 {offsets = [0, 0], sizes = [8, 512], strides = [1, 1]} : vector<8x1024xf32> to vector<8x512xf32>
    %cst_56 = arith.constant 5.000000e-01 : f32
    %181 = vector.broadcast %cst_56 : f32 to vector<8x512xf32>
    %182 = arith.mulf %181, %180 : vector<8x512xf32>
    %183 = math.tanh %182 : vector<8x512xf32>
    %cst_57 = arith.constant 5.000000e-01 : f32
    %184 = vector.broadcast %cst_57 : f32 to vector<8x512xf32>
    %185 = arith.mulf %184, %183 : vector<8x512xf32>
    %cst_58 = arith.constant 5.000000e-01 : f32
    %186 = vector.broadcast %cst_58 : f32 to vector<8x512xf32>
    %187 = arith.addf %185, %186 : vector<8x512xf32>
    %188 = vector.extract_strided_slice %187 {offsets = [0, 0], sizes = [8, 256], strides = [1, 1]} : vector<8x512xf32> to vector<8x256xf32>
    %189 = vector.extract_strided_slice %187 {offsets = [0, 256], sizes = [8, 256], strides = [1, 1]} : vector<8x512xf32> to vector<8x256xf32>
    %190 = vector.extract_strided_slice %179 {offsets = [0, 512], sizes = [8, 256], strides = [1, 1]} : vector<8x1024xf32> to vector<8x256xf32>
    %191 = math.tanh %190 : vector<8x256xf32>
    %192 = vector.extract_strided_slice %179 {offsets = [0, 768], sizes = [8, 256], strides = [1, 1]} : vector<8x1024xf32> to vector<8x256xf32>
    %cst_59 = arith.constant 5.000000e-01 : f32
    %193 = vector.broadcast %cst_59 : f32 to vector<8x256xf32>
    %194 = arith.mulf %193, %192 : vector<8x256xf32>
    %195 = math.tanh %194 : vector<8x256xf32>
    %cst_60 = arith.constant 5.000000e-01 : f32
    %196 = vector.broadcast %cst_60 : f32 to vector<8x256xf32>
    %197 = arith.mulf %196, %195 : vector<8x256xf32>
    %cst_61 = arith.constant 5.000000e-01 : f32
    %198 = vector.broadcast %cst_61 : f32 to vector<8x256xf32>
    %199 = arith.addf %197, %198 : vector<8x256xf32>
    %200 = arith.mulf %189, %169 : vector<8x256xf32>
    %201 = arith.mulf %188, %191 : vector<8x256xf32>
    %202 = arith.addf %200, %201 : vector<8x256xf32>
    %203 = math.tanh %202 : vector<8x256xf32>
    %204 = arith.mulf %199, %203 : vector<8x256xf32>
    %c6_i32 = arith.constant 6 : i32
    %205 = arith.index_cast %c6_i32 : i32 to index
    %c0_62 = arith.constant 0 : index
    %c0_63 = arith.constant 0 : index
    %206 = vector.load %arg1[%205, %c0_62, %c0_63] : memref<8x8x1024xbf16, #tpu.memory_space<vmem>>, vector<1x8x1024xbf16>
    %207 = vector.shape_cast %206 : vector<1x8x1024xbf16> to vector<8x1024xbf16>
    %208 = arith.extf %207 : vector<8x1024xbf16> to vector<8x1024xf32>
    %209 = vector.broadcast %4 : vector<1x1024xf32> to vector<8x1024xf32>
    %210 = arith.addf %208, %209 : vector<8x1024xf32>
    %cst_64 = arith.constant dense<0.000000e+00> : vector<8x1024xf32>
    %211 = tpu.matmul %204, %3, %cst_64 {dimension_numbers = #tpu.dot_dimension_numbers<[1], [0], [0], [1], [0, 0, 1, 1], [], []>} : vector<8x256xf32>, vector<256x1024xf32>, vector<8x1024xf32> -> vector<8x1024xf32>
    %212 = arith.addf %210, %211 : vector<8x1024xf32>
    %213 = vector.extract_strided_slice %212 {offsets = [0, 0], sizes = [8, 512], strides = [1, 1]} : vector<8x1024xf32> to vector<8x512xf32>
    %cst_65 = arith.constant 5.000000e-01 : f32
    %214 = vector.broadcast %cst_65 : f32 to vector<8x512xf32>
    %215 = arith.mulf %214, %213 : vector<8x512xf32>
    %216 = math.tanh %215 : vector<8x512xf32>
    %cst_66 = arith.constant 5.000000e-01 : f32
    %217 = vector.broadcast %cst_66 : f32 to vector<8x512xf32>
    %218 = arith.mulf %217, %216 : vector<8x512xf32>
    %cst_67 = arith.constant 5.000000e-01 : f32
    %219 = vector.broadcast %cst_67 : f32 to vector<8x512xf32>
    %220 = arith.addf %218, %219 : vector<8x512xf32>
    %221 = vector.extract_strided_slice %220 {offsets = [0, 0], sizes = [8, 256], strides = [1, 1]} : vector<8x512xf32> to vector<8x256xf32>
    %222 = vector.extract_strided_slice %220 {offsets = [0, 256], sizes = [8, 256], strides = [1, 1]} : vector<8x512xf32> to vector<8x256xf32>
    %223 = vector.extract_strided_slice %212 {offsets = [0, 512], sizes = [8, 256], strides = [1, 1]} : vector<8x1024xf32> to vector<8x256xf32>
    %224 = math.tanh %223 : vector<8x256xf32>
    %225 = vector.extract_strided_slice %212 {offsets = [0, 768], sizes = [8, 256], strides = [1, 1]} : vector<8x1024xf32> to vector<8x256xf32>
    %cst_68 = arith.constant 5.000000e-01 : f32
    %226 = vector.broadcast %cst_68 : f32 to vector<8x256xf32>
    %227 = arith.mulf %226, %225 : vector<8x256xf32>
    %228 = math.tanh %227 : vector<8x256xf32>
    %cst_69 = arith.constant 5.000000e-01 : f32
    %229 = vector.broadcast %cst_69 : f32 to vector<8x256xf32>
    %230 = arith.mulf %229, %228 : vector<8x256xf32>
    %cst_70 = arith.constant 5.000000e-01 : f32
    %231 = vector.broadcast %cst_70 : f32 to vector<8x256xf32>
    %232 = arith.addf %230, %231 : vector<8x256xf32>
    %233 = arith.mulf %222, %202 : vector<8x256xf32>
    %234 = arith.mulf %221, %224 : vector<8x256xf32>
    %235 = arith.addf %233, %234 : vector<8x256xf32>
    %236 = math.tanh %235 : vector<8x256xf32>
    %237 = arith.mulf %232, %236 : vector<8x256xf32>
    %c7_i32 = arith.constant 7 : i32
    %238 = arith.index_cast %c7_i32 : i32 to index
    %c0_71 = arith.constant 0 : index
    %c0_72 = arith.constant 0 : index
    %239 = vector.load %arg1[%238, %c0_71, %c0_72] : memref<8x8x1024xbf16, #tpu.memory_space<vmem>>, vector<1x8x1024xbf16>
    %240 = vector.shape_cast %239 : vector<1x8x1024xbf16> to vector<8x1024xbf16>
    %241 = arith.extf %240 : vector<8x1024xbf16> to vector<8x1024xf32>
    %242 = vector.broadcast %4 : vector<1x1024xf32> to vector<8x1024xf32>
    %243 = arith.addf %241, %242 : vector<8x1024xf32>
    %cst_73 = arith.constant dense<0.000000e+00> : vector<8x1024xf32>
    %244 = tpu.matmul %237, %3, %cst_73 {dimension_numbers = #tpu.dot_dimension_numbers<[1], [0], [0], [1], [0, 0, 1, 1], [], []>} : vector<8x256xf32>, vector<256x1024xf32>, vector<8x1024xf32> -> vector<8x1024xf32>
    %245 = arith.addf %243, %244 : vector<8x1024xf32>
    %246 = vector.extract_strided_slice %245 {offsets = [0, 0], sizes = [8, 512], strides = [1, 1]} : vector<8x1024xf32> to vector<8x512xf32>
    %cst_74 = arith.constant 5.000000e-01 : f32
    %247 = vector.broadcast %cst_74 : f32 to vector<8x512xf32>
    %248 = arith.mulf %247, %246 : vector<8x512xf32>
    %249 = math.tanh %248 : vector<8x512xf32>
    %cst_75 = arith.constant 5.000000e-01 : f32
    %250 = vector.broadcast %cst_75 : f32 to vector<8x512xf32>
    %251 = arith.mulf %250, %249 : vector<8x512xf32>
    %cst_76 = arith.constant 5.000000e-01 : f32
    %252 = vector.broadcast %cst_76 : f32 to vector<8x512xf32>
    %253 = arith.addf %251, %252 : vector<8x512xf32>
    %254 = vector.extract_strided_slice %253 {offsets = [0, 0], sizes = [8, 256], strides = [1, 1]} : vector<8x512xf32> to vector<8x256xf32>
    %255 = vector.extract_strided_slice %253 {offsets = [0, 256], sizes = [8, 256], strides = [1, 1]} : vector<8x512xf32> to vector<8x256xf32>
    %256 = vector.extract_strided_slice %245 {offsets = [0, 512], sizes = [8, 256], strides = [1, 1]} : vector<8x1024xf32> to vector<8x256xf32>
    %257 = math.tanh %256 : vector<8x256xf32>
    %258 = vector.extract_strided_slice %245 {offsets = [0, 768], sizes = [8, 256], strides = [1, 1]} : vector<8x1024xf32> to vector<8x256xf32>
    %cst_77 = arith.constant 5.000000e-01 : f32
    %259 = vector.broadcast %cst_77 : f32 to vector<8x256xf32>
    %260 = arith.mulf %259, %258 : vector<8x256xf32>
    %261 = math.tanh %260 : vector<8x256xf32>
    %cst_78 = arith.constant 5.000000e-01 : f32
    %262 = vector.broadcast %cst_78 : f32 to vector<8x256xf32>
    %263 = arith.mulf %262, %261 : vector<8x256xf32>
    %cst_79 = arith.constant 5.000000e-01 : f32
    %264 = vector.broadcast %cst_79 : f32 to vector<8x256xf32>
    %265 = arith.addf %263, %264 : vector<8x256xf32>
    %266 = arith.mulf %255, %235 : vector<8x256xf32>
    %267 = arith.mulf %254, %257 : vector<8x256xf32>
    %268 = arith.addf %266, %267 : vector<8x256xf32>
    %269 = math.tanh %268 : vector<8x256xf32>
    %270 = arith.mulf %265, %269 : vector<8x256xf32>
    %c8_i32 = arith.constant 8 : i32
    %c0_80 = arith.constant 0 : index
    %c0_81 = arith.constant 0 : index
    %271 = vector.load %arg5[%c0_80, %c0_81] : memref<8x256xf32, #tpu.memory_space<vmem>>, vector<8x256xf32>
    tpu.vector_store %arg5[%c0_80, %c0_81], %270 {strides = array<i32>} : memref<8x256xf32, #tpu.memory_space<vmem>>, vector<8x256xf32>,
    %c0_82 = arith.constant 0 : index
    %c0_83 = arith.constant 0 : index
    %272 = vector.load %arg6[%c0_82, %c0_83] : memref<8x256xf32, #tpu.memory_space<vmem>>, vector<8x256xf32>
    tpu.vector_store %arg6[%c0_82, %c0_83], %268 {strides = array<i32>} : memref<8x256xf32, #tpu.memory_space<vmem>>, vector<8x256xf32>,
    %c0_i32_84 = arith.constant 0 : i32
    %273 = arith.cmpi eq, %arg0, %c0_i32_84 : i32
    %274 = arith.extui %273 : i1 to i32
    %c0_i32_85 = arith.constant 0 : i32
    %275 = arith.cmpi ne, %274, %c0_i32_85 : i32
    scf.if %275 {
      %c0_86 = arith.constant 0 : index
      %c0_87 = arith.constant 0 : index
      %276 = vector.load %arg4[%c0_86, %c0_87] : memref<8x256xf32, #tpu.memory_space<vmem>>, vector<8x256xf32>
      tpu.vector_store %arg4[%c0_86, %c0_87], %270 {strides = array<i32>} : memref<8x256xf32, #tpu.memory_space<vmem>>, vector<8x256xf32>,
    } else {
    }
    return
  }
  func.func @transform_0(%arg0: i32) -> (i32, i32, i32) {
    %c0_i32 = arith.constant 0 : i32
    %c0_i32_0 = arith.constant 0 : i32
    %c0_i32_1 = arith.constant 0 : i32
    return %arg0, %c0_i32, %c0_i32_0 : i32, i32, i32
  }
  func.func @transform_1(%arg0: i32) -> (i32, i32) {
    %c0_i32 = arith.constant 0 : i32
    %c0_i32_0 = arith.constant 0 : i32
    %c0_i32_1 = arith.constant 0 : i32
    return %c0_i32, %c0_i32_0 : i32, i32
  }
  func.func @transform_2(%arg0: i32) -> (i32, i32) {
    %c0_i32 = arith.constant 0 : i32
    %c0_i32_0 = arith.constant 0 : i32
    %c0_i32_1 = arith.constant 0 : i32
    return %c0_i32, %c0_i32_0 : i32, i32
  }
  func.func @transform_3(%arg0: i32) -> (i32, i32) {
    %c0_i32 = arith.constant 0 : i32
    %c0_i32_0 = arith.constant 0 : i32
    %c0_i32_1 = arith.constant 0 : i32
    return %c0_i32, %c0_i32_0 : i32, i32
  }
}

module attributes {stable_mosaic.version = 11 : i64} {
  func.func @fc_kernel(%arg0: i32, %arg1: memref<8x256xf32, #tpu.memory_space<vmem>>, %arg2: memref<256x128xbf16, #tpu.memory_space<vmem>>, %arg3: memref<1x128xf32, #tpu.memory_space<vmem>>, %arg4: memref<8x128xf32, #tpu.memory_space<vmem>>) attributes {dimension_semantics = [#tpu.dimension_semantics<parallel>], iteration_bounds = array<i64: 1>, scalar_prefetch = 0 : i64, scratch_operands = 0 : i64, tpu.core_type = #tpu.core_type<tc>, window_params = [{pipeline_mode = #tpu.pipeline_mode<synchronous>, transform_indices = @transform_0, window_bounds = array<i64: 8, 256>}, {transform_indices = @transform_1, window_bounds = array<i64: 256, 128>}, {transform_indices = @transform_2, window_bounds = array<i64: 1, 128>}, {transform_indices = @transform_3, window_bounds = array<i64: 8, 128>}]} {
    %c0 = arith.constant 0 : index
    %c0_0 = arith.constant 0 : index
    %0 = vector.load %arg1[%c0, %c0_0] : memref<8x256xf32, #tpu.memory_space<vmem>>, vector<8x256xf32>
    %c0_1 = arith.constant 0 : index
    %c0_2 = arith.constant 0 : index
    %1 = vector.load %arg2[%c0_1, %c0_2] : memref<256x128xbf16, #tpu.memory_space<vmem>>, vector<256x128xbf16>
    %2 = arith.extf %1 : vector<256x128xbf16> to vector<256x128xf32>
    %cst = arith.constant dense<0.000000e+00> : vector<8x128xf32>
    %3 = tpu.matmul %0, %2, %cst {dimension_numbers = #tpu.dot_dimension_numbers<[1], [0], [0], [1], [0, 0, 1, 1], [], []>} : vector<8x256xf32>, vector<256x128xf32>, vector<8x128xf32> -> vector<8x128xf32>
    %c0_3 = arith.constant 0 : index
    %c0_4 = arith.constant 0 : index
    %4 = vector.load %arg3[%c0_3, %c0_4] : memref<1x128xf32, #tpu.memory_space<vmem>>, vector<1x128xf32>
    %5 = vector.broadcast %4 : vector<1x128xf32> to vector<8x128xf32>
    %6 = arith.addf %3, %5 : vector<8x128xf32>
    %c0_5 = arith.constant 0 : index
    %c0_6 = arith.constant 0 : index
    %7 = vector.load %arg4[%c0_5, %c0_6] : memref<8x128xf32, #tpu.memory_space<vmem>>, vector<8x128xf32>
    tpu.vector_store %arg4[%c0_5, %c0_6], %6 {strides = array<i32>} : memref<8x128xf32, #tpu.memory_space<vmem>>, vector<8x128xf32>,
    return
  }
  func.func @transform_0(%arg0: i32) -> (i32, i32) {
    %c0_i32 = arith.constant 0 : i32
    %c0_i32_0 = arith.constant 0 : i32
    %c0_i32_1 = arith.constant 0 : i32
    return %c0_i32, %c0_i32_0 : i32, i32
  }
  func.func @transform_1(%arg0: i32) -> (i32, i32) {
    %c0_i32 = arith.constant 0 : i32
    %c0_i32_0 = arith.constant 0 : i32
    return %c0_i32, %arg0 : i32, i32
  }
  func.func @transform_2(%arg0: i32) -> (i32, i32) {
    %c0_i32 = arith.constant 0 : i32
    %c0_i32_0 = arith.constant 0 : i32
    return %c0_i32, %arg0 : i32, i32
  }
  func.func @transform_3(%arg0: i32) -> (i32, i32) {
    %c0_i32 = arith.constant 0 : i32
    %c0_i32_0 = arith.constant 0 : i32
    return %c0_i32, %arg0 : i32, i32
  }
}

</mosaic_0001>

<bundles_post_ra>
// kernel: lstm_model_forward.3
= control target key start
LH: loop header
LB: loop body
LE: loop exit
PB: predicated region body
PF: predicated region fallthrough
CT: control target
= control target key end

     0   :  { %s389_s1 = inlined_call_operand.vmem [shape: bf16[256,128], index: 1, kind: input, shape index: {}]   ;;  %s390_s0 = inlined_call_operand.vmem [shape: f32[8,256], index: 0, kind: input, shape index: {}]   ;;  %s391_s2 = inlined_call_operand.vmem [shape: f32[1,128], index: 2, kind: input, shape index: {}]   ;;  %s392_s3 = inlined_call_operand.vmem [shape: f32[8,128], index: 3, kind: output, shape index: {}]  }
   0x1   :  { %v234_v0 = vld [vmem:[%s389_s1 + $0x40] sm:$0xff]   ;;  %v235_v2 = vld [vmem:[%s389_s1 + $0x48] sm:$0xff]   ;;  %v236_v4 = vld [vmem:[%s389_s1 + $0x50] sm:$0xff]  }
   0x2   :  { %v164_v1 = vld [vmem:[%s389_s1] sm:$0xff]   ;;  %278 = vmatprep.subr.bf16.mxu0 %v234_v0  ;;  %v227_v3 = vld [vmem:[%s389_s1 + $0x8] sm:$0xff]   ;;  %v228_v6 = vld [vmem:[%s389_s1 + $0x10] sm:$0xff]  }
   0x3   :  { %280 = vmatpush3.bf16.msra.mxu0 %v164_v1  ;;  %v15_v5 = vld [vmem:[%s390_s0 + $0x8] sm:$0xff]  ;;  %v237_v7 = vld [vmem:[%s389_s1 + $0x58] sm:$0xff]   ;;  %v238_v9 = vld [vmem:[%s389_s1 + $0x60] sm:$0xff]  }
   0x4   :  { %282 = vmatprep.subr.bf16.mxu0 %v235_v2  ;;  %151 = vmatprep.mubr.f32.mxu0 %v15_v5  ;;  %v229_v8 = vld [vmem:[%s389_s1 + $0x18] sm:$0xff]   ;;  %v230_v10 = vld [vmem:[%s389_s1 + $0x20] sm:$0xff]   ;;  %v239_v11 = vld [vmem:[%s389_s1 + $0x68] sm:$0xff]  }
   0x5   :  { %v231_v12 = vld [vmem:[%s389_s1 + $0x28] sm:$0xff]   ;;  %v240_v13 = vld [vmem:[%s389_s1 + $0x70] sm:$0xff]   ;;  %v241_v15 = vld [vmem:[%s389_s1 + $0x78] sm:$0xff]  }
   0x6   :  { %v232_v14 = vld [vmem:[%s389_s1 + $0x30] sm:$0xff]   ;;  %v233_v16 = vld [vmem:[%s389_s1 + $0x38] sm:$0xff]   ;;  %v14_v17 = vld [vmem:[%s390_s0] sm:$0xff] }
   0x7   :  { %284 = vmatpush3.bf16.msra.mxu0 %v227_v3  ;;  %v162_v19 = vld [vmem:[%s391_s2] ss:$0 sm:$0xff] }
   0x8   :  { %286 = vmatprep.subr.bf16.mxu0 %v236_v4 }
   0xb   :  { %288 = vmatpush3.bf16.msra.mxu0 %v228_v6 }
   0xc   :  { %290 = vmatprep.subr.bf16.mxu0 %v237_v7 }
   0xf   :  { %292 = vmatpush3.bf16.msra.mxu0 %v229_v8 }
  0x10   :  { %294 = vmatprep.subr.bf16.mxu0 %v238_v9 }
  0x13   :  { %296 = vmatpush3.bf16.msra.mxu0 %v230_v10 }
  0x14   :  { %298 = vmatprep.subr.bf16.mxu0 %v239_v11 }
  0x17   :  { %300 = vmatpush3.bf16.msra.mxu0 %v231_v12 }
  0x18   :  { %302 = vmatprep.subr.bf16.mxu0 %v240_v13 }
  0x1b   :  { %304 = vmatpush3.bf16.msra.mxu0 %v232_v14 }
  0x1c   :  { %306 = vmatprep.subr.bf16.mxu0 %v241_v15 }
  0x1f   :  { %308 = vmatpush3.bf16.msra.mxu0 %v233_v16 }
  0x22   :  { %152 = vmatmul.mubr.f32.vlgmr.msra.gmra.mrb[0].mxu0 %v14_v17 }
  0xf5   :  { %v274_v18 = vpop.f32.mrb[0].mxu0 }
  0xf6   :  { %v275_v20 = vpop.f32.mrb[1].mxu0 }
  0xf7   :  { %v276_v21 = vadd.f32 %v275_v20, %v274_v18 }
  0xf9   :  { %v154_v22 = vadd.f32 %v276_v21, %v162_v19 }
  0xfb   :  { %157 = vst [vmem:[%s392_s3] sm:$0xff] %v154_v22 }

// kernel: lstm_model_forward.2
= control target key start
LH: loop header
LB: loop body
LE: loop exit
PB: predicated region body
PF: predicated region fallthrough
CT: control target
= control target key end

     0   :  { %v7729_v3 = vmov 0.0   ;;  %s7725_s1 = inlined_call_operand.vmem [shape: f32[256,1024], index: 1, kind: input, shape index: {}]   ;;  %s7726_s0 = inlined_call_operand.vmem [shape: bf16[8,8,1024], index: 0, kind: input, shape index: {}]   ;;  %s7727_s2 = inlined_call_operand.vmem [shape: f32[1,1024], index: 2, kind: input, shape index: {}]   ;;  %s7728_s3 = inlined_call_operand.vmem [shape: f32[8,256], index: 3, kind: output, shape index: {}]  }
   0x1   :  { %v23_v0 = vld [vmem:[%s7725_s1 + $0x8] sm:$0xff]  ;;  %v22_v2 = vld [vmem:[%s7725_s1] sm:$0xff]  ;;  %408 = vmatprep.mubr.f32.mxu0 %v7729_v3  ;;  %479 = vmatprep.mubr.f32.mxu1 %v7729_v3  ;;  %v25_v14 = vld [vmem:[%s7725_s1 + $0x18] sm:$0xff] }
   0x2   :  { %v31_v1 = vld [vmem:[%s7725_s1 + $0x48] sm:$0xff]  ;;  %v30_v5 = vld [vmem:[%s7725_s1 + $0x40] sm:$0xff]  ;;  %v33_v15 = vld [vmem:[%s7725_s1 + $0x58] sm:$0xff] }
   0x3   :  { %v5397_v4 = vpack.c.bf16 %v31_v1, %v23_v0  ;;  %v39_v6 = vld [vmem:[%s7725_s1 + $0x88] sm:$0xff]  ;;  %v5408_v8 = vpack.c.bf16 %v30_v5, %v22_v2  ;;  %v38_v10 = vld [vmem:[%s7725_s1 + $0x80] sm:$0xff]  ;;  %v5434_v17 = vpack.c.bf16 %v33_v15, %v25_v14  ;;  %v24_v19 = vld [vmem:[%s7725_s1 + $0x10] sm:$0xff] }
   0x4   :  { %v47_v7 = vld [vmem:[%s7725_s1 + $0xc8] sm:$0xff]  ;;  %v46_v11 = vld [vmem:[%s7725_s1 + $0xc0] sm:$0xff]  ;;  %v32_v22 = vld [vmem:[%s7725_s1 + $0x50] sm:$0xff] }
   0x5   :  { %8017 = vst [vmem:[#allocation4_spill] sm:$0xff] %v5397_v4  ;;  %8018 = vst [vmem:[#allocation5_spill] sm:$0xff] %v5408_v8  ;;  %v5410_v9 = vpack.c.bf16 %v47_v7, %v39_v6  ;;  %v55_v12 = vld [vmem:[%s7725_s1 + $0x108] sm:$0xff]  ;;  %3157 = vmatprep.subr.bf16.mxu0 %v5397_v4  ;;  %v5432_v16 = vpack.c.bf16 %v46_v11, %v38_v10  ;;  %v54_v18 = vld [vmem:[%s7725_s1 + $0x100] sm:$0xff]  ;;  %3221 = vmatprep.subr.bf16.mxu1 %v5434_v17 }
   0x6   :  { %v63_v13 = vld [vmem:[%s7725_s1 + $0x148] sm:$0xff]  ;;  %3159 = vmatpush1.bf16.msra.mxu0 %v5408_v8  ;;  %8021 = vst [vmem:[#allocation8_spill] sm:$0xff] %v5434_v17  ;;  %v62_v21 = vld [vmem:[%s7725_s1 + $0x140] sm:$0xff]  ;;  %v5455_v24 = vpack.c.bf16 %v32_v22, %v24_v19  ;;  %v41_v26 = vld [vmem:[%s7725_s1 + $0x98] sm:$0xff] }
   0x7   :  { %8019 = vst [vmem:[#allocation6_spill] sm:$0xff] %v5410_v9  ;;  %8020 = vst [vmem:[#allocation7_spill] sm:$0xff] %v5432_v16  ;;  %3161 = vmatprep.subr.bf16.mxu0 %v5410_v9  ;;  %v5443_v20 = vpack.c.bf16 %v63_v13, %v55_v12  ;;  %v71_v23 = vld [vmem:[%s7725_s1 + $0x188] sm:$0xff]  ;;  %v49_v27 = vld [vmem:[%s7725_s1 + $0xd8] sm:$0xff]  ;;  %v5475_v31 = vpack.c.bf16 %v62_v21, %v54_v18 }
   0x8   :  { %8023 = vst [vmem:[#allocation10_spill] sm:$0xff] %v5455_v24  ;;  %v79_v25 = vld [vmem:[%s7725_s1 + $0x1c8] sm:$0xff]  ;;  %v5466_v28 = vpack.c.bf16 %v49_v27, %v41_v26  ;;  %v40_v29 = vld [vmem:[%s7725_s1 + $0x90] sm:$0xff]  ;;  %3223 = vmatpush1.bf16.msra.mxu1 %v5455_v24  ;;  %v70_v32 = vld [vmem:[%s7725_s1 + $0x180] sm:$0xff] }
   0x9   :  { %8022 = vst [vmem:[#allocation9_spill] sm:$0xff] %v5443_v20  ;;  %v48_v30 = vld [vmem:[%s7725_s1 + $0xd0] sm:$0xff]  ;;  %8025 = vst [vmem:[#allocation12_spill] sm:$0xff] %v5475_v31  ;;  %v57_v34 = vld [vmem:[%s7725_s1 + $0x118] sm:$0xff]  ;;  %v5487_v35 = vpack.c.bf16 %v79_v25, %v71_v23 }
   0xa   :  { %8024 = vst [vmem:[#allocation11_spill] sm:$0xff] %v5466_v28  ;;  %3163 = vmatpush1.bf16.msra.mxu0 %v5432_v16  ;;  %v5481_v33 = vpack.c.bf16 %v48_v30, %v40_v29  ;;  %3225 = vmatprep.subr.bf16.mxu1 %v5466_v28  ;;  %v78_v36 = vld [vmem:[%s7725_s1 + $0x1c0] sm:$0xff]  ;;  %v87_v37 = vld [vmem:[%s7725_s1 + $0x208] sm:$0xff]  ;;  %v65_v38 = vld [vmem:[%s7725_s1 + $0x158] sm:$0xff] }
   0xb   :  { %3165 = vmatprep.subr.bf16.mxu0 %v5443_v20  ;;  %8027 = vst [vmem:[#allocation14_spill] sm:$0xff] %v5487_v35  ;;  %v95_v39 = vld [vmem:[%s7725_s1 + $0x248] sm:$0xff]  ;;  %v5502_v40 = vpack.c.bf16 %v65_v38, %v57_v34  ;;  %v56_v41 = vld [vmem:[%s7725_s1 + $0x110] sm:$0xff]  ;;  %v73_v43 = vld [vmem:[%s7725_s1 + $0x198] sm:$0xff]  ;;  %v5517_v45 = vpack.c.bf16 %v78_v36, %v70_v32 }
   0xc   :  { %8026 = vst [vmem:[#allocation13_spill] sm:$0xff] %v5481_v33  ;;  %v64_v42 = vld [vmem:[%s7725_s1 + $0x150] sm:$0xff]  ;;  %v81_v44 = vld [vmem:[%s7725_s1 + $0x1d8] sm:$0xff]  ;;  %3227 = vmatpush1.bf16.msra.mxu1 %v5481_v33  ;;  %v86_v46 = vld [vmem:[%s7725_s1 + $0x200] sm:$0xff]  ;;  %v5529_v49 = vpack.c.bf16 %v95_v39, %v87_v37 }
   0xd   :  { %8028 = vst [vmem:[#allocation15_spill] sm:$0xff] %v5502_v40  ;;  %8029 = vst [vmem:[#allocation16_spill] sm:$0xff] %v5517_v45  ;;  %v94_v47 = vld [vmem:[%s7725_s1 + $0x240] sm:$0xff]  ;;  %v5526_v48 = vpack.c.bf16 %v64_v42, %v56_v41  ;;  %3229 = vmatprep.subr.bf16.mxu1 %v5502_v40  ;;  %v103_v50 = vld [vmem:[%s7725_s1 + $0x288] sm:$0xff]  ;;  %v5535_v51 = vpack.c.bf16 %v81_v44, %v73_v43 }
   0xe   :  { %3167 = vmatpush1.bf16.msra.mxu0 %v5475_v31  ;;  %8031 = vst [vmem:[#allocation18_spill] sm:$0xff] %v5529_v49  ;;  %v72_v52 = vld [vmem:[%s7725_s1 + $0x190] sm:$0xff]  ;;  %v111_v54 = vld [vmem:[%s7725_s1 + $0x2c8] sm:$0xff]  ;;  %v89_v55 = vld [vmem:[%s7725_s1 + $0x218] sm:$0xff]  ;;  %v5553_v57 = vpack.c.bf16 %v94_v47, %v86_v46 }
   0xf   :  { %8030 = vst [vmem:[#allocation17_spill] sm:$0xff] %v5526_v48  ;;  %3169 = vmatprep.subr.bf16.mxu0 %v5487_v35  ;;  %8032 = vst [vmem:[#allocation19_spill] sm:$0xff] %v5535_v51  ;;  %v80_v53 = vld [vmem:[%s7725_s1 + $0x1d0] sm:$0xff]  ;;  %v97_v56 = vld [vmem:[%s7725_s1 + $0x258] sm:$0xff]  ;;  %v5565_v61 = vpack.c.bf16 %v111_v54, %v103_v50 }
  0x10   :  { %8033 = vst [vmem:[#allocation20_spill] sm:$0xff] %v5553_v57  ;;  %3231 = vmatpush1.bf16.msra.mxu1 %v5526_v48  ;;  %v102_v58 = vld [vmem:[%s7725_s1 + $0x280] sm:$0xff]  ;;  %v5562_v60 = vpack.c.bf16 %v80_v53, %v72_v52  ;;  %v119_v62 = vld [vmem:[%s7725_s1 + $0x308] sm:$0xff]  ;;  %v5571_v63 = vpack.c.bf16 %v97_v56, %v89_v55  ;;  %v88_v0 = vld [vmem:[%s7725_s1 + $0x210] sm:$0xff] }
  0x11   :  { %v110_v59 = vld [vmem:[%s7725_s1 + $0x2c0] sm:$0xff]  ;;  %8035 = vst [vmem:[#allocation22_spill] sm:$0xff] %v5565_v61  ;;  %3233 = vmatprep.subr.bf16.mxu1 %v5535_v51  ;;  %v96_v1 = vld [vmem:[%s7725_s1 + $0x250] sm:$0xff]  ;;  %v127_v2 = vld [vmem:[%s7725_s1 + $0x348] sm:$0xff] }
  0x12   :  { %3171 = vmatpush1.bf16.msra.mxu0 %v5517_v45  ;;  %8034 = vst [vmem:[#allocation21_spill] sm:$0xff] %v5562_v60  ;;  %8036 = vst [vmem:[#allocation23_spill] sm:$0xff] %v5571_v63  ;;  %v105_v5 = vld [vmem:[%s7725_s1 + $0x298] sm:$0xff]  ;;  %v5589_v7 = vpack.c.bf16 %v110_v59, %v102_v58  ;;  %v118_v10 = vld [vmem:[%s7725_s1 + $0x300] sm:$0xff]  ;;  %v5598_v12 = vpack.c.bf16 %v96_v1, %v88_v0  ;;  %v5601_v13 = vpack.c.bf16 %v127_v2, %v119_v62 }
  0x13   :  { %3173 = vmatprep.subr.bf16.mxu0 %v5529_v49  ;;  %v113_v6 = vld [vmem:[%s7725_s1 + $0x2d8] sm:$0xff]  ;;  %v126_v11 = vld [vmem:[%s7725_s1 + $0x340] sm:$0xff]  ;;  %v135_v14 = vld [vmem:[%s7725_s1 + $0x388] sm:$0xff] }
  0x14   :  { %8037 = vst [vmem:[#allocation24_spill] sm:$0xff] %v5589_v7  ;;  %3235 = vmatpush1.bf16.msra.mxu1 %v5562_v60  ;;  %8038 = vst [vmem:[#allocation25_spill] sm:$0xff] %v5598_v12  ;;  %v5607_v15 = vpack.c.bf16 %v113_v6, %v105_v5  ;;  %v104_v18 = vld [vmem:[%s7725_s1 + $0x290] sm:$0xff]  ;;  %v143_v21 = vld [vmem:[%s7725_s1 + $0x3c8] sm:$0xff]  ;;  %v5625_v25 = vpack.c.bf16 %v126_v11, %v118_v10 }
  0x15   :  { %8039 = vst [vmem:[#allocation26_spill] sm:$0xff] %v5601_v13  ;;  %3237 = vmatprep.subr.bf16.mxu1 %v5571_v63  ;;  %v112_v19 = vld [vmem:[%s7725_s1 + $0x2d0] sm:$0xff]  ;;  %v121_v22 = vld [vmem:[%s7725_s1 + $0x318] sm:$0xff]  ;;  %v134_v26 = vld [vmem:[%s7725_s1 + $0x380] sm:$0xff]  ;;  %v5637_v30 = vpack.c.bf16 %v143_v21, %v135_v14 }
  0x16   :  { %3175 = vmatpush1.bf16.msra.mxu0 %v5553_v57  ;;  %8040 = vst [vmem:[#allocation27_spill] sm:$0xff] %v5607_v15  ;;  %v129_v23 = vld [vmem:[%s7725_s1 + $0x358] sm:$0xff]  ;;  %8041 = vst [vmem:[#allocation28_spill] sm:$0xff] %v5625_v25  ;;  %v142_v27 = vld [vmem:[%s7725_s1 + $0x3c0] sm:$0xff]  ;;  %v5634_v29 = vpack.c.bf16 %v112_v19, %v104_v18 }
  0x17   :  { %3177 = vmatprep.subr.bf16.mxu0 %v5565_v61  ;;  %8043 = vst [vmem:[#allocation30_spill] sm:$0xff] %v5637_v30  ;;  %v151_v32 = vld [vmem:[%s7725_s1 + $0x408] sm:$0xff]  ;;  %v5643_v34 = vpack.c.bf16 %v129_v23, %v121_v22  ;;  %v120_v36 = vld [vmem:[%s7725_s1 + $0x310] sm:$0xff]  ;;  %v137_v39 = vld [vmem:[%s7725_s1 + $0x398] sm:$0xff]  ;;  %v5661_v42 = vpack.c.bf16 %v142_v27, %v134_v26 }
  0x18   :  { %3239 = vmatpush1.bf16.msra.mxu1 %v5598_v12  ;;  %8042 = vst [vmem:[#allocation29_spill] sm:$0xff] %v5634_v29  ;;  %v128_v37 = vld [vmem:[%s7725_s1 + $0x350] sm:$0xff]  ;;  %v159_v38 = vld [vmem:[%s7725_s1 + $0x448] sm:$0xff]  ;;  %v145_v41 = vld [vmem:[%s7725_s1 + $0x3d8] sm:$0xff] }
  0x19   :  { %3241 = vmatprep.subr.bf16.mxu1 %v5607_v15  ;;  %8044 = vst [vmem:[#allocation31_spill] sm:$0xff] %v5643_v34  ;;  %8045 = vst [vmem:[#allocation32_spill] sm:$0xff] %v5661_v42  ;;  %v150_v43 = vld [vmem:[%s7725_s1 + $0x400] sm:$0xff]  ;;  %v5670_v46 = vpack.c.bf16 %v128_v37, %v120_v36  ;;  %v5673_v47 = vpack.c.bf16 %v159_v38, %v151_v32  ;;  %v167_v50 = vld [vmem:[%s7725_s1 + $0x488] sm:$0xff]  ;;  %v5679_v52 = vpack.c.bf16 %v145_v41, %v137_v39 }
  0x1a   :  { %3179 = vmatpush1.bf16.msra.mxu0 %v5589_v7  ;;  %v158_v44 = vld [vmem:[%s7725_s1 + $0x440] sm:$0xff]  ;;  %v136_v53 = vld [vmem:[%s7725_s1 + $0x390] sm:$0xff]  ;;  %v175_v55 = vld [vmem:[%s7725_s1 + $0x4c8] sm:$0xff] }
  0x1b   :  { %3181 = vmatprep.subr.bf16.mxu0 %v5601_v13  ;;  %8046 = vst [vmem:[#allocation33_spill] sm:$0xff] %v5670_v46  ;;  %8047 = vst [vmem:[#allocation34_spill] sm:$0xff] %v5673_v47  ;;  %v144_v54 = vld [vmem:[%s7725_s1 + $0x3d0] sm:$0xff]  ;;  %v153_v56 = vld [vmem:[%s7725_s1 + $0x418] sm:$0xff]  ;;  %v5697_v59 = vpack.c.bf16 %v158_v44, %v150_v43  ;;  %v5709_v2 = vpack.c.bf16 %v175_v55, %v167_v50 }
  0x1c   :  { %3243 = vmatpush1.bf16.msra.mxu1 %v5634_v29  ;;  %8048 = vst [vmem:[#allocation35_spill] sm:$0xff] %v5679_v52  ;;  %v161_v58 = vld [vmem:[%s7725_s1 + $0x458] sm:$0xff]  ;;  %v166_v62 = vld [vmem:[%s7725_s1 + $0x480] sm:$0xff]  ;;  %v5706_v1 = vpack.c.bf16 %v144_v54, %v136_v53  ;;  %v183_v5 = vld [vmem:[%s7725_s1 + $0x508] sm:$0xff] }
  0x1d   :  { %3245 = vmatprep.subr.bf16.mxu1 %v5643_v34  ;;  %8049 = vst [vmem:[#allocation36_spill] sm:$0xff] %v5697_v59  ;;  %v174_v0 = vld [vmem:[%s7725_s1 + $0x4c0] sm:$0xff]  ;;  %8051 = vst [vmem:[#allocation38_spill] sm:$0xff] %v5709_v2  ;;  %v5715_v6 = vpack.c.bf16 %v161_v58, %v153_v56  ;;  %v152_v10 = vld [vmem:[%s7725_s1 + $0x410] sm:$0xff] }
  0x1e   :  { %3183 = vmatpush1.bf16.msra.mxu0 %v5625_v25  ;;  %8050 = vst [vmem:[#allocation37_spill] sm:$0xff] %v5706_v1  ;;  %v160_v11 = vld [vmem:[%s7725_s1 + $0x450] sm:$0xff]  ;;  %v191_v14 = vld [vmem:[%s7725_s1 + $0x548] sm:$0xff]  ;;  %v169_v18 = vld [vmem:[%s7725_s1 + $0x498] sm:$0xff]  ;;  %v5733_v21 = vpack.c.bf16 %v174_v0, %v166_v62 }
  0x1f   :  { %3185 = vmatprep.subr.bf16.mxu0 %v5637_v30  ;;  %8052 = vst [vmem:[#allocation39_spill] sm:$0xff] %v5715_v6  ;;  %v177_v19 = vld [vmem:[%s7725_s1 + $0x4d8] sm:$0xff]  ;;  %v182_v22 = vld [vmem:[%s7725_s1 + $0x500] sm:$0xff]  ;;  %v5742_v26 = vpack.c.bf16 %v160_v11, %v152_v10  ;;  %v5745_v27 = vpack.c.bf16 %v191_v14, %v183_v5  ;;  %v199_v32 = vld [vmem:[%s7725_s1 + $0x588] sm:$0xff] }
  0x20   :  { %3247 = vmatpush1.bf16.msra.mxu1 %v5670_v46  ;;  %8053 = vst [vmem:[#allocation40_spill] sm:$0xff] %v5733_v21  ;;  %v190_v23 = vld [vmem:[%s7725_s1 + $0x540] sm:$0xff]  ;;  %v5751_v36 = vpack.c.bf16 %v177_v19, %v169_v18  ;;  %v168_v37 = vld [vmem:[%s7725_s1 + $0x490] sm:$0xff]  ;;  %v207_v39 = vld [vmem:[%s7725_s1 + $0x5c8] sm:$0xff] }
  0x21   :  { %3249 = vmatprep.subr.bf16.mxu1 %v5679_v52  ;;  %8054 = vst [vmem:[#allocation41_spill] sm:$0xff] %v5742_v26  ;;  %8055 = vst [vmem:[#allocation42_spill] sm:$0xff] %v5745_v27  ;;  %v176_v38 = vld [vmem:[%s7725_s1 + $0x4d0] sm:$0xff]  ;;  %v185_v41 = vld [vmem:[%s7725_s1 + $0x518] sm:$0xff]  ;;  %v5769_v44 = vpack.c.bf16 %v190_v23, %v182_v22  ;;  %v5781_v55 = vpack.c.bf16 %v207_v39, %v199_v32 }
  0x22   :  { %3187 = vmatpush1.bf16.msra.mxu0 %v5661_v42  ;;  %8056 = vst [vmem:[#allocation43_spill] sm:$0xff] %v5751_v36  ;;  %v193_v43 = vld [vmem:[%s7725_s1 + $0x558] sm:$0xff]  ;;  %v198_v50 = vld [vmem:[%s7725_s1 + $0x580] sm:$0xff]  ;;  %v5778_v54 = vpack.c.bf16 %v176_v38, %v168_v37  ;;  %v215_v56 = vld [vmem:[%s7725_s1 + $0x608] sm:$0xff] }
  0x23   :  { %3189 = vmatprep.subr.bf16.mxu0 %v5673_v47  ;;  %8057 = vst [vmem:[#allocation44_spill] sm:$0xff] %v5769_v44  ;;  %v206_v53 = vld [vmem:[%s7725_s1 + $0x5c0] sm:$0xff]  ;;  %8059 = vst [vmem:[#allocation46_spill] sm:$0xff] %v5781_v55  ;;  %v5787_v58 = vpack.c.bf16 %v193_v43, %v185_v41  ;;  %v184_v62 = vld [vmem:[%s7725_s1 + $0x510] sm:$0xff] }
  0x24   :  { %3251 = vmatpush1.bf16.msra.mxu1 %v5706_v1  ;;  %8058 = vst [vmem:[#allocation45_spill] sm:$0xff] %v5778_v54  ;;  %v192_v0 = vld [vmem:[%s7725_s1 + $0x550] sm:$0xff]  ;;  %v223_v5 = vld [vmem:[%s7725_s1 + $0x648] sm:$0xff]  ;;  %v201_v10 = vld [vmem:[%s7725_s1 + $0x598] sm:$0xff]  ;;  %v5805_v14 = vpack.c.bf16 %v206_v53, %v198_v50 }
  0x25   :  { %3253 = vmatprep.subr.bf16.mxu1 %v5715_v6  ;;  %8060 = vst [vmem:[#allocation47_spill] sm:$0xff] %v5787_v58  ;;  %v209_v11 = vld [vmem:[%s7725_s1 + $0x5d8] sm:$0xff]  ;;  %v214_v18 = vld [vmem:[%s7725_s1 + $0x600] sm:$0xff]  ;;  %v5814_v22 = vpack.c.bf16 %v192_v0, %v184_v62  ;;  %v5817_v23 = vpack.c.bf16 %v223_v5, %v215_v56  ;;  %v231_v32 = vld [vmem:[%s7725_s1 + $0x688] sm:$0xff] }
  0x26   :  { %3191 = vmatpush1.bf16.msra.mxu0 %v5697_v59  ;;  %8061 = vst [vmem:[#allocation48_spill] sm:$0xff] %v5805_v14  ;;  %v222_v19 = vld [vmem:[%s7725_s1 + $0x640] sm:$0xff]  ;;  %v5823_v37 = vpack.c.bf16 %v209_v11, %v201_v10  ;;  %v200_v38 = vld [vmem:[%s7725_s1 + $0x590] sm:$0xff]  ;;  %v239_v41 = vld [vmem:[%s7725_s1 + $0x6c8] sm:$0xff] }
  0x27   :  { %3193 = vmatprep.subr.bf16.mxu0 %v5709_v2  ;;  %8062 = vst [vmem:[#allocation49_spill] sm:$0xff] %v5814_v22  ;;  %8063 = vst [vmem:[#allocation50_spill] sm:$0xff] %v5817_v23  ;;  %v208_v39 = vld [vmem:[%s7725_s1 + $0x5d0] sm:$0xff]  ;;  %v217_v43 = vld [vmem:[%s7725_s1 + $0x618] sm:$0xff]  ;;  %v5841_v53 = vpack.c.bf16 %v222_v19, %v214_v18  ;;  %v5853_v5 = vpack.c.bf16 %v239_v41, %v231_v32 }
  0x28   :  { %3255 = vmatpush1.bf16.msra.mxu1 %v5742_v26  ;;  %8064 = vst [vmem:[#allocation51_spill] sm:$0xff] %v5823_v37  ;;  %v225_v50 = vld [vmem:[%s7725_s1 + $0x658] sm:$0xff]  ;;  %v230_v56 = vld [vmem:[%s7725_s1 + $0x680] sm:$0xff]  ;;  %v5850_v0 = vpack.c.bf16 %v208_v39, %v200_v38  ;;  %v247_v10 = vld [vmem:[%s7725_s1 + $0x708] sm:$0xff] }
  0x29   :  { %3257 = vmatprep.subr.bf16.mxu1 %v5751_v36  ;;  %8065 = vst [vmem:[#allocation52_spill] sm:$0xff] %v5841_v53  ;;  %v238_v62 = vld [vmem:[%s7725_s1 + $0x6c0] sm:$0xff]  ;;  %8067 = vst [vmem:[#allocation54_spill] sm:$0xff] %v5853_v5  ;;  %v5859_v11 = vpack.c.bf16 %v225_v50, %v217_v43  ;;  %v216_v18 = vld [vmem:[%s7725_s1 + $0x610] sm:$0xff] }
  0x2a   :  { %3195 = vmatpush1.bf16.msra.mxu0 %v5733_v21  ;;  %8066 = vst [vmem:[#allocation53_spill] sm:$0xff] %v5850_v0  ;;  %v224_v19 = vld [vmem:[%s7725_s1 + $0x650] sm:$0xff]  ;;  %v255_v32 = vld [vmem:[%s7725_s1 + $0x748] sm:$0xff]  ;;  %v233_v38 = vld [vmem:[%s7725_s1 + $0x698] sm:$0xff]  ;;  %v5877_v41 = vpack.c.bf16 %v238_v62, %v230_v56 }
  0x2b   :  { %3197 = vmatprep.subr.bf16.mxu0 %v5745_v27  ;;  %8068 = vst [vmem:[#allocation55_spill] sm:$0xff] %v5859_v11  ;;  %v241_v39 = vld [vmem:[%s7725_s1 + $0x6d8] sm:$0xff]  ;;  %v246_v43 = vld [vmem:[%s7725_s1 + $0x700] sm:$0xff]  ;;  %v5886_v3 = vpack.c.bf16 %v224_v19, %v216_v18  ;;  %v263_v56 = vld [vmem:[%s7725_s1 + $0x788] sm:$0xff] }
  0x2c   :  { %3259 = vmatpush1.bf16.msra.mxu1 %v5778_v54  ;;  %8069 = vst [vmem:[#allocation56_spill] sm:$0xff] %v5877_v41  ;;  %v254_v50 = vld [vmem:[%s7725_s1 + $0x740] sm:$0xff]  ;;  %v5895_v62 = vpack.c.bf16 %v241_v39, %v233_v38  ;;  %v240_v18 = vld [vmem:[%s7725_s1 + $0x6d0] sm:$0xff]  ;;  %v249_v19 = vld [vmem:[%s7725_s1 + $0x718] sm:$0xff] }
  0x2d   :  { %3261 = vmatprep.subr.bf16.mxu1 %v5787_v58  ;;  %8070 = vst [vmem:[#allocation57_spill] sm:$0xff] %v5886_v3  ;;  %v5913_v38 = vpack.c.bf16 %v254_v50, %v246_v43  ;;  %v262_v39 = vld [vmem:[%s7725_s1 + $0x780] sm:$0xff]  ;;  %v27_v50 = vld [vmem:[%s7725_s1 + $0x28] sm:$0xff] }
  0x2e   :  { %3199 = vmatpush1.bf16.msra.mxu0 %v5769_v44  ;;  %8072 = vst [vmem:[#allocation59_spill] sm:$0xff] %v5895_v62 }
  0x2f   :  { %3201 = vmatprep.subr.bf16.mxu0 %v5781_v55  ;;  %8073 = vst [vmem:[#allocation60_spill] sm:$0xff] %v5913_v38 }
  0x30   :  { %3263 = vmatpush1.bf16.msra.mxu1 %v5814_v22 }
  0x31   :  { %3265 = vmatprep.subr.bf16.mxu1 %v5823_v37 }
  0x32   :  { %3203 = vmatpush1.bf16.msra.mxu0 %v5805_v14 }
  0x33   :  { %3205 = vmatprep.subr.bf16.mxu0 %v5817_v23  ;;  %v5889_v23 = vpack.c.bf16 %v255_v32, %v247_v10  ;;  %v271_v10 = vld [vmem:[%s7725_s1 + $0x7c8] sm:$0xff]  ;;  %v257_v32 = vld [vmem:[%s7725_s1 + $0x758] sm:$0xff] }
  0x34   :  { %3267 = vmatpush1.bf16.msra.mxu1 %v5850_v0  ;;  %v5925_v0 = vpack.c.bf16 %v271_v10, %v263_v56  ;;  %v5928_v43 = vpack.c.bf16 %v257_v32, %v249_v19  ;;  %v35_v56 = vld [vmem:[%s7725_s1 + $0x68] sm:$0xff]  ;;  %v273_v10 = vld [vmem:[%s7725_s1 + $0x7d8] sm:$0xff] }
  0x35   :  { %8071 = vst [vmem:[#allocation58_spill] sm:$0xff] %v5889_v23  ;;  %3269 = vmatprep.subr.bf16.mxu1 %v5859_v11 }
  0x36   :  { %3207 = vmatpush1.bf16.msra.mxu0 %v5841_v53  ;;  %v232_v53 = vld [vmem:[%s7725_s1 + $0x690] sm:$0xff]  ;;  %8075 = vst [vmem:[#allocation62_spill] sm:$0xff] %v5925_v0  ;;  %8076 = vst [vmem:[#allocation63_spill] sm:$0xff] %v5928_v43 }
  0x37   :  { %3209 = vmatprep.subr.bf16.mxu0 %v5853_v5  ;;  %v270_v5 = vld [vmem:[%s7725_s1 + $0x7c0] sm:$0xff]  ;;  %v5922_v11 = vpack.c.bf16 %v240_v18, %v232_v53  ;;  %v256_v53 = vld [vmem:[%s7725_s1 + $0x750] sm:$0xff]  ;;  %v265_v18 = vld [vmem:[%s7725_s1 + $0x798] sm:$0xff] }
  0x38   :  { %3271 = vmatpush1.bf16.msra.mxu1 %v5886_v3  ;;  %v5949_v19 = vpack.c.bf16 %v270_v5, %v262_v39  ;;  %v5962_v3 = vpack.c.bf16 %v35_v56, %v27_v50  ;;  %v5964_v5 = vpack.c.bf16 %v273_v10, %v265_v18  ;;  %v264_v39 = vld [vmem:[%s7725_s1 + $0x790] sm:$0xff]  ;;  %v29_v50 = vld [vmem:[%s7725_s1 + $0x38] sm:$0xff] }
  0x39   :  { %8074 = vst [vmem:[#allocation61_spill] sm:$0xff] %v5922_v11  ;;  %3273 = vmatprep.subr.bf16.mxu1 %v5895_v62  ;;  %v34_v62 = vld [vmem:[%s7725_s1 + $0x60] sm:$0xff]  ;;  %v37_v56 = vld [vmem:[%s7725_s1 + $0x78] sm:$0xff] }
  0x3a   :  { %3211 = vmatpush1.bf16.msra.mxu0 %v5877_v41  ;;  %v248_v41 = vld [vmem:[%s7725_s1 + $0x710] sm:$0xff]  ;;  %8077 = vst [vmem:[#allocation64_spill] sm:$0xff] %v5949_v19  ;;  %8079 = vst [vmem:[#allocation66_spill] sm:$0xff] %v5962_v3 }
  0x3b   :  { %3213 = vmatprep.subr.bf16.mxu0 %v5889_v23  ;;  %v5952_v32 = vpack.c.bf16 %v256_v53, %v248_v41  ;;  %v26_v23 = vld [vmem:[%s7725_s1 + $0x20] sm:$0xff]  ;;  %8080 = vst [vmem:[#allocation67_spill] sm:$0xff] %v5964_v5  ;;  %v43_v41 = vld [vmem:[%s7725_s1 + $0xa8] sm:$0xff]  ;;  %v272_v53 = vld [vmem:[%s7725_s1 + $0x7d0] sm:$0xff] }
  0x3c   :  { %3275 = vmatpush1.bf16.msra.mxu1 %v5922_v11  ;;  %v5986_v18 = vpack.c.bf16 %v34_v62, %v26_v23  ;;  %v5988_v10 = vpack.c.bf16 %v272_v53, %v264_v39  ;;  %v59_v23 = vld [vmem:[%s7725_s1 + $0x128] sm:$0xff]  ;;  %v6003_v62 = vpack.c.bf16 %v37_v56, %v29_v50  ;;  %v28_v39 = vld [vmem:[%s7725_s1 + $0x30] sm:$0xff]  ;;  %v8085_v50 = vmov 0.0  }
  0x3d   :  { %8078 = vst [vmem:[#allocation65_spill] sm:$0xff] %v5952_v32  ;;  %3277 = vmatprep.subr.bf16.mxu1 %v5928_v43  ;;  %v42_v43 = vld [vmem:[%s7725_s1 + $0xa0] sm:$0xff]  ;;  %v36_v53 = vld [vmem:[%s7725_s1 + $0x70] sm:$0xff] }
  0x3e   :  { %3215 = vmatpush1.bf16.msra.mxu0 %v5913_v38  ;;  %8081 = vst [vmem:[#allocation68_spill] sm:$0xff] %v5986_v18  ;;  %8082 = vst [vmem:[#allocation69_spill] sm:$0xff] %v5988_v10  ;;  %v50_v38 = vld [vmem:[%s7725_s1 + $0xe0] sm:$0xff] }
  0x3f   :  { %3217 = vmatprep.subr.bf16.mxu0 %v5925_v0  ;;  %v51_v0 = vld [vmem:[%s7725_s1 + $0xe8] sm:$0xff]  ;;  %8084 = vst [vmem:[#allocation71_spill] sm:$0xff] %v6003_v62  ;;  %v6023_v56 = vpack.c.bf16 %v50_v38, %v42_v43 }
  0x40   :  { %3279 = vmatpush1.bf16.msra.mxu1 %v5952_v32  ;;  %v5998_v11 = vpack.c.bf16 %v51_v0, %v43_v41  ;;  %v45_v0 = vld [vmem:[%s7725_s1 + $0xb8] sm:$0xff]  ;;  %v6031_v32 = vpack.c.bf16 %v36_v53, %v28_v39  ;;  %v75_v38 = vld [vmem:[%s7725_s1 + $0x1a8] sm:$0xff]  ;;  %v52_v39 = vld [vmem:[%s7725_s1 + $0xf0] sm:$0xff] }
  0x41   :  { %3281 = vmatprep.subr.bf16.mxu1 %v5964_v5  ;;  %v53_v41 = vld [vmem:[%s7725_s1 + $0xf8] sm:$0xff]  ;;  %8086 = vst [vmem:[#allocation72_spill] sm:$0xff] %v6023_v56  ;;  %v58_v5 = vld [vmem:[%s7725_s1 + $0x120] sm:$0xff] }
  0x42   :  { %3219 = vmatpush1.bf16.msra.mxu0 %v5949_v19  ;;  %8083 = vst [vmem:[#allocation70_spill] sm:$0xff] %v5998_v11  ;;  %v66_v19 = vld [vmem:[%s7725_s1 + $0x160] sm:$0xff]  ;;  %8087 = vst [vmem:[#allocation73_spill] sm:$0xff] %v6031_v32  ;;  %v6040_v43 = vpack.c.bf16 %v53_v41, %v45_v0  ;;  %v69_v53 = vld [vmem:[%s7725_s1 + $0x178] sm:$0xff] }
  0x43   :  { %3285 = vmatprep.subr.bf16.mxu0 %v5962_v3  ;;  %v67_v3 = vld [vmem:[%s7725_s1 + $0x168] sm:$0xff]  ;;  %v6060_v0 = vpack.c.bf16 %v66_v19, %v58_v5  ;;  %v74_v41 = vld [vmem:[%s7725_s1 + $0x1a0] sm:$0xff] }
  0x44   :  { %3283 = vmatpush1.bf16.msra.mxu1 %v5988_v10  ;;  %v6034_v37 = vpack.c.bf16 %v67_v3, %v59_v23  ;;  %8089 = vst [vmem:[#allocation75_spill] sm:$0xff] %v6040_v43  ;;  %v83_v3 = vld [vmem:[%s7725_s1 + $0x1e8] sm:$0xff]  ;;  %v61_v23 = vld [vmem:[%s7725_s1 + $0x138] sm:$0xff] }
  0x45   :  { %409 = vmatmul.mubr.f32.vlgmr.msra.gmra.mrb[0].mxu0 %v8085_v50  ;;  %3349 = vmatprep.subr.bf16.mxu1 %v6003_v62  ;;  %8090 = vst [vmem:[#allocation76_spill] sm:$0xff] %v6060_v0  ;;  %v6072_v10 = vpack.c.bf16 %v83_v3, %v75_v38  ;;  %v91_v19 = vld [vmem:[%s7725_s1 + $0x228] sm:$0xff]  ;;  %v6078_v5 = vpack.c.bf16 %v69_v53, %v61_v23  ;;  %v85_v3 = vld [vmem:[%s7725_s1 + $0x1f8] sm:$0xff]  ;;  %v90_v53 = vld [vmem:[%s7725_s1 + $0x220] sm:$0xff] }
  0x46   :  { %3287 = vmatpush1.bf16.msra.mxu0 %v5986_v18  ;;  %8088 = vst [vmem:[#allocation74_spill] sm:$0xff] %v6034_v37  ;;  %v44_v18 = vld [vmem:[%s7725_s1 + $0xb0] sm:$0xff]  ;;  %550 = vmatprep.mubr.f32.mxu0 %v8085_v50  ;;  %v99_v38 = vld [vmem:[%s7725_s1 + $0x268] sm:$0xff] }
  0x47   :  { %3289 = vmatprep.subr.bf16.mxu0 %v5998_v11  ;;  %480 = vmatmul.mubr.f32.vlgmr.msra.gmra.mrb[0].mxu1 %v8085_v50  ;;  %v82_v11 = vld [vmem:[%s7725_s1 + $0x1e0] sm:$0xff]  ;;  %v6069_v62 = vpack.c.bf16 %v52_v39, %v44_v18  ;;  %8092 = vst [vmem:[#allocation78_spill] sm:$0xff] %v6072_v10  ;;  %8093 = vst [vmem:[#allocation79_spill] sm:$0xff] %v6078_v5  ;;  %v68_v18 = vld [vmem:[%s7725_s1 + $0x170] sm:$0xff] }
  0x48   :  { %3351 = vmatpush1.bf16.msra.mxu1 %v6031_v32  ;;  %v77_v39 = vld [vmem:[%s7725_s1 + $0x1b8] sm:$0xff]  ;;  %621 = vmatprep.mubr.f32.mxu1 %v8085_v50  ;;  %v6097_v23 = vpack.c.bf16 %v82_v11, %v74_v41  ;;  %v6109_v32 = vpack.c.bf16 %v99_v38, %v91_v19  ;;  %v107_v11 = vld [vmem:[%s7725_s1 + $0x2a8] sm:$0xff] }
  0x49   :  { %8091 = vst [vmem:[#allocation77_spill] sm:$0xff] %v6069_v62  ;;  %3353 = vmatprep.subr.bf16.mxu1 %v6040_v43  ;;  %v6115_v41 = vpack.c.bf16 %v85_v3, %v77_v39  ;;  %v115_v19 = vld [vmem:[%s7725_s1 + $0x2e8] sm:$0xff]  ;;  %v101_v38 = vld [vmem:[%s7725_s1 + $0x278] sm:$0xff]  ;;  %v106_v3 = vld [vmem:[%s7725_s1 + $0x2a0] sm:$0xff] }
  0x4a   :  { %3291 = vmatpush1.bf16.msra.mxu0 %v6023_v56  ;;  %v60_v56 = vld [vmem:[%s7725_s1 + $0x130] sm:$0xff]  ;;  %8094 = vst [vmem:[#allocation80_spill] sm:$0xff] %v6097_v23  ;;  %8096 = vst [vmem:[#allocation82_spill] sm:$0xff] %v6109_v32 }
  0x4b   :  { %3293 = vmatprep.subr.bf16.mxu0 %v6034_v37  ;;  %v98_v37 = vld [vmem:[%s7725_s1 + $0x260] sm:$0xff]  ;;  %v6106_v43 = vpack.c.bf16 %v68_v18, %v60_v56  ;;  %8097 = vst [vmem:[#allocation83_spill] sm:$0xff] %v6115_v41  ;;  %v84_v56 = vld [vmem:[%s7725_s1 + $0x1f0] sm:$0xff]  ;;  %v93_v18 = vld [vmem:[%s7725_s1 + $0x238] sm:$0xff] }
  0x4c   :  { %3355 = vmatpush1.bf16.msra.mxu1 %v6069_v62  ;;  %v6133_v39 = vpack.c.bf16 %v98_v37, %v90_v53  ;;  %v6145_v62 = vpack.c.bf16 %v115_v19, %v107_v11  ;;  %v123_v37 = vld [vmem:[%s7725_s1 + $0x328] sm:$0xff]  ;;  %v6151_v53 = vpack.c.bf16 %v101_v38, %v93_v18  ;;  %v117_v19 = vld [vmem:[%s7725_s1 + $0x2f8] sm:$0xff]  ;;  %v122_v38 = vld [vmem:[%s7725_s1 + $0x320] sm:$0xff] }
  0x4d   :  { %8095 = vst [vmem:[#allocation81_spill] sm:$0xff] %v6106_v43  ;;  %3357 = vmatprep.subr.bf16.mxu1 %v6078_v5  ;;  %v131_v11 = vld [vmem:[%s7725_s1 + $0x368] sm:$0xff] }
  0x4e   :  { %3295 = vmatpush1.bf16.msra.mxu0 %v6060_v0  ;;  %v76_v0 = vld [vmem:[%s7725_s1 + $0x1b0] sm:$0xff]  ;;  %8098 = vst [vmem:[#allocation84_spill] sm:$0xff] %v6133_v39  ;;  %8100 = vst [vmem:[#allocation86_spill] sm:$0xff] %v6145_v62 }
  0x4f   :  { %3297 = vmatprep.subr.bf16.mxu0 %v6072_v10  ;;  %v114_v10 = vld [vmem:[%s7725_s1 + $0x2e0] sm:$0xff]  ;;  %v6142_v5 = vpack.c.bf16 %v84_v56, %v76_v0  ;;  %8101 = vst [vmem:[#allocation87_spill] sm:$0xff] %v6151_v53  ;;  %v100_v0 = vld [vmem:[%s7725_s1 + $0x270] sm:$0xff]  ;;  %v109_v56 = vld [vmem:[%s7725_s1 + $0x2b8] sm:$0xff] }
  0x50   :  { %3359 = vmatpush1.bf16.msra.mxu1 %v6106_v43  ;;  %v6169_v18 = vpack.c.bf16 %v114_v10, %v106_v3  ;;  %v6181_v43 = vpack.c.bf16 %v131_v11, %v123_v37  ;;  %v139_v10 = vld [vmem:[%s7725_s1 + $0x3a8] sm:$0xff]  ;;  %v6187_v3 = vpack.c.bf16 %v117_v19, %v109_v56  ;;  %v133_v11 = vld [vmem:[%s7725_s1 + $0x378] sm:$0xff]  ;;  %v138_v19 = vld [vmem:[%s7725_s1 + $0x3a0] sm:$0xff] }
  0x51   :  { %8099 = vst [vmem:[#allocation85_spill] sm:$0xff] %v6142_v5  ;;  %3361 = vmatprep.subr.bf16.mxu1 %v6115_v41  ;;  %v147_v37 = vld [vmem:[%s7725_s1 + $0x3e8] sm:$0xff] }
  0x52   :  { %3299 = vmatpush1.bf16.msra.mxu0 %v6097_v23  ;;  %v92_v23 = vld [vmem:[%s7725_s1 + $0x230] sm:$0xff]  ;;  %8102 = vst [vmem:[#allocation88_spill] sm:$0xff] %v6169_v18  ;;  %8104 = vst [vmem:[#allocation90_spill] sm:$0xff] %v6181_v43 }
  0x53   :  { %3301 = vmatprep.subr.bf16.mxu0 %v6109_v32  ;;  %v130_v32 = vld [vmem:[%s7725_s1 + $0x360] sm:$0xff]  ;;  %v6178_v41 = vpack.c.bf16 %v100_v0, %v92_v23  ;;  %8105 = vst [vmem:[#allocation91_spill] sm:$0xff] %v6187_v3  ;;  %v116_v23 = vld [vmem:[%s7725_s1 + $0x2f0] sm:$0xff]  ;;  %v125_v0 = vld [vmem:[%s7725_s1 + $0x338] sm:$0xff] }
  0x54   :  { %3363 = vmatpush1.bf16.msra.mxu1 %v6142_v5  ;;  %v6205_v56 = vpack.c.bf16 %v130_v32, %v122_v38  ;;  %v6217_v5 = vpack.c.bf16 %v147_v37, %v139_v10  ;;  %v155_v32 = vld [vmem:[%s7725_s1 + $0x428] sm:$0xff]  ;;  %v6223_v38 = vpack.c.bf16 %v133_v11, %v125_v0  ;;  %v149_v37 = vld [vmem:[%s7725_s1 + $0x3f8] sm:$0xff]  ;;  %v154_v11 = vld [vmem:[%s7725_s1 + $0x420] sm:$0xff] }
  0x55   :  { %8103 = vst [vmem:[#allocation89_spill] sm:$0xff] %v6178_v41  ;;  %3365 = vmatprep.subr.bf16.mxu1 %v6151_v53  ;;  %v163_v10 = vld [vmem:[%s7725_s1 + $0x468] sm:$0xff] }
  0x56   :  { %3303 = vmatpush1.bf16.msra.mxu0 %v6133_v39  ;;  %v108_v39 = vld [vmem:[%s7725_s1 + $0x2b0] sm:$0xff]  ;;  %8106 = vst [vmem:[#allocation92_spill] sm:$0xff] %v6205_v56  ;;  %8108 = vst [vmem:[#allocation94_spill] sm:$0xff] %v6217_v5 }
  0x57   :  { %3305 = vmatprep.subr.bf16.mxu0 %v6145_v62  ;;  %v146_v62 = vld [vmem:[%s7725_s1 + $0x3e0] sm:$0xff]  ;;  %v6214_v53 = vpack.c.bf16 %v116_v23, %v108_v39  ;;  %8109 = vst [vmem:[#allocation95_spill] sm:$0xff] %v6223_v38  ;;  %v132_v39 = vld [vmem:[%s7725_s1 + $0x370] sm:$0xff]  ;;  %v141_v23 = vld [vmem:[%s7725_s1 + $0x3b8] sm:$0xff] }
  0x58   :  { %3367 = vmatpush1.bf16.msra.mxu1 %v6178_v41  ;;  %v6241_v0 = vpack.c.bf16 %v146_v62, %v138_v19  ;;  %v6253_v41 = vpack.c.bf16 %v163_v10, %v155_v32  ;;  %v171_v62 = vld [vmem:[%s7725_s1 + $0x4a8] sm:$0xff]  ;;  %v6259_v19 = vpack.c.bf16 %v149_v37, %v141_v23  ;;  %v165_v10 = vld [vmem:[%s7725_s1 + $0x478] sm:$0xff]  ;;  %v170_v37 = vld [vmem:[%s7725_s1 + $0x4a0] sm:$0xff] }
  0x59   :  { %8107 = vst [vmem:[#allocation93_spill] sm:$0xff] %v6214_v53  ;;  %3369 = vmatprep.subr.bf16.mxu1 %v6187_v3  ;;  %v179_v32 = vld [vmem:[%s7725_s1 + $0x4e8] sm:$0xff] }
  0x5a   :  { %3307 = vmatpush1.bf16.msra.mxu0 %v6169_v18  ;;  %v124_v18 = vld [vmem:[%s7725_s1 + $0x330] sm:$0xff]  ;;  %8110 = vst [vmem:[#allocation96_spill] sm:$0xff] %v6241_v0  ;;  %8112 = vst [vmem:[#allocation98_spill] sm:$0xff] %v6253_v41 }
  0x5b   :  { %3309 = vmatprep.subr.bf16.mxu0 %v6181_v43  ;;  %v162_v43 = vld [vmem:[%s7725_s1 + $0x460] sm:$0xff]  ;;  %v6250_v3 = vpack.c.bf16 %v132_v39, %v124_v18  ;;  %8113 = vst [vmem:[#allocation99_spill] sm:$0xff] %v6259_v19  ;;  %v148_v18 = vld [vmem:[%s7725_s1 + $0x3f0] sm:$0xff]  ;;  %v157_v39 = vld [vmem:[%s7725_s1 + $0x438] sm:$0xff] }
  0x5c   :  { %3371 = vmatpush1.bf16.msra.mxu1 %v6214_v53  ;;  %v6277_v23 = vpack.c.bf16 %v162_v43, %v154_v11  ;;  %v6289_v53 = vpack.c.bf16 %v179_v32, %v171_v62  ;;  %v187_v43 = vld [vmem:[%s7725_s1 + $0x528] sm:$0xff]  ;;  %v6295_v11 = vpack.c.bf16 %v165_v10, %v157_v39  ;;  %v181_v32 = vld [vmem:[%s7725_s1 + $0x4f8] sm:$0xff]  ;;  %v186_v10 = vld [vmem:[%s7725_s1 + $0x520] sm:$0xff] }
  0x5d   :  { %8111 = vst [vmem:[#allocation97_spill] sm:$0xff] %v6250_v3  ;;  %3373 = vmatprep.subr.bf16.mxu1 %v6223_v38  ;;  %v195_v62 = vld [vmem:[%s7725_s1 + $0x568] sm:$0xff] }
  0x5e   :  { %3311 = vmatpush1.bf16.msra.mxu0 %v6205_v56  ;;  %v140_v56 = vld [vmem:[%s7725_s1 + $0x3b0] sm:$0xff]  ;;  %8114 = vst [vmem:[#allocation100_spill] sm:$0xff] %v6277_v23  ;;  %8116 = vst [vmem:[#allocation102_spill] sm:$0xff] %v6289_v53 }
  0x5f   :  { %3313 = vmatprep.subr.bf16.mxu0 %v6217_v5  ;;  %v178_v5 = vld [vmem:[%s7725_s1 + $0x4e0] sm:$0xff]  ;;  %v6286_v38 = vpack.c.bf16 %v148_v18, %v140_v56  ;;  %8117 = vst [vmem:[#allocation103_spill] sm:$0xff] %v6295_v11  ;;  %v164_v56 = vld [vmem:[%s7725_s1 + $0x470] sm:$0xff]  ;;  %v173_v18 = vld [vmem:[%s7725_s1 + $0x4b8] sm:$0xff] }
  0x60   :  { %3375 = vmatpush1.bf16.msra.mxu1 %v6250_v3  ;;  %v6313_v39 = vpack.c.bf16 %v178_v5, %v170_v37  ;;  %v6325_v3 = vpack.c.bf16 %v195_v62, %v187_v43  ;;  %v203_v5 = vld [vmem:[%s7725_s1 + $0x5a8] sm:$0xff]  ;;  %v6331_v37 = vpack.c.bf16 %v181_v32, %v173_v18  ;;  %v197_v62 = vld [vmem:[%s7725_s1 + $0x578] sm:$0xff]  ;;  %v202_v32 = vld [vmem:[%s7725_s1 + $0x5a0] sm:$0xff] }
  0x61   :  { %8115 = vst [vmem:[#allocation101_spill] sm:$0xff] %v6286_v38  ;;  %3377 = vmatprep.subr.bf16.mxu1 %v6259_v19  ;;  %v211_v43 = vld [vmem:[%s7725_s1 + $0x5e8] sm:$0xff] }
  0x62   :  { %3315 = vmatpush1.bf16.msra.mxu0 %v6241_v0  ;;  %v156_v0 = vld [vmem:[%s7725_s1 + $0x430] sm:$0xff]  ;;  %8118 = vst [vmem:[#allocation104_spill] sm:$0xff] %v6313_v39  ;;  %8120 = vst [vmem:[#allocation106_spill] sm:$0xff] %v6325_v3 }
  0x63   :  { %3317 = vmatprep.subr.bf16.mxu0 %v6253_v41  ;;  %v194_v41 = vld [vmem:[%s7725_s1 + $0x560] sm:$0xff]  ;;  %v6322_v19 = vpack.c.bf16 %v164_v56, %v156_v0  ;;  %8121 = vst [vmem:[#allocation107_spill] sm:$0xff] %v6331_v37  ;;  %v180_v0 = vld [vmem:[%s7725_s1 + $0x4f0] sm:$0xff]  ;;  %v189_v56 = vld [vmem:[%s7725_s1 + $0x538] sm:$0xff] }
  0x64   :  { %3379 = vmatpush1.bf16.msra.mxu1 %v6286_v38  ;;  %v6349_v18 = vpack.c.bf16 %v194_v41, %v186_v10  ;;  %v6361_v38 = vpack.c.bf16 %v211_v43, %v203_v5  ;;  %v219_v41 = vld [vmem:[%s7725_s1 + $0x628] sm:$0xff]  ;;  %v6367_v10 = vpack.c.bf16 %v197_v62, %v189_v56  ;;  %v213_v43 = vld [vmem:[%s7725_s1 + $0x5f8] sm:$0xff]  ;;  %v218_v62 = vld [vmem:[%s7725_s1 + $0x620] sm:$0xff] }
  0x65   :  { %8119 = vst [vmem:[#allocation105_spill] sm:$0xff] %v6322_v19  ;;  %3381 = vmatprep.subr.bf16.mxu1 %v6295_v11  ;;  %v227_v5 = vld [vmem:[%s7725_s1 + $0x668] sm:$0xff] }
  0x66   :  { %3319 = vmatpush1.bf16.msra.mxu0 %v6277_v23  ;;  %v172_v23 = vld [vmem:[%s7725_s1 + $0x4b0] sm:$0xff]  ;;  %8122 = vst [vmem:[#allocation108_spill] sm:$0xff] %v6349_v18  ;;  %8124 = vst [vmem:[#allocation110_spill] sm:$0xff] %v6361_v38 }
  0x67   :  { %3321 = vmatprep.subr.bf16.mxu0 %v6289_v53  ;;  %v210_v53 = vld [vmem:[%s7725_s1 + $0x5e0] sm:$0xff]  ;;  %v6358_v11 = vpack.c.bf16 %v180_v0, %v172_v23  ;;  %8125 = vst [vmem:[#allocation111_spill] sm:$0xff] %v6367_v10  ;;  %v196_v23 = vld [vmem:[%s7725_s1 + $0x570] sm:$0xff]  ;;  %v205_v0 = vld [vmem:[%s7725_s1 + $0x5b8] sm:$0xff] }
  0x68   :  { %3383 = vmatpush1.bf16.msra.mxu1 %v6322_v19  ;;  %v6385_v56 = vpack.c.bf16 %v210_v53, %v202_v32  ;;  %v6397_v19 = vpack.c.bf16 %v227_v5, %v219_v41  ;;  %v235_v53 = vld [vmem:[%s7725_s1 + $0x6a8] sm:$0xff]  ;;  %v6403_v32 = vpack.c.bf16 %v213_v43, %v205_v0  ;;  %v229_v5 = vld [vmem:[%s7725_s1 + $0x678] sm:$0xff]  ;;  %v234_v43 = vld [vmem:[%s7725_s1 + $0x6a0] sm:$0xff] }
  0x69   :  { %8123 = vst [vmem:[#allocation109_spill] sm:$0xff] %v6358_v11  ;;  %3385 = vmatprep.subr.bf16.mxu1 %v6331_v37  ;;  %v243_v41 = vld [vmem:[%s7725_s1 + $0x6e8] sm:$0xff] }
  0x6a   :  { %3323 = vmatpush1.bf16.msra.mxu0 %v6313_v39  ;;  %v188_v39 = vld [vmem:[%s7725_s1 + $0x530] sm:$0xff]  ;;  %8126 = vst [vmem:[#allocation112_spill] sm:$0xff] %v6385_v56  ;;  %8128 = vst [vmem:[#allocation114_spill] sm:$0xff] %v6397_v19 }
  0x6b   :  { %3325 = vmatprep.subr.bf16.mxu0 %v6325_v3  ;;  %v226_v3 = vld [vmem:[%s7725_s1 + $0x660] sm:$0xff]  ;;  %v6394_v37 = vpack.c.bf16 %v196_v23, %v188_v39  ;;  %8129 = vst [vmem:[#allocation115_spill] sm:$0xff] %v6403_v32  ;;  %v212_v39 = vld [vmem:[%s7725_s1 + $0x5f0] sm:$0xff]  ;;  %v221_v23 = vld [vmem:[%s7725_s1 + $0x638] sm:$0xff] }
  0x6c   :  { %3387 = vmatpush1.bf16.msra.mxu1 %v6358_v11  ;;  %v6421_v0 = vpack.c.bf16 %v226_v3, %v218_v62  ;;  %v6433_v11 = vpack.c.bf16 %v243_v41, %v235_v53  ;;  %v251_v3 = vld [vmem:[%s7725_s1 + $0x728] sm:$0xff]  ;;  %v6439_v62 = vpack.c.bf16 %v229_v5, %v221_v23  ;;  %v245_v41 = vld [vmem:[%s7725_s1 + $0x6f8] sm:$0xff]  ;;  %v250_v5 = vld [vmem:[%s7725_s1 + $0x720] sm:$0xff] }
  0x6d   :  { %8127 = vst [vmem:[#allocation113_spill] sm:$0xff] %v6394_v37  ;;  %3389 = vmatprep.subr.bf16.mxu1 %v6367_v10  ;;  %v259_v53 = vld [vmem:[%s7725_s1 + $0x768] sm:$0xff] }
  0x6e   :  { %3327 = vmatpush1.bf16.msra.mxu0 %v6349_v18  ;;  %v204_v18 = vld [vmem:[%s7725_s1 + $0x5b0] sm:$0xff]  ;;  %8130 = vst [vmem:[#allocation116_spill] sm:$0xff] %v6421_v0  ;;  %8132 = vst [vmem:[#allocation118_spill] sm:$0xff] %v6433_v11 }
  0x6f   :  { %3329 = vmatprep.subr.bf16.mxu0 %v6361_v38  ;;  %v242_v38 = vld [vmem:[%s7725_s1 + $0x6e0] sm:$0xff]  ;;  %v6430_v10 = vpack.c.bf16 %v212_v39, %v204_v18  ;;  %8133 = vst [vmem:[#allocation119_spill] sm:$0xff] %v6439_v62  ;;  %v228_v18 = vld [vmem:[%s7725_s1 + $0x670] sm:$0xff]  ;;  %v237_v39 = vld [vmem:[%s7725_s1 + $0x6b8] sm:$0xff] }
  0x70   :  { %3391 = vmatpush1.bf16.msra.mxu1 %v6394_v37  ;;  %v6457_v23 = vpack.c.bf16 %v242_v38, %v234_v43  ;;  %v6469_v37 = vpack.c.bf16 %v259_v53, %v251_v3  ;;  %v267_v38 = vld [vmem:[%s7725_s1 + $0x7a8] sm:$0xff]  ;;  %v6475_v43 = vpack.c.bf16 %v245_v41, %v237_v39  ;;  %v261_v53 = vld [vmem:[%s7725_s1 + $0x778] sm:$0xff]  ;;  %v266_v41 = vld [vmem:[%s7725_s1 + $0x7a0] sm:$0xff] }
  0x71   :  { %8131 = vst [vmem:[#allocation117_spill] sm:$0xff] %v6430_v10  ;;  %3393 = vmatprep.subr.bf16.mxu1 %v6403_v32  ;;  %v275_v3 = vld [vmem:[%s7725_s1 + $0x7e8] sm:$0xff] }
  0x72   :  { %3331 = vmatpush1.bf16.msra.mxu0 %v6385_v56  ;;  %v220_v56 = vld [vmem:[%s7725_s1 + $0x630] sm:$0xff]  ;;  %8134 = vst [vmem:[#allocation120_spill] sm:$0xff] %v6457_v23  ;;  %8136 = vst [vmem:[#allocation122_spill] sm:$0xff] %v6469_v37 }
  0x73   :  { %3333 = vmatprep.subr.bf16.mxu0 %v6397_v19  ;;  %v258_v19 = vld [vmem:[%s7725_s1 + $0x760] sm:$0xff]  ;;  %v6466_v32 = vpack.c.bf16 %v228_v18, %v220_v56  ;;  %8137 = vst [vmem:[#allocation123_spill] sm:$0xff] %v6475_v43  ;;  %v244_v56 = vld [vmem:[%s7725_s1 + $0x6f0] sm:$0xff]  ;;  %v253_v18 = vld [vmem:[%s7725_s1 + $0x738] sm:$0xff] }
  0x74   :  { %3395 = vmatpush1.bf16.msra.mxu1 %v6430_v10  ;;  %v6493_v39 = vpack.c.bf16 %v258_v19, %v250_v5  ;;  %v6508_v19 = vpack.c.bf16 %v261_v53, %v253_v18  ;;  %v252_v5 = vld [vmem:[%s7725_s1 + $0x730] sm:$0xff] }
  0x75   :  { %8135 = vst [vmem:[#allocation121_spill] sm:$0xff] %v6466_v32  ;;  %3397 = vmatprep.subr.bf16.mxu1 %v6439_v62  ;;  %v6502_v62 = vpack.c.bf16 %v275_v3, %v267_v38  ;;  %v269_v38 = vld [vmem:[%s7725_s1 + $0x7b8] sm:$0xff] }
  0x76   :  { %3335 = vmatpush1.bf16.msra.mxu0 %v6421_v0  ;;  %v236_v0 = vld [vmem:[%s7725_s1 + $0x6b0] sm:$0xff]  ;;  %8138 = vst [vmem:[#allocation124_spill] sm:$0xff] %v6493_v39  ;;  %8141 = vst [vmem:[#allocation127_spill] sm:$0xff] %v6508_v19 }
  0x77   :  { %3337 = vmatprep.subr.bf16.mxu0 %v6433_v11  ;;  %v6499_v11 = vpack.c.bf16 %v244_v56, %v236_v0  ;;  %8140 = vst [vmem:[#allocation126_spill] sm:$0xff] %v6502_v62  ;;  %v260_v0 = vld [vmem:[%s7725_s1 + $0x770] sm:$0xff]  ;;  %v277_v56 = vld [vmem:[%s7725_s1 + $0x7f8] sm:$0xff] }
  0x78   :  { %3399 = vmatpush1.bf16.msra.mxu1 %v6466_v32  ;;  %v6526_v18 = vpack.c.bf16 %v260_v0, %v252_v5  ;;  %v6530_v53 = vpack.c.bf16 %v277_v56, %v269_v38  ;;  %v8150_v5 = vld [vmem:[#allocation55_spill] sm:$0xff]  ;;  %v8151_v0 = vld [vmem:[#allocation54_spill] sm:$0xff]  ;;  %v8152_v38 = vld [vmem:[#allocation57_spill] sm:$0xff] }
  0x79   :  { %8139 = vst [vmem:[#allocation125_spill] sm:$0xff] %v6499_v11  ;;  %3401 = vmatprep.subr.bf16.mxu1 %v6475_v43  ;;  %v8153_v56 = vld [vmem:[#allocation56_spill] sm:$0xff] }
  0x7a   :  { %3339 = vmatpush1.bf16.msra.mxu0 %v6457_v23  ;;  %v274_v23 = vld [vmem:[%s7725_s1 + $0x7e0] sm:$0xff]  ;;  %8143 = vst [vmem:[#allocation129_spill] sm:$0xff] %v6526_v18  ;;  %8144 = vst [vmem:[#allocation130_spill] sm:$0xff] %v6530_v53 }
  0x7b   :  { %3341 = vmatprep.subr.bf16.mxu0 %v6469_v37  ;;  %v6523_v3 = vpack.c.bf16 %v274_v23, %v266_v41  ;;  %v268_v37 = vld [vmem:[%s7725_s1 + $0x7b0] sm:$0xff]  ;;  %v8149_v41 = vld [vmem:[#allocation52_spill] sm:$0xff] }
  0x7c   :  { %3403 = vmatpush1.bf16.msra.mxu1 %v6499_v11 }
  0x7d   :  { %8142 = vst [vmem:[#allocation128_spill] sm:$0xff] %v6523_v3  ;;  %3405 = vmatprep.subr.bf16.mxu1 %v6508_v19 }
  0x7e   :  { %3343 = vmatpush1.bf16.msra.mxu0 %v6493_v39  ;;  %v276_v39 = vld [vmem:[%s7725_s1 + $0x7f0] sm:$0xff] }
  0x7f   :  { %3345 = vmatprep.subr.bf16.mxu0 %v6502_v62  ;;  %v6540_v23 = vpack.c.bf16 %v276_v39, %v268_v37  ;;  %v8147_v37 = vld [vmem:[#allocation50_spill] sm:$0xff]  ;;  %v8148_v39 = vld [vmem:[#allocation53_spill] sm:$0xff] }
  0x80   :  { %3407 = vmatpush1.bf16.msra.mxu1 %v6526_v18 }
  0x81   :  { %8145 = vst [vmem:[#allocation131_spill] sm:$0xff] %v6540_v23  ;;  %3409 = vmatprep.subr.bf16.mxu1 %v6530_v53 }
  0x82   :  { %3347 = vmatpush1.bf16.msra.mxu0 %v6523_v3 }
  0x83   :  { %3413 = vmatprep.subr.bf16.mxu0 %v5397_v4 }
  0x84   :  { %3411 = vmatpush1.bf16.msra.mxu1 %v6540_v23 }
  0x85   :  { %551 = vmatmul.mubr.f32.vlgmr.msra.gmra.mrb[2].mxu0 %v8085_v50  ;;  %3477 = vmatprep.subr.bf16.mxu1 %v5434_v17 }
  0x86   :  { %3415 = vmatpush1.bf16.msra.mxu0 %v5408_v8 }
  0x87   :  { %3417 = vmatprep.subr.bf16.mxu0 %v5410_v9  ;;  %622 = vmatmul.mubr.f32.vlgmr.msra.gmra.mrb[2].mxu1 %v8085_v50  ;;  %v8146_v50 = vld [vmem:[#allocation51_spill] sm:$0xff] }
  0x88   :  { %3479 = vmatpush1.bf16.msra.mxu1 %v5455_v24 }
  0x89   :  { %3481 = vmatprep.subr.bf16.mxu1 %v5466_v28 }
  0x8a   :  { %3419 = vmatpush1.bf16.msra.mxu0 %v5432_v16 }
  0x8b   :  { %3421 = vmatprep.subr.bf16.mxu0 %v5443_v20 }
  0x8c   :  { %3483 = vmatpush1.bf16.msra.mxu1 %v5481_v33 }
  0x8d   :  { %3485 = vmatprep.subr.bf16.mxu1 %v5502_v40 }
  0x8e   :  { %3423 = vmatpush1.bf16.msra.mxu0 %v5475_v31 }
  0x8f   :  { %3425 = vmatprep.subr.bf16.mxu0 %v5487_v35 }
  0x90   :  { %3487 = vmatpush1.bf16.msra.mxu1 %v5526_v48 }
  0x91   :  { %3489 = vmatprep.subr.bf16.mxu1 %v5535_v51 }
  0x92   :  { %3427 = vmatpush1.bf16.msra.mxu0 %v5517_v45 }
  0x93   :  { %3429 = vmatprep.subr.bf16.mxu0 %v5529_v49 }
  0x94   :  { %3491 = vmatpush1.bf16.msra.mxu1 %v5562_v60 }
  0x95   :  { %3493 = vmatprep.subr.bf16.mxu1 %v5571_v63 }
  0x96   :  { %3431 = vmatpush1.bf16.msra.mxu0 %v5553_v57 }
  0x97   :  { %3433 = vmatprep.subr.bf16.mxu0 %v5565_v61 }
  0x98   :  { %3495 = vmatpush1.bf16.msra.mxu1 %v5598_v12 }
  0x99   :  { %3497 = vmatprep.subr.bf16.mxu1 %v5607_v15 }
  0x9a   :  { %3435 = vmatpush1.bf16.msra.mxu0 %v5589_v7 }
  0x9b   :  { %3437 = vmatprep.subr.bf16.mxu0 %v5601_v13 }
  0x9c   :  { %3499 = vmatpush1.bf16.msra.mxu1 %v5634_v29 }
  0x9d   :  { %3501 = vmatprep.subr.bf16.mxu1 %v5643_v34 }
  0x9e   :  { %3439 = vmatpush1.bf16.msra.mxu0 %v5625_v25 }
  0x9f   :  { %3441 = vmatprep.subr.bf16.mxu0 %v5637_v30 }
  0xa0   :  { %3503 = vmatpush1.bf16.msra.mxu1 %v5670_v46 }
  0xa1   :  { %3505 = vmatprep.subr.bf16.mxu1 %v5679_v52 }
  0xa2   :  { %3443 = vmatpush1.bf16.msra.mxu0 %v5661_v42 }
  0xa3   :  { %3445 = vmatprep.subr.bf16.mxu0 %v5673_v47 }
  0xa4   :  { %3507 = vmatpush1.bf16.msra.mxu1 %v5706_v1 }
  0xa5   :  { %3509 = vmatprep.subr.bf16.mxu1 %v5715_v6 }
  0xa6   :  { %3447 = vmatpush1.bf16.msra.mxu0 %v5697_v59 }
  0xa7   :  { %3449 = vmatprep.subr.bf16.mxu0 %v5709_v2 }
  0xa8   :  { %3511 = vmatpush1.bf16.msra.mxu1 %v5742_v26 }
  0xa9   :  { %3513 = vmatprep.subr.bf16.mxu1 %v5751_v36 }
  0xaa   :  { %3451 = vmatpush1.bf16.msra.mxu0 %v5733_v21 }
  0xab   :  { %3453 = vmatprep.subr.bf16.mxu0 %v5745_v27 }
  0xac   :  { %3515 = vmatpush1.bf16.msra.mxu1 %v5778_v54 }
  0xad   :  { %3517 = vmatprep.subr.bf16.mxu1 %v5787_v58  ;;  %v296_v58 = vlaneseq }
  0xae   :  { %3455 = vmatpush1.bf16.msra.mxu0 %v5769_v44 }
  0xaf   :  { %3457 = vmatprep.subr.bf16.mxu0 %v5781_v55  ;;  %v8154_v55 = vld [vmem:[#allocation59_spill] sm:$0xff] }
  0xb0   :  { %3519 = vmatpush1.bf16.msra.mxu1 %v5814_v22  ;;  %v8155_v22 = vld [vmem:[#allocation58_spill] sm:$0xff] }
  0xb1   :  { %3521 = vmatprep.subr.bf16.mxu1 %v8146_v50  ;;  %v8157_v50 = vld [vmem:[#allocation60_spill] sm:$0xff] }
  0xb2   :  { %3459 = vmatpush1.bf16.msra.mxu0 %v5805_v14  ;;  %v8156_v14 = vld [vmem:[#allocation61_spill] sm:$0xff] }
  0xb3   :  { %3461 = vmatprep.subr.bf16.mxu0 %v8147_v37  ;;  %v8158_v37 = vld [vmem:[#allocation63_spill] sm:$0xff] }
  0xb4   :  { %3523 = vmatpush1.bf16.msra.mxu1 %v8148_v39  ;;  %v8159_v39 = vld [vmem:[#allocation62_spill] sm:$0xff] }
  0xb5   :  { %3525 = vmatprep.subr.bf16.mxu1 %v8150_v5  ;;  %v8161_v5 = vld [vmem:[#allocation64_spill] sm:$0xff] }
  0xb6   :  { %3463 = vmatpush1.bf16.msra.mxu0 %v8149_v41  ;;  %v8160_v41 = vld [vmem:[#allocation65_spill] sm:$0xff] }
  0xb7   :  { %3465 = vmatprep.subr.bf16.mxu0 %v8151_v0  ;;  %v8162_v0 = vld [vmem:[#allocation67_spill] sm:$0xff] }
  0xb8   :  { %3527 = vmatpush1.bf16.msra.mxu1 %v8152_v38  ;;  %v8163_v38 = vld [vmem:[#allocation66_spill] sm:$0xff] }
  0xb9   :  { %3529 = vmatprep.subr.bf16.mxu1 %v8154_v55  ;;  %v8165_v55 = vld [vmem:[#allocation71_spill] sm:$0xff] }
  0xba   :  { %3467 = vmatpush1.bf16.msra.mxu0 %v8153_v56  ;;  %v8164_v56 = vld [vmem:[#allocation69_spill] sm:$0xff] }
  0xbb   :  { %3469 = vmatprep.subr.bf16.mxu0 %v8155_v22 }
  0xbc   :  { %3531 = vmatpush1.bf16.msra.mxu1 %v8156_v14 }
  0xbd   :  { %3533 = vmatprep.subr.bf16.mxu1 %v8158_v37  ;;  %v297_v37 = vshrl.u32 %v296_v58, 7 }
  0xbe   :  { %3471 = vmatpush1.bf16.msra.mxu0 %v8157_v50 }
  0xbf   :  { %3473 = vmatprep.subr.bf16.mxu0 %v8159_v39  ;;  %v306_v27 = vsub.s32 2, %v297_v37  ;;  %v284_v39 = vld [vmem:[%s7726_s0 + $0x8] sm:$0xff]  ;;  %v314_v46 = vsub.s32 4, %v297_v37 }
  0xc0   :  { %3535 = vmatpush1.bf16.msra.mxu1 %v8160_v41  ;;  %v298_v41 = vsub.s32 0, %v297_v37  ;;  %v290_v58 = vunpack.c.h.bf16 %v284_v39 }
  0xc1   :  { %3537 = vmatprep.subr.bf16.mxu1 %v8162_v0  ;;  %v289_v0 = vunpack.c.l.bf16 %v284_v39 }
  0xc2   :  { %3475 = vmatpush1.bf16.msra.mxu0 %v8161_v5  ;;  %v310_v5 = vsub.s32 3, %v297_v37 }
  0xc3   :  { %3541 = vmatprep.subr.bf16.mxu0 %v8163_v38  ;;  %v278_v38 = vld [vmem:[%s7727_s2] sm:$0xff] }
  0xc4   :  { %3539 = vmatpush1.bf16.msra.mxu1 %v8164_v56  ;;  %v302_v56 = vsub.s32 1, %v297_v37  ;;  %v6621_v54 = vrot.slane %v278_v38, %v306_v27  ;;  %v6623_v21 = vrot.slane %v278_v38, %v310_v5  ;;  %v6625_v2 = vrot.slane %v278_v38, %v298_v41 }
  0xc5   :  { %3605 = vmatprep.subr.bf16.mxu1 %v8165_v55  ;;  %v283_v55 = vld [vmem:[%s7726_s0] sm:$0xff]  ;;  %v318_v41 = vsub.s32 5, %v297_v37 }
  0xc6   :  { %8166 = vst [vmem:[#allocation132_spill] sm:$0xff] %v6623_v21  ;;  %v287_v36 = vunpack.c.l.bf16 %v283_v55  ;;  %8167 = vst [vmem:[#allocation133_spill] sm:$0xff] %v6625_v2  ;;  %v288_v26 = vunpack.c.h.bf16 %v283_v55  ;;  %v6627_v59 = vrot.slane %v278_v38, %v302_v56  ;;  %v338_v6 = vadd.f32 %v6621_v54, %v289_v0  ;;  %v285_v55 = vld [vmem:[%s7726_s0 + $0x10] sm:$0xff] }
  0xc7   :  { %v339_v47 = vadd.f32 %v6623_v21, %v290_v58  ;;  %v291_v58 = vunpack.c.l.bf16 %v285_v55  ;;  %v6636_v21 = vrot.slane %v278_v38, %v314_v46 }
  0xc8   :  { %8168 = vst [vmem:[#allocation134_spill] sm:$0xff] %v6627_v59  ;;  %v336_v1 = vadd.f32 %v6625_v2, %v287_v36  ;;  %v337_v42 = vadd.f32 %v6627_v59, %v288_v26  ;;  %v322_v36 = vsub.s32 6, %v297_v37 }
  0xc9   :  { %8169 = vst [vmem:[#allocation135_spill] sm:$0xff] %v6636_v21 }
  0xca   :  { %v6644_v26 = vrot.slane %v278_v38, %v322_v36 }
  0xcc   :  { %8171 = vst [vmem:[#allocation137_spill] sm:$0xff] %v6644_v26 }
 0x118   :  { %v410_v22 = vpop.f32.mrb[0].mxu0 }
 0x119   :  { %v412_v14 = vpop.f32.mrb[1].mxu0  ;;  %v628_v30 = vadd.f32 %v410_v22, %v336_v1  ;;  %v340_v1 = vadd.f32 %v6636_v21, %v291_v58 }
 0x11a   :  { %v481_v44 = vpop.f32.mrb[0].mxu1  ;;  %v629_v39 = vadd.f32 %v412_v14, %v337_v42  ;;  %v286_v42 = vld [vmem:[%s7726_s0 + $0x18] sm:$0xff] }
 0x11b   :  { %v483_v50 = vpop.f32.mrb[1].mxu1  ;;  %v630_v52 = vadd.f32 %v481_v44, %v338_v6  ;;  %v636_v56 = vmul.f32 0.5, %v628_v30  ;;  %v292_v6 = vunpack.c.h.bf16 %v285_v55  ;;  %v293_v30 = vunpack.c.l.bf16 %v286_v42 }
 0x11c   :  { %v631_v27 = vadd.f32 %v483_v50, %v339_v47  ;;  %v637_v0 = vmul.f32 0.5, %v629_v39  ;;  %v6638_v47 = vrot.slane %v278_v38, %v318_v41  ;;  %v294_v44 = vunpack.c.h.bf16 %v286_v42 }
 0x11d   :  { %v638_v5 = vmul.f32 0.5, %v630_v52  ;;  %v326_v52 = vsub.s32 7, %v297_v37 }
 0x11e   :  { %v639_v25 = vmul.f32 0.5, %v631_v27  ;;  %8170 = vst [vmem:[#allocation136_spill] sm:$0xff] %v6638_v47  ;;  %v341_v46 = vadd.f32 %v6638_v47, %v292_v6  ;;  %v342_v27 = vadd.f32 %v6644_v26, %v293_v30 }
 0x11f   :  { %5205 = vtanh.f32 %v638_v5  ;;  %v6647_v14 = vrot.slane %v278_v38, %v326_v52 }
 0x120   :  { %5207 = vtanh.f32 %v639_v25 }
 0x121   :  { %5209 = vtanh.f32 %v636_v56  ;;  %8172 = vst [vmem:[#allocation138_spill] sm:$0xff] %v6647_v14  ;;  %v343_v37 = vadd.f32 %v6647_v14, %v294_v44 }
 0x122   :  { %5211 = vtanh.f32 %v637_v0 }
 0x129   :  { %v5206_v5 = vpop.eup %5205 }
 0x12a   :  { %v5208_v55 = vpop.eup %5207  ;;  %v646_v6 = vmul.f32 0.5, %v5206_v5 }
 0x12b   :  { %v5210_v56 = vpop.eup %5209  ;;  %v647_v42 = vmul.f32 0.5, %v5208_v55 }
 0x12c   :  { %v5212_v36 = vpop.eup %5211  ;;  %v650_v30 = vadd.f32 0.5, %v646_v6 }
 0x12d   :  { %v645_v47 = vmul.f32 0.5, %v5212_v36 }
 0x12e   :  { %v662_v26 = vmul.f32 0.0, %v650_v30  ;;  %v8178_v30 = vld [vmem:[#allocation77_spill] sm:$0xff] }
 0x158   :  { %v552_v25 = vpop.f32.mrb[2].mxu0 }
 0x159   :  { %v632_v22 = vadd.f32 %v552_v25, %v340_v1  ;;  %v554_v50 = vpop.f32.mrb[3].mxu0  ;;  %v644_v1 = vmul.f32 0.5, %v5210_v56 }
 0x15a   :  { %v633_v39 = vadd.f32 %v554_v50, %v341_v46  ;;  %v623_v41 = vpop.f32.mrb[2].mxu1  ;;  %v651_v46 = vadd.f32 0.5, %v647_v42  ;;  %v649_v50 = vadd.f32 0.5, %v645_v47 }
 0x15b   :  { %5213 = vtanh.f32 %v632_v22  ;;  %v634_v0 = vadd.f32 %v623_v41, %v342_v27  ;;  %v625_v58 = vpop.f32.mrb[3].mxu1  ;;  %v648_v44 = vadd.f32 0.5, %v644_v1  ;;  %v8176_v1 = vld [vmem:[#allocation75_spill] sm:$0xff] }
 0x15c   :  { %5215 = vtanh.f32 %v633_v39  ;;  %v635_v38 = vadd.f32 %v625_v58, %v343_v37  ;;  %v663_v27 = vmul.f32 0.0, %v651_v46  ;;  %v8179_v46 = vld [vmem:[#allocation74_spill] sm:$0xff] }
 0x15d   :  { %v654_v52 = vmul.f32 0.5, %v634_v0 }
 0x15e   :  { %v655_v25 = vmul.f32 0.5, %v635_v38 }
 0x15f   :  { %5217 = vtanh.f32 %v654_v52  ;;  %v8175_v52 = vld [vmem:[#allocation70_spill] sm:$0xff] }
 0x160   :  { %5219 = vtanh.f32 %v655_v25  ;;  %v8177_v25 = vld [vmem:[#allocation72_spill] sm:$0xff] }
 0x165   :  { %v5214_v22 = vpop.eup %5213 }
 0x166   :  { %v5216_v39 = vpop.eup %5215  ;;  %v664_v14 = vmul.f32 %v5214_v22, %v648_v44  ;;  %v8180_v44 = vld [vmem:[#allocation79_spill] sm:$0xff]  ;;  %v8181_v22 = vld [vmem:[#allocation76_spill] sm:$0xff] }
 0x167   :  { %v665_v41 = vmul.f32 %v5216_v39, %v649_v50  ;;  %v8182_v50 = vld [vmem:[#allocation81_spill] sm:$0xff]  ;;  %v8183_v39 = vld [vmem:[#allocation78_spill] sm:$0xff] }
 0x168   :  { %v6651_v21 = vadd.f32 %v664_v14, %v662_v26  ;;  %v8173_v26 = vld [vmem:[#allocation68_spill] sm:$0xff]  ;;  %v8174_v14 = vld [vmem:[#allocation73_spill] sm:$0xff] }
 0x169   :  { %v6653_v37 = vadd.f32 %v665_v41, %v663_v27  ;;  %v5218_v5 = vpop.eup %5217  ;;  %v8184_v27 = vld [vmem:[#allocation83_spill] sm:$0xff]  ;;  %v8185_v41 = vld [vmem:[#allocation80_spill] sm:$0xff] }
 0x16a   :  { %5221 = vtanh.f32 %v6651_v21  ;;  %v5220_v55 = vpop.eup %5219  ;;  %v658_v0 = vmul.f32 0.5, %v5218_v5  ;;  %v8186_v5 = vld [vmem:[#allocation85_spill] sm:$0xff] }
 0x16b   :  { %5223 = vtanh.f32 %v6653_v37  ;;  %v659_v56 = vmul.f32 0.5, %v5220_v55  ;;  %v8187_v55 = vld [vmem:[#allocation82_spill] sm:$0xff] }
 0x16c   :  { %v660_v36 = vadd.f32 0.5, %v658_v0  ;;  %v8189_v0 = vld [vmem:[#allocation84_spill] sm:$0xff] }
 0x16d   :  { %v661_v58 = vadd.f32 0.5, %v659_v56  ;;  %v8188_v56 = vld [vmem:[#allocation87_spill] sm:$0xff] }
 0x174   :  { %v5222_v47 = vpop.eup %5221 }
 0x175   :  { %v5224_v6 = vpop.eup %5223  ;;  %v6657_v42 = vmul.f32 %v5222_v47, %v660_v36  ;;  %v8191_v36 = vld [vmem:[#allocation86_spill] sm:$0xff]  ;;  %v8192_v47 = vld [vmem:[#allocation91_spill] sm:$0xff] }
 0x176   :  { %v671_v38 = vmul.f32 %v5224_v6, %v661_v58  ;;  %v8190_v58 = vld [vmem:[#allocation89_spill] sm:$0xff]  ;;  %v8193_v6 = vld [vmem:[#allocation88_spill] sm:$0xff] }
 0x178   :  { %757 = vmatprep.mubr.f32.mxu0 %v671_v38  ;;  %828 = vmatprep.mubr.f32.mxu1 %v671_v38 }
 0x179   :  { %758 = vmatmul.mubr.f32.vlgmr.msra.gmra.mrb[4].mxu0 %v6657_v42  ;;  %829 = vmatmul.mubr.f32.vlgmr.msra.gmra.mrb[4].mxu1 %v6657_v42 }
 0x17a   :  { %3543 = vmatpush1.bf16.msra.mxu0 %v8173_v26  ;;  %3607 = vmatpush1.bf16.msra.mxu1 %v8174_v14 }
 0x17b   :  { %899 = vmatprep.mubr.f32.mxu0 %v671_v38  ;;  %970 = vmatprep.mubr.f32.mxu1 %v671_v38  ;;  %v8194_v38 = vld [vmem:[#allocation93_spill] sm:$0xff] }
 0x17c   :  { %3545 = vmatprep.subr.bf16.mxu0 %v8175_v52  ;;  %3609 = vmatprep.subr.bf16.mxu1 %v8176_v1 }
 0x17e   :  { %3547 = vmatpush1.bf16.msra.mxu0 %v8177_v25  ;;  %3611 = vmatpush1.bf16.msra.mxu1 %v8178_v30 }
 0x17f   :  { %3549 = vmatprep.subr.bf16.mxu0 %v8179_v46  ;;  %3613 = vmatprep.subr.bf16.mxu1 %v8180_v44 }
 0x182   :  { %3551 = vmatpush1.bf16.msra.mxu0 %v8181_v22  ;;  %3615 = vmatpush1.bf16.msra.mxu1 %v8182_v50 }
 0x183   :  { %3553 = vmatprep.subr.bf16.mxu0 %v8183_v39  ;;  %3617 = vmatprep.subr.bf16.mxu1 %v8184_v27  ;;  %v8195_v27 = vld [vmem:[#allocation90_spill] sm:$0xff] }
 0x186   :  { %3555 = vmatpush1.bf16.msra.mxu0 %v8185_v41  ;;  %3619 = vmatpush1.bf16.msra.mxu1 %v8186_v5  ;;  %v8196_v41 = vld [vmem:[#allocation95_spill] sm:$0xff]  ;;  %v8197_v5 = vld [vmem:[#allocation92_spill] sm:$0xff] }
 0x187   :  { %3557 = vmatprep.subr.bf16.mxu0 %v8187_v55  ;;  %3621 = vmatprep.subr.bf16.mxu1 %v8188_v56  ;;  %v8198_v55 = vld [vmem:[#allocation97_spill] sm:$0xff]  ;;  %v8199_v56 = vld [vmem:[#allocation94_spill] sm:$0xff] }
 0x18a   :  { %3559 = vmatpush1.bf16.msra.mxu0 %v8189_v0  ;;  %3623 = vmatpush1.bf16.msra.mxu1 %v8190_v58  ;;  %v8200_v0 = vld [vmem:[#allocation99_spill] sm:$0xff]  ;;  %v8201_v58 = vld [vmem:[#allocation96_spill] sm:$0xff] }
 0x18b   :  { %3561 = vmatprep.subr.bf16.mxu0 %v8191_v36  ;;  %3625 = vmatprep.subr.bf16.mxu1 %v8192_v47  ;;  %v8202_v36 = vld [vmem:[#allocation101_spill] sm:$0xff]  ;;  %v8203_v47 = vld [vmem:[#allocation98_spill] sm:$0xff] }
 0x18e   :  { %3563 = vmatpush1.bf16.msra.mxu0 %v8193_v6  ;;  %3627 = vmatpush1.bf16.msra.mxu1 %v8194_v38  ;;  %v8204_v6 = vld [vmem:[#allocation103_spill] sm:$0xff]  ;;  %v8205_v38 = vld [vmem:[#allocation100_spill] sm:$0xff] }
 0x18f   :  { %3565 = vmatprep.subr.bf16.mxu0 %v8195_v27  ;;  %3629 = vmatprep.subr.bf16.mxu1 %v8196_v41  ;;  %v8206_v27 = vld [vmem:[#allocation105_spill] sm:$0xff]  ;;  %v8207_v41 = vld [vmem:[#allocation102_spill] sm:$0xff] }
 0x192   :  { %3567 = vmatpush1.bf16.msra.mxu0 %v8197_v5  ;;  %3631 = vmatpush1.bf16.msra.mxu1 %v8198_v55  ;;  %v8208_v5 = vld [vmem:[#allocation107_spill] sm:$0xff]  ;;  %v8209_v55 = vld [vmem:[#allocation104_spill] sm:$0xff] }
 0x193   :  { %3569 = vmatprep.subr.bf16.mxu0 %v8199_v56  ;;  %3633 = vmatprep.subr.bf16.mxu1 %v8200_v0  ;;  %v8210_v56 = vld [vmem:[#allocation109_spill] sm:$0xff]  ;;  %v8211_v0 = vld [vmem:[#allocation106_spill] sm:$0xff] }
 0x196   :  { %3571 = vmatpush1.bf16.msra.mxu0 %v8201_v58  ;;  %3635 = vmatpush1.bf16.msra.mxu1 %v8202_v36  ;;  %v8212_v58 = vld [vmem:[#allocation111_spill] sm:$0xff]  ;;  %v8213_v36 = vld [vmem:[#allocation108_spill] sm:$0xff] }
 0x197   :  { %3573 = vmatprep.subr.bf16.mxu0 %v8203_v47  ;;  %3637 = vmatprep.subr.bf16.mxu1 %v8204_v6  ;;  %v8214_v47 = vld [vmem:[#allocation113_spill] sm:$0xff]  ;;  %v8215_v6 = vld [vmem:[#allocation110_spill] sm:$0xff] }
 0x19a   :  { %3575 = vmatpush1.bf16.msra.mxu0 %v8205_v38  ;;  %3639 = vmatpush1.bf16.msra.mxu1 %v8206_v27  ;;  %v8216_v38 = vld [vmem:[#allocation115_spill] sm:$0xff]  ;;  %v8217_v27 = vld [vmem:[#allocation112_spill] sm:$0xff] }
 0x19b   :  { %3577 = vmatprep.subr.bf16.mxu0 %v8207_v41  ;;  %3641 = vmatprep.subr.bf16.mxu1 %v8208_v5  ;;  %v8218_v5 = vld [vmem:[#allocation114_spill] sm:$0xff] }
 0x19e   :  { %3579 = vmatpush1.bf16.msra.mxu0 %v8209_v55  ;;  %3643 = vmatpush1.bf16.msra.mxu1 %v8210_v56  ;;  %v8219_v55 = vld [vmem:[#allocation119_spill] sm:$0xff]  ;;  %v8220_v56 = vld [vmem:[#allocation116_spill] sm:$0xff] }
 0x19f   :  { %3581 = vmatprep.subr.bf16.mxu0 %v8211_v0  ;;  %3645 = vmatprep.subr.bf16.mxu1 %v8212_v58  ;;  %v8221_v58 = vld [vmem:[#allocation118_spill] sm:$0xff] }
 0x1a2   :  { %3583 = vmatpush1.bf16.msra.mxu0 %v8213_v36  ;;  %3647 = vmatpush1.bf16.msra.mxu1 %v8214_v47  ;;  %v8222_v47 = vld [vmem:[#allocation120_spill] sm:$0xff] }
 0x1a3   :  { %3585 = vmatprep.subr.bf16.mxu0 %v8215_v6  ;;  %3649 = vmatprep.subr.bf16.mxu1 %v8216_v38  ;;  %v8223_v38 = vld [vmem:[#allocation122_spill] sm:$0xff] }
 0x1a6   :  { %3587 = vmatpush1.bf16.msra.mxu0 %v8217_v27  ;;  %3651 = vmatpush1.bf16.msra.mxu1 %v6430_v10  ;;  %v8224_v10 = vld [vmem:[#allocation124_spill] sm:$0xff] }
 0x1a7   :  { %3589 = vmatprep.subr.bf16.mxu0 %v8218_v5  ;;  %3653 = vmatprep.subr.bf16.mxu1 %v8219_v55 }
 0x1aa   :  { %3591 = vmatpush1.bf16.msra.mxu0 %v8220_v56  ;;  %3655 = vmatpush1.bf16.msra.mxu1 %v6466_v32 }
 0x1ab   :  { %3593 = vmatprep.subr.bf16.mxu0 %v8221_v58  ;;  %3657 = vmatprep.subr.bf16.mxu1 %v6475_v43 }
 0x1ae   :  { %3595 = vmatpush1.bf16.msra.mxu0 %v8222_v47  ;;  %3659 = vmatpush1.bf16.msra.mxu1 %v6499_v11 }
 0x1af   :  { %3597 = vmatprep.subr.bf16.mxu0 %v8223_v38  ;;  %3661 = vmatprep.subr.bf16.mxu1 %v6508_v19 }
 0x1b2   :  { %3599 = vmatpush1.bf16.msra.mxu0 %v8224_v10  ;;  %3663 = vmatpush1.bf16.msra.mxu1 %v6526_v18 }
 0x1b3   :  { %3601 = vmatprep.subr.bf16.mxu0 %v6502_v62  ;;  %3665 = vmatprep.subr.bf16.mxu1 %v6530_v53 }
 0x1b6   :  { %3603 = vmatpush1.bf16.msra.mxu0 %v6523_v3  ;;  %3667 = vmatpush1.bf16.msra.mxu1 %v6540_v23 }
 0x1b7   :  { %3669 = vmatprep.subr.bf16.mxu0 %v5397_v4  ;;  %3733 = vmatprep.subr.bf16.mxu1 %v5434_v17 }
 0x1b9   :  { %900 = vmatmul.mubr.f32.vlgmr.msra.gmra.mrb[6].mxu0 %v6657_v42  ;;  %971 = vmatmul.mubr.f32.vlgmr.msra.gmra.mrb[6].mxu1 %v6657_v42  ;;  %v8225_v42 = vld [vmem:[#allocation28_spill] sm:$0xff] }
 0x1ba   :  { %3671 = vmatpush1.bf16.msra.mxu0 %v5408_v8  ;;  %3735 = vmatpush1.bf16.msra.mxu1 %v5455_v24 }
 0x1bb   :  { %3673 = vmatprep.subr.bf16.mxu0 %v5410_v9  ;;  %3737 = vmatprep.subr.bf16.mxu1 %v5466_v28 }
 0x1be   :  { %3675 = vmatpush1.bf16.msra.mxu0 %v5432_v16  ;;  %3739 = vmatpush1.bf16.msra.mxu1 %v5481_v33 }
 0x1bf   :  { %3677 = vmatprep.subr.bf16.mxu0 %v5443_v20  ;;  %3741 = vmatprep.subr.bf16.mxu1 %v5502_v40 }
 0x1c2   :  { %3679 = vmatpush1.bf16.msra.mxu0 %v5475_v31  ;;  %3743 = vmatpush1.bf16.msra.mxu1 %v5526_v48 }
 0x1c3   :  { %3681 = vmatprep.subr.bf16.mxu0 %v5487_v35  ;;  %3745 = vmatprep.subr.bf16.mxu1 %v5535_v51 }
 0x1c6   :  { %3683 = vmatpush1.bf16.msra.mxu0 %v5517_v45  ;;  %3747 = vmatpush1.bf16.msra.mxu1 %v5562_v60  ;;  %v8265_v45 = vld [vmem:[#allocation132_spill] sm:$0xff] }
 0x1c7   :  { %3685 = vmatprep.subr.bf16.mxu0 %v5529_v49  ;;  %3749 = vmatprep.subr.bf16.mxu1 %v5571_v63  ;;  %v8226_v49 = vld [vmem:[#allocation33_spill] sm:$0xff]  ;;  %v8227_v63 = vld [vmem:[#allocation30_spill] sm:$0xff] }
 0x1ca   :  { %3687 = vmatpush1.bf16.msra.mxu0 %v5553_v57  ;;  %3751 = vmatpush1.bf16.msra.mxu1 %v5598_v12  ;;  %v8228_v57 = vld [vmem:[#allocation35_spill] sm:$0xff]  ;;  %v8229_v12 = vld [vmem:[#allocation32_spill] sm:$0xff] }
 0x1cb   :  { %3689 = vmatprep.subr.bf16.mxu0 %v5565_v61  ;;  %3753 = vmatprep.subr.bf16.mxu1 %v5607_v15  ;;  %v8230_v61 = vld [vmem:[#allocation37_spill] sm:$0xff]  ;;  %v8231_v15 = vld [vmem:[#allocation34_spill] sm:$0xff] }
 0x1ce   :  { %3691 = vmatpush1.bf16.msra.mxu0 %v5589_v7  ;;  %3755 = vmatpush1.bf16.msra.mxu1 %v5634_v29  ;;  %v8232_v7 = vld [vmem:[#allocation39_spill] sm:$0xff]  ;;  %v8233_v29 = vld [vmem:[#allocation36_spill] sm:$0xff] }
 0x1cf   :  { %3693 = vmatprep.subr.bf16.mxu0 %v5601_v13  ;;  %3757 = vmatprep.subr.bf16.mxu1 %v5643_v34  ;;  %v8234_v13 = vld [vmem:[#allocation41_spill] sm:$0xff]  ;;  %v8235_v34 = vld [vmem:[#allocation38_spill] sm:$0xff] }
 0x1d2   :  { %3695 = vmatpush1.bf16.msra.mxu0 %v8225_v42  ;;  %3759 = vmatpush1.bf16.msra.mxu1 %v8226_v49  ;;  %v8236_v42 = vld [vmem:[#allocation43_spill] sm:$0xff]  ;;  %v8237_v49 = vld [vmem:[#allocation40_spill] sm:$0xff] }
 0x1d3   :  { %3697 = vmatprep.subr.bf16.mxu0 %v8227_v63  ;;  %3761 = vmatprep.subr.bf16.mxu1 %v8228_v57  ;;  %v8238_v63 = vld [vmem:[#allocation45_spill] sm:$0xff]  ;;  %v8239_v57 = vld [vmem:[#allocation42_spill] sm:$0xff] }
 0x1d6   :  { %3699 = vmatpush1.bf16.msra.mxu0 %v8229_v12  ;;  %3763 = vmatpush1.bf16.msra.mxu1 %v8230_v61  ;;  %v8240_v12 = vld [vmem:[#allocation47_spill] sm:$0xff]  ;;  %v8241_v61 = vld [vmem:[#allocation44_spill] sm:$0xff] }
 0x1d7   :  { %3701 = vmatprep.subr.bf16.mxu0 %v8231_v15  ;;  %3765 = vmatprep.subr.bf16.mxu1 %v8232_v7  ;;  %v8242_v15 = vld [vmem:[#allocation49_spill] sm:$0xff]  ;;  %v8243_v7 = vld [vmem:[#allocation46_spill] sm:$0xff] }
 0x1da   :  { %3703 = vmatpush1.bf16.msra.mxu0 %v8233_v29  ;;  %3767 = vmatpush1.bf16.msra.mxu1 %v8234_v13  ;;  %v8244_v29 = vld [vmem:[#allocation51_spill] sm:$0xff]  ;;  %v8245_v13 = vld [vmem:[#allocation48_spill] sm:$0xff] }
 0x1db   :  { %3705 = vmatprep.subr.bf16.mxu0 %v8235_v34  ;;  %3769 = vmatprep.subr.bf16.mxu1 %v8236_v42  ;;  %v8246_v34 = vld [vmem:[#allocation53_spill] sm:$0xff]  ;;  %v8247_v42 = vld [vmem:[#allocation50_spill] sm:$0xff] }
 0x1de   :  { %3707 = vmatpush1.bf16.msra.mxu0 %v8237_v49  ;;  %3771 = vmatpush1.bf16.msra.mxu1 %v8238_v63  ;;  %v8248_v49 = vld [vmem:[#allocation55_spill] sm:$0xff]  ;;  %v8249_v63 = vld [vmem:[#allocation52_spill] sm:$0xff] }
 0x1df   :  { %3709 = vmatprep.subr.bf16.mxu0 %v8239_v57  ;;  %3773 = vmatprep.subr.bf16.mxu1 %v8240_v12  ;;  %v8250_v57 = vld [vmem:[#allocation57_spill] sm:$0xff]  ;;  %v8251_v12 = vld [vmem:[#allocation54_spill] sm:$0xff] }
 0x1e2   :  { %3711 = vmatpush1.bf16.msra.mxu0 %v8241_v61  ;;  %3775 = vmatpush1.bf16.msra.mxu1 %v8242_v15  ;;  %v8252_v61 = vld [vmem:[#allocation59_spill] sm:$0xff]  ;;  %v8253_v15 = vld [vmem:[#allocation56_spill] sm:$0xff] }
 0x1e3   :  { %3713 = vmatprep.subr.bf16.mxu0 %v8243_v7  ;;  %3777 = vmatprep.subr.bf16.mxu1 %v8244_v29  ;;  %v8254_v7 = vld [vmem:[#allocation61_spill] sm:$0xff]  ;;  %v8255_v29 = vld [vmem:[#allocation58_spill] sm:$0xff] }
 0x1e6   :  { %3715 = vmatpush1.bf16.msra.mxu0 %v8245_v13  ;;  %3779 = vmatpush1.bf16.msra.mxu1 %v8246_v34  ;;  %v8256_v13 = vld [vmem:[#allocation63_spill] sm:$0xff]  ;;  %v8257_v34 = vld [vmem:[#allocation60_spill] sm:$0xff] }
 0x1e7   :  { %3717 = vmatprep.subr.bf16.mxu0 %v8247_v42  ;;  %3781 = vmatprep.subr.bf16.mxu1 %v8248_v49  ;;  %v8258_v42 = vld [vmem:[#allocation65_spill] sm:$0xff]  ;;  %v8259_v49 = vld [vmem:[#allocation62_spill] sm:$0xff] }
 0x1ea   :  { %3719 = vmatpush1.bf16.msra.mxu0 %v8249_v63  ;;  %3783 = vmatpush1.bf16.msra.mxu1 %v8250_v57  ;;  %v8260_v63 = vld [vmem:[#allocation67_spill] sm:$0xff]  ;;  %v8261_v57 = vld [vmem:[#allocation64_spill] sm:$0xff] }
 0x1eb   :  { %3721 = vmatprep.subr.bf16.mxu0 %v8251_v12  ;;  %3785 = vmatprep.subr.bf16.mxu1 %v8252_v61  ;;  %v8262_v12 = vld [vmem:[#allocation69_spill] sm:$0xff]  ;;  %v8263_v61 = vld [vmem:[#allocation66_spill] sm:$0xff] }
 0x1ee   :  { %3723 = vmatpush1.bf16.msra.mxu0 %v8253_v15  ;;  %3787 = vmatpush1.bf16.msra.mxu1 %v8254_v7  ;;  %v8264_v15 = vld [vmem:[#allocation71_spill] sm:$0xff] }
 0x1ef   :  { %3725 = vmatprep.subr.bf16.mxu0 %v8255_v29  ;;  %3789 = vmatprep.subr.bf16.mxu1 %v8256_v13 }
 0x1f2   :  { %3727 = vmatpush1.bf16.msra.mxu0 %v8257_v34  ;;  %3791 = vmatpush1.bf16.msra.mxu1 %v8258_v42  ;;  %v3129_v42 = vld [vmem:[%s7726_s0 + $0x28] sm:$0xff] }
 0x1f3   :  { %3729 = vmatprep.subr.bf16.mxu0 %v8259_v49  ;;  %3793 = vmatprep.subr.bf16.mxu1 %v8260_v63  ;;  %v3128_v63 = vld [vmem:[%s7726_s0 + $0x20] sm:$0xff]  ;;  %v679_v49 = vunpack.c.l.bf16 %v3129_v42 }
 0x1f4   :  { %v677_v34 = vunpack.c.l.bf16 %v3128_v63 }
 0x1f6   :  { %3731 = vmatpush1.bf16.msra.mxu0 %v8261_v57  ;;  %3795 = vmatpush1.bf16.msra.mxu1 %v8262_v12  ;;  %v680_v57 = vunpack.c.h.bf16 %v3129_v42  ;;  %v678_v12 = vunpack.c.h.bf16 %v3128_v63  ;;  %v685_v51 = vadd.f32 %v677_v34, %v6625_v2  ;;  %v3130_v42 = vld [vmem:[%s7726_s0 + $0x30] sm:$0xff] }
 0x1f7   :  { %3797 = vmatprep.subr.bf16.mxu0 %v8263_v61  ;;  %3861 = vmatprep.subr.bf16.mxu1 %v8264_v15  ;;  %v687_v61 = vadd.f32 %v679_v49, %v6621_v54  ;;  %v3131_v49 = vld [vmem:[%s7726_s0 + $0x38] sm:$0xff] }
 0x1f8   :  { %v688_v15 = vadd.f32 %v680_v57, %v8265_v45  ;;  %v686_v35 = vadd.f32 %v678_v12, %v6627_v59  ;;  %v681_v57 = vunpack.c.l.bf16 %v3130_v42  ;;  %v682_v12 = vunpack.c.h.bf16 %v3130_v42 }
 0x24c   :  { %v759_v7 = vpop.f32.mrb[4].mxu0  ;;  %v830_v29 = vpop.f32.mrb[4].mxu1 }
 0x24d   :  { %v761_v60 = vpop.f32.mrb[5].mxu0  ;;  %v832_v13 = vpop.f32.mrb[5].mxu1  ;;  %v979_v48 = vadd.f32 %v830_v29, %v687_v61  ;;  %v977_v40 = vadd.f32 %v759_v7, %v685_v51  ;;  %v684_v61 = vunpack.c.h.bf16 %v3131_v49  ;;  %v8267_v51 = vld [vmem:[#allocation136_spill] sm:$0xff]  ;;  %v8268_v7 = vld [vmem:[#allocation138_spill] sm:$0xff] }
 0x24e   :  { %v980_v31 = vadd.f32 %v832_v13, %v688_v15  ;;  %v978_v20 = vadd.f32 %v761_v60, %v686_v35  ;;  %v683_v35 = vunpack.c.l.bf16 %v3131_v49  ;;  %v690_v60 = vadd.f32 %v682_v12, %v8267_v51 }
 0x24f   :  { %v987_v33 = vmul.f32 0.5, %v979_v48  ;;  %v985_v28 = vmul.f32 0.5, %v977_v40  ;;  %v8266_v48 = vld [vmem:[#allocation135_spill] sm:$0xff]  ;;  %v692_v13 = vadd.f32 %v684_v61, %v8268_v7 }
 0x250   :  { %v988_v16 = vmul.f32 0.5, %v980_v31  ;;  %v986_v63 = vmul.f32 0.5, %v978_v20  ;;  %v689_v31 = vadd.f32 %v681_v57, %v8266_v48  ;;  %v8269_v20 = vld [vmem:[#allocation137_spill] sm:$0xff] }
 0x251   :  { %5225 = vtanh.f32 %v987_v33  ;;  %v691_v15 = vadd.f32 %v683_v35, %v8269_v20 }
 0x252   :  { %5227 = vtanh.f32 %v988_v16 }
 0x253   :  { %5229 = vtanh.f32 %v985_v28 }
 0x254   :  { %5231 = vtanh.f32 %v986_v63 }
 0x25b   :  { %v5226_v16 = vpop.eup %5225 }
 0x25c   :  { %v5228_v42 = vpop.eup %5227  ;;  %v995_v48 = vmul.f32 0.5, %v5226_v16 }
 0x25d   :  { %v5230_v49 = vpop.eup %5229  ;;  %v996_v12 = vmul.f32 0.5, %v5228_v42 }
 0x25e   :  { %v5232_v57 = vpop.eup %5231  ;;  %v993_v61 = vmul.f32 0.5, %v5230_v49  ;;  %v999_v35 = vadd.f32 0.5, %v995_v48 }
 0x25f   :  { %v994_v45 = vmul.f32 0.5, %v5232_v57  ;;  %v1000_v20 = vadd.f32 0.5, %v996_v12  ;;  %v8272_v57 = vld [vmem:[#allocation85_spill] sm:$0xff]  ;;  %v8273_v12 = vld [vmem:[#allocation82_spill] sm:$0xff] }
 0x28c   :  { %v901_v40 = vpop.f32.mrb[6].mxu0  ;;  %v972_v29 = vpop.f32.mrb[6].mxu1 }
 0x28d   :  { %v981_v34 = vadd.f32 %v901_v40, %v689_v31  ;;  %v903_v59 = vpop.f32.mrb[7].mxu0  ;;  %v974_v33 = vpop.f32.mrb[7].mxu1  ;;  %v983_v63 = vadd.f32 %v972_v29, %v691_v15  ;;  %v997_v31 = vadd.f32 0.5, %v993_v61  ;;  %v8274_v61 = vld [vmem:[#allocation87_spill] sm:$0xff] }
 0x28e   :  { %v982_v2 = vadd.f32 %v903_v59, %v690_v60  ;;  %v984_v28 = vadd.f32 %v974_v33, %v692_v13  ;;  %v998_v60 = vadd.f32 0.5, %v994_v45  ;;  %v1011_v13 = vmul.f32 %v999_v35, %v6651_v21  ;;  %v8275_v35 = vld [vmem:[#allocation84_spill] sm:$0xff] }
 0x28f   :  { %5233 = vtanh.f32 %v981_v34  ;;  %v1003_v7 = vmul.f32 0.5, %v983_v63 }
 0x290   :  { %5235 = vtanh.f32 %v982_v2  ;;  %v1004_v51 = vmul.f32 0.5, %v984_v28  ;;  %v1012_v2 = vmul.f32 %v1000_v20, %v6653_v37  ;;  %v8270_v37 = vld [vmem:[#allocation83_spill] sm:$0xff]  ;;  %v8271_v20 = vld [vmem:[#allocation80_spill] sm:$0xff] }
 0x292   :  { %5237 = vtanh.f32 %v1004_v51 }
 0x293   :  { %5239 = vtanh.f32 %v1003_v7 }
 0x299   :  { %v5234_v59 = vpop.eup %5233 }
 0x29a   :  { %v5236_v40 = vpop.eup %5235  ;;  %v1013_v15 = vmul.f32 %v5234_v59, %v997_v31  ;;  %v8276_v31 = vld [vmem:[#allocation89_spill] sm:$0xff]  ;;  %v8277_v59 = vld [vmem:[#allocation86_spill] sm:$0xff] }
 0x29b   :  { %v1014_v29 = vmul.f32 %v5236_v40, %v998_v60  ;;  %v8278_v60 = vld [vmem:[#allocation91_spill] sm:$0xff]  ;;  %v8279_v40 = vld [vmem:[#allocation88_spill] sm:$0xff] }
 0x29c   :  { %v6813_v34 = vadd.f32 %v1013_v15, %v1011_v13  ;;  %v5238_v48 = vpop.eup %5237  ;;  %v8280_v13 = vld [vmem:[#allocation93_spill] sm:$0xff]  ;;  %v8281_v15 = vld [vmem:[#allocation90_spill] sm:$0xff] }
 0x29d   :  { %v6815_v33 = vadd.f32 %v1014_v29, %v1012_v2  ;;  %v5240_v51 = vpop.eup %5239  ;;  %v1008_v7 = vmul.f32 0.5, %v5238_v48  ;;  %v8282_v2 = vld [vmem:[#allocation95_spill] sm:$0xff]  ;;  %v8283_v29 = vld [vmem:[#allocation92_spill] sm:$0xff]  ;;  %v8284_v48 = vld [vmem:[#allocation97_spill] sm:$0xff] }
 0x29e   :  { %5241 = vtanh.f32 %v6813_v34  ;;  %v1007_v16 = vmul.f32 0.5, %v5240_v51  ;;  %v8285_v51 = vld [vmem:[#allocation94_spill] sm:$0xff] }
 0x29f   :  { %5243 = vtanh.f32 %v6815_v33  ;;  %v1010_v28 = vadd.f32 0.5, %v1008_v7  ;;  %v8286_v7 = vld [vmem:[#allocation99_spill] sm:$0xff] }
 0x2a0   :  { %v1009_v21 = vadd.f32 0.5, %v1007_v16  ;;  %v8287_v16 = vld [vmem:[#allocation96_spill] sm:$0xff] }
 0x2a8   :  { %v5242_v45 = vpop.eup %5241 }
 0x2a9   :  { %v5244_v42 = vpop.eup %5243  ;;  %v6819_v49 = vmul.f32 %v5242_v45, %v1009_v21  ;;  %v8288_v45 = vld [vmem:[#allocation101_spill] sm:$0xff]  ;;  %v8291_v21 = vld [vmem:[#allocation100_spill] sm:$0xff] }
 0x2aa   :  { %v1020_v63 = vmul.f32 %v5244_v42, %v1010_v28  ;;  %v8289_v28 = vld [vmem:[#allocation98_spill] sm:$0xff]  ;;  %v8290_v42 = vld [vmem:[#allocation103_spill] sm:$0xff] }
 0x2ac   :  { %1106 = vmatprep.mubr.f32.mxu0 %v1020_v63  ;;  %1177 = vmatprep.mubr.f32.mxu1 %v1020_v63 }
 0x2ad   :  { %1107 = vmatmul.mubr.f32.vlgmr.msra.gmra.mrb[8].mxu0 %v6819_v49  ;;  %1178 = vmatmul.mubr.f32.vlgmr.msra.gmra.mrb[8].mxu1 %v6819_v49 }
 0x2ae   :  { %3799 = vmatpush1.bf16.msra.mxu0 %v8173_v26  ;;  %3863 = vmatpush1.bf16.msra.mxu1 %v8174_v14 }
 0x2af   :  { %1248 = vmatprep.mubr.f32.mxu0 %v1020_v63  ;;  %1319 = vmatprep.mubr.f32.mxu1 %v1020_v63  ;;  %v8292_v63 = vld [vmem:[#allocation105_spill] sm:$0xff] }
 0x2b0   :  { %3801 = vmatprep.subr.bf16.mxu0 %v8175_v52  ;;  %3865 = vmatprep.subr.bf16.mxu1 %v8176_v1 }
 0x2b2   :  { %3803 = vmatpush1.bf16.msra.mxu0 %v8177_v25  ;;  %3867 = vmatpush1.bf16.msra.mxu1 %v8178_v30 }
 0x2b3   :  { %3805 = vmatprep.subr.bf16.mxu0 %v8179_v46  ;;  %3869 = vmatprep.subr.bf16.mxu1 %v8180_v44 }
 0x2b6   :  { %3807 = vmatpush1.bf16.msra.mxu0 %v8181_v22  ;;  %3871 = vmatpush1.bf16.msra.mxu1 %v8182_v50 }
 0x2b7   :  { %3809 = vmatprep.subr.bf16.mxu0 %v8183_v39  ;;  %3873 = vmatprep.subr.bf16.mxu1 %v8270_v37 }
 0x2ba   :  { %3811 = vmatpush1.bf16.msra.mxu0 %v8271_v20  ;;  %3875 = vmatpush1.bf16.msra.mxu1 %v8272_v57 }
 0x2bb   :  { %3813 = vmatprep.subr.bf16.mxu0 %v8273_v12  ;;  %3877 = vmatprep.subr.bf16.mxu1 %v8274_v61 }
 0x2be   :  { %3815 = vmatpush1.bf16.msra.mxu0 %v8275_v35  ;;  %3879 = vmatpush1.bf16.msra.mxu1 %v8276_v31 }
 0x2bf   :  { %3817 = vmatprep.subr.bf16.mxu0 %v8277_v59  ;;  %3881 = vmatprep.subr.bf16.mxu1 %v8278_v60 }
 0x2c2   :  { %3819 = vmatpush1.bf16.msra.mxu0 %v8279_v40  ;;  %3883 = vmatpush1.bf16.msra.mxu1 %v8280_v13 }
 0x2c3   :  { %3821 = vmatprep.subr.bf16.mxu0 %v8281_v15  ;;  %3885 = vmatprep.subr.bf16.mxu1 %v8282_v2 }
 0x2c6   :  { %3823 = vmatpush1.bf16.msra.mxu0 %v8283_v29  ;;  %3887 = vmatpush1.bf16.msra.mxu1 %v8284_v48  ;;  %v8293_v29 = vld [vmem:[#allocation107_spill] sm:$0xff]  ;;  %v8294_v48 = vld [vmem:[#allocation104_spill] sm:$0xff] }
 0x2c7   :  { %3825 = vmatprep.subr.bf16.mxu0 %v8285_v51  ;;  %3889 = vmatprep.subr.bf16.mxu1 %v8286_v7  ;;  %v8295_v51 = vld [vmem:[#allocation109_spill] sm:$0xff] }
 0x2ca   :  { %3827 = vmatpush1.bf16.msra.mxu0 %v8287_v16  ;;  %3891 = vmatpush1.bf16.msra.mxu1 %v8288_v45  ;;  %v8296_v16 = vld [vmem:[#allocation111_spill] sm:$0xff] }
 0x2cb   :  { %3829 = vmatprep.subr.bf16.mxu0 %v8289_v28  ;;  %3893 = vmatprep.subr.bf16.mxu1 %v8290_v42  ;;  %v8297_v28 = vld [vmem:[#allocation113_spill] sm:$0xff] }
 0x2ce   :  { %3831 = vmatpush1.bf16.msra.mxu0 %v8291_v21  ;;  %3895 = vmatpush1.bf16.msra.mxu1 %v8292_v63  ;;  %v8298_v21 = vld [vmem:[#allocation115_spill] sm:$0xff] }
 0x2cf   :  { %3833 = vmatprep.subr.bf16.mxu0 %v8207_v41  ;;  %3897 = vmatprep.subr.bf16.mxu1 %v8293_v29  ;;  %v8299_v41 = vld [vmem:[#allocation117_spill] sm:$0xff] }
 0x2d2   :  { %3835 = vmatpush1.bf16.msra.mxu0 %v8294_v48  ;;  %3899 = vmatpush1.bf16.msra.mxu1 %v8295_v51 }
 0x2d3   :  { %3837 = vmatprep.subr.bf16.mxu0 %v8211_v0  ;;  %3901 = vmatprep.subr.bf16.mxu1 %v8296_v16 }
 0x2d6   :  { %3839 = vmatpush1.bf16.msra.mxu0 %v8213_v36  ;;  %3903 = vmatpush1.bf16.msra.mxu1 %v8297_v28 }
 0x2d7   :  { %3841 = vmatprep.subr.bf16.mxu0 %v8215_v6  ;;  %3905 = vmatprep.subr.bf16.mxu1 %v8298_v21 }
 0x2da   :  { %3843 = vmatpush1.bf16.msra.mxu0 %v8217_v27  ;;  %3907 = vmatpush1.bf16.msra.mxu1 %v8299_v41 }
 0x2db   :  { %3845 = vmatprep.subr.bf16.mxu0 %v8218_v5  ;;  %3909 = vmatprep.subr.bf16.mxu1 %v8219_v55 }
 0x2de   :  { %3847 = vmatpush1.bf16.msra.mxu0 %v8220_v56  ;;  %3911 = vmatpush1.bf16.msra.mxu1 %v6466_v32 }
 0x2df   :  { %3849 = vmatprep.subr.bf16.mxu0 %v8221_v58  ;;  %3913 = vmatprep.subr.bf16.mxu1 %v6475_v43 }
 0x2e2   :  { %3851 = vmatpush1.bf16.msra.mxu0 %v8222_v47  ;;  %3915 = vmatpush1.bf16.msra.mxu1 %v6499_v11  ;;  %v8363_v47 = vld [vmem:[#allocation134_spill] sm:$0xff] }
 0x2e3   :  { %3853 = vmatprep.subr.bf16.mxu0 %v8223_v38  ;;  %3917 = vmatprep.subr.bf16.mxu1 %v6508_v19  ;;  %v8361_v19 = vld [vmem:[#allocation132_spill] sm:$0xff]  ;;  %v8362_v38 = vld [vmem:[#allocation133_spill] sm:$0xff] }
 0x2e6   :  { %3855 = vmatpush1.bf16.msra.mxu0 %v8224_v10  ;;  %3919 = vmatpush1.bf16.msra.mxu1 %v6526_v18  ;;  %v8306_v18 = vld [vmem:[#allocation17_spill] sm:$0xff] }
 0x2e7   :  { %3857 = vmatprep.subr.bf16.mxu0 %v6502_v62  ;;  %3921 = vmatprep.subr.bf16.mxu1 %v6530_v53  ;;  %v8300_v62 = vld [vmem:[#allocation11_spill] sm:$0xff] }
 0x2e8   :  { %v8301_v53 = vld [vmem:[#allocation7_spill] sm:$0xff] }
 0x2ea   :  { %3859 = vmatpush1.bf16.msra.mxu0 %v6523_v3  ;;  %3923 = vmatpush1.bf16.msra.mxu1 %v6540_v23  ;;  %v8302_v3 = vld [vmem:[#allocation13_spill] sm:$0xff] }
 0x2eb   :  { %3925 = vmatprep.subr.bf16.mxu0 %v5397_v4  ;;  %3989 = vmatprep.subr.bf16.mxu1 %v5434_v17  ;;  %v8303_v23 = vld [vmem:[#allocation9_spill] sm:$0xff]  ;;  %v8304_v4 = vld [vmem:[#allocation15_spill] sm:$0xff]  ;;  %v8305_v17 = vld [vmem:[#allocation12_spill] sm:$0xff] }
 0x2ed   :  { %1249 = vmatmul.mubr.f32.vlgmr.msra.gmra.mrb[10].mxu0 %v6819_v49  ;;  %1320 = vmatmul.mubr.f32.vlgmr.msra.gmra.mrb[10].mxu1 %v6819_v49  ;;  %v8307_v49 = vld [vmem:[#allocation14_spill] sm:$0xff] }
 0x2ee   :  { %3927 = vmatpush1.bf16.msra.mxu0 %v5408_v8  ;;  %3991 = vmatpush1.bf16.msra.mxu1 %v5455_v24  ;;  %v8308_v8 = vld [vmem:[#allocation19_spill] sm:$0xff]  ;;  %v8309_v24 = vld [vmem:[#allocation16_spill] sm:$0xff] }
 0x2ef   :  { %3929 = vmatprep.subr.bf16.mxu0 %v5410_v9  ;;  %3993 = vmatprep.subr.bf16.mxu1 %v8300_v62  ;;  %v8310_v9 = vld [vmem:[#allocation21_spill] sm:$0xff]  ;;  %v8311_v62 = vld [vmem:[#allocation18_spill] sm:$0xff] }
 0x2f2   :  { %3931 = vmatpush1.bf16.msra.mxu0 %v8301_v53  ;;  %3995 = vmatpush1.bf16.msra.mxu1 %v8302_v3  ;;  %v8312_v53 = vld [vmem:[#allocation23_spill] sm:$0xff]  ;;  %v8313_v3 = vld [vmem:[#allocation20_spill] sm:$0xff] }
 0x2f3   :  { %3933 = vmatprep.subr.bf16.mxu0 %v8303_v23  ;;  %3997 = vmatprep.subr.bf16.mxu1 %v8304_v4  ;;  %v8314_v23 = vld [vmem:[#allocation25_spill] sm:$0xff]  ;;  %v8315_v4 = vld [vmem:[#allocation22_spill] sm:$0xff] }
 0x2f6   :  { %3935 = vmatpush1.bf16.msra.mxu0 %v8305_v17  ;;  %3999 = vmatpush1.bf16.msra.mxu1 %v8306_v18  ;;  %v8316_v17 = vld [vmem:[#allocation27_spill] sm:$0xff]  ;;  %v8317_v18 = vld [vmem:[#allocation24_spill] sm:$0xff] }
 0x2f7   :  { %3937 = vmatprep.subr.bf16.mxu0 %v8307_v49  ;;  %4001 = vmatprep.subr.bf16.mxu1 %v8308_v8  ;;  %v8318_v49 = vld [vmem:[#allocation29_spill] sm:$0xff]  ;;  %v8319_v8 = vld [vmem:[#allocation26_spill] sm:$0xff] }
 0x2fa   :  { %3939 = vmatpush1.bf16.msra.mxu0 %v8309_v24  ;;  %4003 = vmatpush1.bf16.msra.mxu1 %v8310_v9  ;;  %v8320_v24 = vld [vmem:[#allocation31_spill] sm:$0xff]  ;;  %v8321_v9 = vld [vmem:[#allocation28_spill] sm:$0xff] }
 0x2fb   :  { %3941 = vmatprep.subr.bf16.mxu0 %v8311_v62  ;;  %4005 = vmatprep.subr.bf16.mxu1 %v8312_v53  ;;  %v8322_v62 = vld [vmem:[#allocation33_spill] sm:$0xff]  ;;  %v8323_v53 = vld [vmem:[#allocation30_spill] sm:$0xff] }
 0x2fe   :  { %3943 = vmatpush1.bf16.msra.mxu0 %v8313_v3  ;;  %4007 = vmatpush1.bf16.msra.mxu1 %v8314_v23  ;;  %v8324_v3 = vld [vmem:[#allocation35_spill] sm:$0xff]  ;;  %v8325_v23 = vld [vmem:[#allocation32_spill] sm:$0xff] }
 0x2ff   :  { %3945 = vmatprep.subr.bf16.mxu0 %v8315_v4  ;;  %4009 = vmatprep.subr.bf16.mxu1 %v8316_v17  ;;  %v8326_v4 = vld [vmem:[#allocation37_spill] sm:$0xff]  ;;  %v8327_v17 = vld [vmem:[#allocation34_spill] sm:$0xff] }
 0x302   :  { %3947 = vmatpush1.bf16.msra.mxu0 %v8317_v18  ;;  %4011 = vmatpush1.bf16.msra.mxu1 %v8318_v49  ;;  %v8328_v18 = vld [vmem:[#allocation39_spill] sm:$0xff]  ;;  %v8329_v49 = vld [vmem:[#allocation36_spill] sm:$0xff] }
 0x303   :  { %3949 = vmatprep.subr.bf16.mxu0 %v8319_v8  ;;  %4013 = vmatprep.subr.bf16.mxu1 %v8320_v24  ;;  %v8330_v8 = vld [vmem:[#allocation41_spill] sm:$0xff]  ;;  %v8331_v24 = vld [vmem:[#allocation38_spill] sm:$0xff] }
 0x306   :  { %3951 = vmatpush1.bf16.msra.mxu0 %v8321_v9  ;;  %4015 = vmatpush1.bf16.msra.mxu1 %v8322_v62  ;;  %v8332_v9 = vld [vmem:[#allocation43_spill] sm:$0xff]  ;;  %v8333_v62 = vld [vmem:[#allocation40_spill] sm:$0xff] }
 0x307   :  { %3953 = vmatprep.subr.bf16.mxu0 %v8323_v53  ;;  %4017 = vmatprep.subr.bf16.mxu1 %v8324_v3  ;;  %v8334_v53 = vld [vmem:[#allocation45_spill] sm:$0xff]  ;;  %v8335_v3 = vld [vmem:[#allocation42_spill] sm:$0xff] }
 0x30a   :  { %3955 = vmatpush1.bf16.msra.mxu0 %v8325_v23  ;;  %4019 = vmatpush1.bf16.msra.mxu1 %v8326_v4  ;;  %v8336_v23 = vld [vmem:[#allocation47_spill] sm:$0xff]  ;;  %v8337_v4 = vld [vmem:[#allocation44_spill] sm:$0xff] }
 0x30b   :  { %3957 = vmatprep.subr.bf16.mxu0 %v8327_v17  ;;  %4021 = vmatprep.subr.bf16.mxu1 %v8328_v18  ;;  %v8338_v17 = vld [vmem:[#allocation49_spill] sm:$0xff]  ;;  %v8339_v18 = vld [vmem:[#allocation46_spill] sm:$0xff] }
 0x30e   :  { %3959 = vmatpush1.bf16.msra.mxu0 %v8329_v49  ;;  %4023 = vmatpush1.bf16.msra.mxu1 %v8330_v8  ;;  %v8340_v49 = vld [vmem:[#allocation51_spill] sm:$0xff]  ;;  %v8341_v8 = vld [vmem:[#allocation48_spill] sm:$0xff] }
 0x30f   :  { %3961 = vmatprep.subr.bf16.mxu0 %v8331_v24  ;;  %4025 = vmatprep.subr.bf16.mxu1 %v8332_v9  ;;  %v8342_v24 = vld [vmem:[#allocation53_spill] sm:$0xff]  ;;  %v8343_v9 = vld [vmem:[#allocation50_spill] sm:$0xff] }
 0x312   :  { %3963 = vmatpush1.bf16.msra.mxu0 %v8333_v62  ;;  %4027 = vmatpush1.bf16.msra.mxu1 %v8334_v53  ;;  %v8344_v62 = vld [vmem:[#allocation55_spill] sm:$0xff]  ;;  %v8345_v53 = vld [vmem:[#allocation52_spill] sm:$0xff] }
 0x313   :  { %3965 = vmatprep.subr.bf16.mxu0 %v8335_v3  ;;  %4029 = vmatprep.subr.bf16.mxu1 %v8336_v23  ;;  %v8346_v3 = vld [vmem:[#allocation57_spill] sm:$0xff]  ;;  %v8347_v23 = vld [vmem:[#allocation54_spill] sm:$0xff] }
 0x316   :  { %3967 = vmatpush1.bf16.msra.mxu0 %v8337_v4  ;;  %4031 = vmatpush1.bf16.msra.mxu1 %v8338_v17  ;;  %v8348_v4 = vld [vmem:[#allocation59_spill] sm:$0xff]  ;;  %v8349_v17 = vld [vmem:[#allocation56_spill] sm:$0xff] }
 0x317   :  { %3969 = vmatprep.subr.bf16.mxu0 %v8339_v18  ;;  %4033 = vmatprep.subr.bf16.mxu1 %v8340_v49  ;;  %v8350_v18 = vld [vmem:[#allocation61_spill] sm:$0xff]  ;;  %v8351_v49 = vld [vmem:[#allocation58_spill] sm:$0xff] }
 0x31a   :  { %3971 = vmatpush1.bf16.msra.mxu0 %v8341_v8  ;;  %4035 = vmatpush1.bf16.msra.mxu1 %v8342_v24  ;;  %v8352_v8 = vld [vmem:[#allocation63_spill] sm:$0xff]  ;;  %v8353_v24 = vld [vmem:[#allocation60_spill] sm:$0xff] }
 0x31b   :  { %3973 = vmatprep.subr.bf16.mxu0 %v8343_v9  ;;  %4037 = vmatprep.subr.bf16.mxu1 %v8344_v62  ;;  %v8354_v9 = vld [vmem:[#allocation65_spill] sm:$0xff]  ;;  %v8355_v62 = vld [vmem:[#allocation62_spill] sm:$0xff] }
 0x31e   :  { %3975 = vmatpush1.bf16.msra.mxu0 %v8345_v53  ;;  %4039 = vmatpush1.bf16.msra.mxu1 %v8346_v3  ;;  %v8356_v53 = vld [vmem:[#allocation67_spill] sm:$0xff]  ;;  %v8357_v3 = vld [vmem:[#allocation64_spill] sm:$0xff] }
 0x31f   :  { %3977 = vmatprep.subr.bf16.mxu0 %v8347_v23  ;;  %4041 = vmatprep.subr.bf16.mxu1 %v8348_v4  ;;  %v8358_v23 = vld [vmem:[#allocation69_spill] sm:$0xff]  ;;  %v8359_v4 = vld [vmem:[#allocation66_spill] sm:$0xff] }
 0x322   :  { %3979 = vmatpush1.bf16.msra.mxu0 %v8349_v17  ;;  %4043 = vmatpush1.bf16.msra.mxu1 %v8350_v18  ;;  %v8360_v17 = vld [vmem:[#allocation71_spill] sm:$0xff] }
 0x323   :  { %3981 = vmatprep.subr.bf16.mxu0 %v8351_v49  ;;  %4045 = vmatprep.subr.bf16.mxu1 %v8352_v8 }
 0x326   :  { %3983 = vmatpush1.bf16.msra.mxu0 %v8353_v24  ;;  %4047 = vmatpush1.bf16.msra.mxu1 %v8354_v9  ;;  %v3133_v9 = vld [vmem:[%s7726_s0 + $0x48] sm:$0xff] }
 0x327   :  { %3985 = vmatprep.subr.bf16.mxu0 %v8355_v62  ;;  %4049 = vmatprep.subr.bf16.mxu1 %v8356_v53  ;;  %v3132_v53 = vld [vmem:[%s7726_s0 + $0x40] sm:$0xff]  ;;  %v1028_v62 = vunpack.c.l.bf16 %v3133_v9 }
 0x328   :  { %v1026_v24 = vunpack.c.l.bf16 %v3132_v53 }
 0x32a   :  { %3987 = vmatpush1.bf16.msra.mxu0 %v8357_v3  ;;  %4051 = vmatpush1.bf16.msra.mxu1 %v8358_v23  ;;  %v1029_v3 = vunpack.c.h.bf16 %v3133_v9  ;;  %v1027_v23 = vunpack.c.h.bf16 %v3132_v53  ;;  %v1034_v11 = vadd.f32 %v1026_v24, %v8362_v38  ;;  %v3134_v9 = vld [vmem:[%s7726_s0 + $0x50] sm:$0xff] }
 0x32b   :  { %4053 = vmatprep.subr.bf16.mxu0 %v8359_v4  ;;  %4117 = vmatprep.subr.bf16.mxu1 %v8360_v17  ;;  %v1036_v4 = vadd.f32 %v1028_v62, %v6621_v54  ;;  %v3135_v62 = vld [vmem:[%s7726_s0 + $0x58] sm:$0xff]  ;;  %v1030_v24 = vunpack.c.l.bf16 %v3134_v9 }
 0x32c   :  { %v1037_v17 = vadd.f32 %v1029_v3, %v8361_v19  ;;  %v1035_v43 = vadd.f32 %v1027_v23, %v8363_v47  ;;  %v1031_v3 = vunpack.c.h.bf16 %v3134_v9 }
 0x380   :  { %v1108_v18 = vpop.f32.mrb[8].mxu0  ;;  %v1179_v49 = vpop.f32.mrb[8].mxu1 }
 0x381   :  { %v1110_v10 = vpop.f32.mrb[9].mxu0  ;;  %v1181_v8 = vpop.f32.mrb[9].mxu1  ;;  %v1328_v58 = vadd.f32 %v1179_v49, %v1036_v4  ;;  %v1326_v56 = vadd.f32 %v1108_v18, %v1034_v11  ;;  %v1033_v4 = vunpack.c.h.bf16 %v3135_v62 }
 0x382   :  { %v1329_v32 = vadd.f32 %v1181_v8, %v1037_v17  ;;  %v1327_v55 = vadd.f32 %v1110_v10, %v1035_v43  ;;  %v1032_v8 = vunpack.c.l.bf16 %v3135_v62  ;;  %v8364_v17 = vld [vmem:[#allocation135_spill] sm:$0xff]  ;;  %v8365_v10 = vld [vmem:[#allocation136_spill] sm:$0xff]  ;;  %v8366_v43 = vld [vmem:[#allocation138_spill] sm:$0xff] }
 0x383   :  { %v1336_v5 = vmul.f32 0.5, %v1328_v58  ;;  %v1334_v27 = vmul.f32 0.5, %v1326_v56  ;;  %v1038_v11 = vadd.f32 %v1030_v24, %v8364_v17  ;;  %v1041_v18 = vadd.f32 %v1033_v4, %v8366_v43 }
 0x384   :  { %v1337_v41 = vmul.f32 0.5, %v1329_v32  ;;  %v1335_v53 = vmul.f32 0.5, %v1327_v55  ;;  %v1039_v32 = vadd.f32 %v1031_v3, %v8365_v10  ;;  %v8367_v55 = vld [vmem:[#allocation137_spill] sm:$0xff] }
 0x385   :  { %5245 = vtanh.f32 %v1336_v5  ;;  %v1040_v56 = vadd.f32 %v1032_v8, %v8367_v55 }
 0x386   :  { %5247 = vtanh.f32 %v1337_v41 }
 0x387   :  { %5249 = vtanh.f32 %v1334_v27 }
 0x388   :  { %5251 = vtanh.f32 %v1335_v53 }
 0x38f   :  { %v5246_v41 = vpop.eup %5245 }
 0x390   :  { %v5248_v9 = vpop.eup %5247  ;;  %v1344_v17 = vmul.f32 0.5, %v5246_v41 }
 0x391   :  { %v5250_v62 = vpop.eup %5249  ;;  %v1345_v3 = vmul.f32 0.5, %v5248_v9 }
 0x392   :  { %v5252_v24 = vpop.eup %5251  ;;  %v1342_v4 = vmul.f32 0.5, %v5250_v62  ;;  %v1348_v8 = vadd.f32 0.5, %v1344_v17 }
 0x393   :  { %v1343_v19 = vmul.f32 0.5, %v5252_v24  ;;  %v1349_v55 = vadd.f32 0.5, %v1345_v3  ;;  %v8370_v24 = vld [vmem:[#allocation94_spill] sm:$0xff]  ;;  %v8371_v3 = vld [vmem:[#allocation96_spill] sm:$0xff] }
 0x3c0   :  { %v1250_v23 = vpop.f32.mrb[10].mxu0  ;;  %v1321_v58 = vpop.f32.mrb[10].mxu1 }
 0x3c1   :  { %v1330_v49 = vadd.f32 %v1250_v23, %v1038_v11  ;;  %v1252_v47 = vpop.f32.mrb[11].mxu0  ;;  %v1323_v5 = vpop.f32.mrb[11].mxu1  ;;  %v1332_v53 = vadd.f32 %v1321_v58, %v1040_v56  ;;  %v1346_v11 = vadd.f32 0.5, %v1342_v4  ;;  %v8372_v4 = vld [vmem:[#allocation98_spill] sm:$0xff] }
 0x3c2   :  { %v1331_v38 = vadd.f32 %v1252_v47, %v1039_v32  ;;  %v1333_v27 = vadd.f32 %v1323_v5, %v1041_v18  ;;  %v1347_v32 = vadd.f32 0.5, %v1343_v19  ;;  %v1360_v18 = vmul.f32 %v1348_v8, %v6813_v34  ;;  %v8373_v8 = vld [vmem:[#allocation100_spill] sm:$0xff] }
 0x3c3   :  { %5253 = vtanh.f32 %v1330_v49  ;;  %v1352_v43 = vmul.f32 0.5, %v1332_v53 }
 0x3c4   :  { %5255 = vtanh.f32 %v1331_v38  ;;  %v1353_v10 = vmul.f32 0.5, %v1333_v27  ;;  %v1361_v38 = vmul.f32 %v1349_v55, %v6815_v33  ;;  %v8368_v33 = vld [vmem:[#allocation92_spill] sm:$0xff]  ;;  %v8369_v55 = vld [vmem:[#allocation97_spill] sm:$0xff] }
 0x3c6   :  { %5257 = vtanh.f32 %v1353_v10 }
 0x3c7   :  { %5259 = vtanh.f32 %v1352_v43 }
 0x3cd   :  { %v5254_v47 = vpop.eup %5253 }
 0x3ce   :  { %v5256_v23 = vpop.eup %5255  ;;  %v1362_v56 = vmul.f32 %v5254_v47, %v1346_v11  ;;  %v8374_v11 = vld [vmem:[#allocation102_spill] sm:$0xff]  ;;  %v8375_v47 = vld [vmem:[#allocation112_spill] sm:$0xff] }
 0x3cf   :  { %v1363_v58 = vmul.f32 %v5256_v23, %v1347_v32  ;;  %v8376_v32 = vld [vmem:[#allocation117_spill] sm:$0xff]  ;;  %v8377_v23 = vld [vmem:[#allocation114_spill] sm:$0xff] }
 0x3d0   :  { %v6975_v49 = vadd.f32 %v1362_v56, %v1360_v18  ;;  %v5258_v17 = vpop.eup %5257  ;;  %v8378_v18 = vld [vmem:[#allocation119_spill] sm:$0xff]  ;;  %v8379_v56 = vld [vmem:[#allocation116_spill] sm:$0xff] }
 0x3d1   :  { %v6977_v5 = vadd.f32 %v1363_v58, %v1361_v38  ;;  %v5260_v10 = vpop.eup %5259  ;;  %v1357_v43 = vmul.f32 0.5, %v5258_v17  ;;  %v8380_v38 = vld [vmem:[#allocation121_spill] sm:$0xff]  ;;  %v8381_v58 = vld [vmem:[#allocation118_spill] sm:$0xff]  ;;  %v8382_v17 = vld [vmem:[#allocation123_spill] sm:$0xff] }
 0x3d2   :  { %5261 = vtanh.f32 %v6975_v49  ;;  %v1356_v41 = vmul.f32 0.5, %v5260_v10  ;;  %v8383_v10 = vld [vmem:[#allocation120_spill] sm:$0xff] }
 0x3d3   :  { %5263 = vtanh.f32 %v6977_v5  ;;  %v1359_v27 = vadd.f32 0.5, %v1357_v43  ;;  %v8384_v43 = vld [vmem:[#allocation125_spill] sm:$0xff] }
 0x3d4   :  { %v1358_v34 = vadd.f32 0.5, %v1356_v41  ;;  %v8385_v41 = vld [vmem:[#allocation122_spill] sm:$0xff] }
 0x3dc   :  { %v5262_v19 = vpop.eup %5261 }
 0x3dd   :  { %v5264_v9 = vpop.eup %5263  ;;  %v6981_v62 = vmul.f32 %v5262_v19, %v1358_v34  ;;  %v8386_v19 = vld [vmem:[#allocation127_spill] sm:$0xff]  ;;  %v8389_v34 = vld [vmem:[#allocation126_spill] sm:$0xff] }
 0x3de   :  { %v1369_v53 = vmul.f32 %v5264_v9, %v1359_v27  ;;  %v8387_v27 = vld [vmem:[#allocation124_spill] sm:$0xff]  ;;  %v8388_v9 = vld [vmem:[#allocation129_spill] sm:$0xff] }
 0x3e0   :  { %1455 = vmatprep.mubr.f32.mxu0 %v1369_v53  ;;  %1526 = vmatprep.mubr.f32.mxu1 %v1369_v53 }
 0x3e1   :  { %1456 = vmatmul.mubr.f32.vlgmr.msra.gmra.mrb[12].mxu0 %v6981_v62  ;;  %1527 = vmatmul.mubr.f32.vlgmr.msra.gmra.mrb[12].mxu1 %v6981_v62 }
 0x3e2   :  { %4055 = vmatpush1.bf16.msra.mxu0 %v8173_v26  ;;  %4119 = vmatpush1.bf16.msra.mxu1 %v8174_v14 }
 0x3e3   :  { %1597 = vmatprep.mubr.f32.mxu0 %v1369_v53  ;;  %1668 = vmatprep.mubr.f32.mxu1 %v1369_v53  ;;  %v8390_v53 = vld [vmem:[#allocation130_spill] sm:$0xff] }
 0x3e4   :  { %4057 = vmatprep.subr.bf16.mxu0 %v8175_v52  ;;  %4121 = vmatprep.subr.bf16.mxu1 %v8176_v1 }
 0x3e6   :  { %4059 = vmatpush1.bf16.msra.mxu0 %v8177_v25  ;;  %4123 = vmatpush1.bf16.msra.mxu1 %v8178_v30 }
 0x3e7   :  { %4061 = vmatprep.subr.bf16.mxu0 %v8179_v46  ;;  %4125 = vmatprep.subr.bf16.mxu1 %v8180_v44 }
 0x3ea   :  { %4063 = vmatpush1.bf16.msra.mxu0 %v8181_v22  ;;  %4127 = vmatpush1.bf16.msra.mxu1 %v8182_v50 }
 0x3eb   :  { %4065 = vmatprep.subr.bf16.mxu0 %v8183_v39  ;;  %4129 = vmatprep.subr.bf16.mxu1 %v8270_v37 }
 0x3ee   :  { %4067 = vmatpush1.bf16.msra.mxu0 %v8271_v20  ;;  %4131 = vmatpush1.bf16.msra.mxu1 %v8272_v57 }
 0x3ef   :  { %4069 = vmatprep.subr.bf16.mxu0 %v8273_v12  ;;  %4133 = vmatprep.subr.bf16.mxu1 %v8274_v61 }
 0x3f2   :  { %4071 = vmatpush1.bf16.msra.mxu0 %v8275_v35  ;;  %4135 = vmatpush1.bf16.msra.mxu1 %v8276_v31 }
 0x3f3   :  { %4073 = vmatprep.subr.bf16.mxu0 %v8277_v59  ;;  %4137 = vmatprep.subr.bf16.mxu1 %v8278_v60 }
 0x3f6   :  { %4075 = vmatpush1.bf16.msra.mxu0 %v8279_v40  ;;  %4139 = vmatpush1.bf16.msra.mxu1 %v8280_v13 }
 0x3f7   :  { %4077 = vmatprep.subr.bf16.mxu0 %v8281_v15  ;;  %4141 = vmatprep.subr.bf16.mxu1 %v8282_v2 }
 0x3fa   :  { %4079 = vmatpush1.bf16.msra.mxu0 %v8368_v33  ;;  %4143 = vmatpush1.bf16.msra.mxu1 %v8369_v55 }
 0x3fb   :  { %4081 = vmatprep.subr.bf16.mxu0 %v8370_v24  ;;  %4145 = vmatprep.subr.bf16.mxu1 %v8286_v7 }
 0x3fe   :  { %4083 = vmatpush1.bf16.msra.mxu0 %v8371_v3  ;;  %4147 = vmatpush1.bf16.msra.mxu1 %v8288_v45 }
 0x3ff   :  { %4085 = vmatprep.subr.bf16.mxu0 %v8372_v4  ;;  %4149 = vmatprep.subr.bf16.mxu1 %v8290_v42 }
 0x402   :  { %4087 = vmatpush1.bf16.msra.mxu0 %v8373_v8  ;;  %4151 = vmatpush1.bf16.msra.mxu1 %v8292_v63 }
 0x403   :  { %4089 = vmatprep.subr.bf16.mxu0 %v8374_v11  ;;  %4153 = vmatprep.subr.bf16.mxu1 %v8293_v29 }
 0x406   :  { %4091 = vmatpush1.bf16.msra.mxu0 %v8294_v48  ;;  %4155 = vmatpush1.bf16.msra.mxu1 %v8295_v51 }
 0x407   :  { %4093 = vmatprep.subr.bf16.mxu0 %v8211_v0  ;;  %4157 = vmatprep.subr.bf16.mxu1 %v8296_v16 }
 0x40a   :  { %4095 = vmatpush1.bf16.msra.mxu0 %v8213_v36  ;;  %4159 = vmatpush1.bf16.msra.mxu1 %v8297_v28 }
 0x40b   :  { %4097 = vmatprep.subr.bf16.mxu0 %v8215_v6  ;;  %4161 = vmatprep.subr.bf16.mxu1 %v8298_v21 }
 0x40e   :  { %4099 = vmatpush1.bf16.msra.mxu0 %v8375_v47  ;;  %4163 = vmatpush1.bf16.msra.mxu1 %v8376_v32  ;;  %v8461_v32 = vld [vmem:[#allocation134_spill] sm:$0xff] }
 0x40f   :  { %4101 = vmatprep.subr.bf16.mxu0 %v8377_v23  ;;  %4165 = vmatprep.subr.bf16.mxu1 %v8378_v18  ;;  %v8460_v18 = vld [vmem:[#allocation133_spill] sm:$0xff] }
 0x412   :  { %4103 = vmatpush1.bf16.msra.mxu0 %v8379_v56  ;;  %4167 = vmatpush1.bf16.msra.mxu1 %v8380_v38  ;;  %v8391_v38 = vld [vmem:[#allocation128_spill] sm:$0xff] }
 0x413   :  { %4105 = vmatprep.subr.bf16.mxu0 %v8381_v58  ;;  %4169 = vmatprep.subr.bf16.mxu1 %v8382_v17  ;;  %v8392_v58 = vld [vmem:[#allocation131_spill] sm:$0xff]  ;;  %v8393_v17 = vld [vmem:[#allocation4_spill] sm:$0xff] }
 0x414   :  { %v8459_v56 = vld [vmem:[#allocation132_spill] sm:$0xff] }
 0x416   :  { %4107 = vmatpush1.bf16.msra.mxu0 %v8383_v10  ;;  %4171 = vmatpush1.bf16.msra.mxu1 %v8384_v43  ;;  %v8394_v10 = vld [vmem:[#allocation8_spill] sm:$0xff] }
 0x417   :  { %4109 = vmatprep.subr.bf16.mxu0 %v8385_v41  ;;  %4173 = vmatprep.subr.bf16.mxu1 %v8386_v19  ;;  %v8395_v19 = vld [vmem:[#allocation5_spill] sm:$0xff] }
 0x418   :  { %v8404_v41 = vld [vmem:[#allocation17_spill] sm:$0xff] }
 0x41a   :  { %4111 = vmatpush1.bf16.msra.mxu0 %v8387_v27  ;;  %4175 = vmatpush1.bf16.msra.mxu1 %v8388_v9  ;;  %v8396_v27 = vld [vmem:[#allocation10_spill] sm:$0xff] }
 0x41b   :  { %4113 = vmatprep.subr.bf16.mxu0 %v8389_v34  ;;  %4177 = vmatprep.subr.bf16.mxu1 %v8390_v53  ;;  %v8397_v9 = vld [vmem:[#allocation6_spill] sm:$0xff]  ;;  %v8398_v34 = vld [vmem:[#allocation11_spill] sm:$0xff] }
 0x41c   :  { %v8399_v53 = vld [vmem:[#allocation7_spill] sm:$0xff] }
 0x41e   :  { %4115 = vmatpush1.bf16.msra.mxu0 %v8391_v38  ;;  %4179 = vmatpush1.bf16.msra.mxu1 %v8392_v58  ;;  %v8400_v38 = vld [vmem:[#allocation13_spill] sm:$0xff] }
 0x41f   :  { %4181 = vmatprep.subr.bf16.mxu0 %v8393_v17  ;;  %4245 = vmatprep.subr.bf16.mxu1 %v8394_v10  ;;  %v8401_v58 = vld [vmem:[#allocation9_spill] sm:$0xff]  ;;  %v8402_v17 = vld [vmem:[#allocation15_spill] sm:$0xff]  ;;  %v8403_v10 = vld [vmem:[#allocation12_spill] sm:$0xff] }
 0x421   :  { %1598 = vmatmul.mubr.f32.vlgmr.msra.gmra.mrb[14].mxu0 %v6981_v62  ;;  %1669 = vmatmul.mubr.f32.vlgmr.msra.gmra.mrb[14].mxu1 %v6981_v62  ;;  %v8405_v62 = vld [vmem:[#allocation14_spill] sm:$0xff] }
 0x422   :  { %4183 = vmatpush1.bf16.msra.mxu0 %v8395_v19  ;;  %4247 = vmatpush1.bf16.msra.mxu1 %v8396_v27  ;;  %v8406_v19 = vld [vmem:[#allocation19_spill] sm:$0xff]  ;;  %v8407_v27 = vld [vmem:[#allocation16_spill] sm:$0xff] }
 0x423   :  { %4185 = vmatprep.subr.bf16.mxu0 %v8397_v9  ;;  %4249 = vmatprep.subr.bf16.mxu1 %v8398_v34  ;;  %v8408_v9 = vld [vmem:[#allocation21_spill] sm:$0xff]  ;;  %v8409_v34 = vld [vmem:[#allocation18_spill] sm:$0xff] }
 0x426   :  { %4187 = vmatpush1.bf16.msra.mxu0 %v8399_v53  ;;  %4251 = vmatpush1.bf16.msra.mxu1 %v8400_v38  ;;  %v8410_v53 = vld [vmem:[#allocation23_spill] sm:$0xff]  ;;  %v8411_v38 = vld [vmem:[#allocation20_spill] sm:$0xff] }
 0x427   :  { %4189 = vmatprep.subr.bf16.mxu0 %v8401_v58  ;;  %4253 = vmatprep.subr.bf16.mxu1 %v8402_v17  ;;  %v8412_v58 = vld [vmem:[#allocation25_spill] sm:$0xff]  ;;  %v8413_v17 = vld [vmem:[#allocation22_spill] sm:$0xff] }
 0x42a   :  { %4191 = vmatpush1.bf16.msra.mxu0 %v8403_v10  ;;  %4255 = vmatpush1.bf16.msra.mxu1 %v8404_v41  ;;  %v8414_v10 = vld [vmem:[#allocation27_spill] sm:$0xff]  ;;  %v8415_v41 = vld [vmem:[#allocation24_spill] sm:$0xff] }
 0x42b   :  { %4193 = vmatprep.subr.bf16.mxu0 %v8405_v62  ;;  %4257 = vmatprep.subr.bf16.mxu1 %v8406_v19  ;;  %v8416_v62 = vld [vmem:[#allocation29_spill] sm:$0xff]  ;;  %v8417_v19 = vld [vmem:[#allocation26_spill] sm:$0xff] }
 0x42e   :  { %4195 = vmatpush1.bf16.msra.mxu0 %v8407_v27  ;;  %4259 = vmatpush1.bf16.msra.mxu1 %v8408_v9  ;;  %v8418_v27 = vld [vmem:[#allocation31_spill] sm:$0xff]  ;;  %v8419_v9 = vld [vmem:[#allocation28_spill] sm:$0xff] }
 0x42f   :  { %4197 = vmatprep.subr.bf16.mxu0 %v8409_v34  ;;  %4261 = vmatprep.subr.bf16.mxu1 %v8410_v53  ;;  %v8420_v34 = vld [vmem:[#allocation33_spill] sm:$0xff]  ;;  %v8421_v53 = vld [vmem:[#allocation30_spill] sm:$0xff] }
 0x432   :  { %4199 = vmatpush1.bf16.msra.mxu0 %v8411_v38  ;;  %4263 = vmatpush1.bf16.msra.mxu1 %v8412_v58  ;;  %v8422_v38 = vld [vmem:[#allocation35_spill] sm:$0xff]  ;;  %v8423_v58 = vld [vmem:[#allocation32_spill] sm:$0xff] }
 0x433   :  { %4201 = vmatprep.subr.bf16.mxu0 %v8413_v17  ;;  %4265 = vmatprep.subr.bf16.mxu1 %v8414_v10  ;;  %v8424_v17 = vld [vmem:[#allocation37_spill] sm:$0xff]  ;;  %v8425_v10 = vld [vmem:[#allocation34_spill] sm:$0xff] }
 0x436   :  { %4203 = vmatpush1.bf16.msra.mxu0 %v8415_v41  ;;  %4267 = vmatpush1.bf16.msra.mxu1 %v8416_v62  ;;  %v8426_v41 = vld [vmem:[#allocation39_spill] sm:$0xff]  ;;  %v8427_v62 = vld [vmem:[#allocation36_spill] sm:$0xff] }
 0x437   :  { %4205 = vmatprep.subr.bf16.mxu0 %v8417_v19  ;;  %4269 = vmatprep.subr.bf16.mxu1 %v8418_v27  ;;  %v8428_v19 = vld [vmem:[#allocation41_spill] sm:$0xff]  ;;  %v8429_v27 = vld [vmem:[#allocation38_spill] sm:$0xff] }
 0x43a   :  { %4207 = vmatpush1.bf16.msra.mxu0 %v8419_v9  ;;  %4271 = vmatpush1.bf16.msra.mxu1 %v8420_v34  ;;  %v8430_v9 = vld [vmem:[#allocation43_spill] sm:$0xff]  ;;  %v8431_v34 = vld [vmem:[#allocation40_spill] sm:$0xff] }
 0x43b   :  { %4209 = vmatprep.subr.bf16.mxu0 %v8421_v53  ;;  %4273 = vmatprep.subr.bf16.mxu1 %v8422_v38  ;;  %v8432_v53 = vld [vmem:[#allocation45_spill] sm:$0xff]  ;;  %v8433_v38 = vld [vmem:[#allocation42_spill] sm:$0xff] }
 0x43e   :  { %4211 = vmatpush1.bf16.msra.mxu0 %v8423_v58  ;;  %4275 = vmatpush1.bf16.msra.mxu1 %v8424_v17  ;;  %v8434_v58 = vld [vmem:[#allocation47_spill] sm:$0xff]  ;;  %v8435_v17 = vld [vmem:[#allocation44_spill] sm:$0xff] }
 0x43f   :  { %4213 = vmatprep.subr.bf16.mxu0 %v8425_v10  ;;  %4277 = vmatprep.subr.bf16.mxu1 %v8426_v41  ;;  %v8436_v10 = vld [vmem:[#allocation49_spill] sm:$0xff]  ;;  %v8437_v41 = vld [vmem:[#allocation46_spill] sm:$0xff] }
 0x442   :  { %4215 = vmatpush1.bf16.msra.mxu0 %v8427_v62  ;;  %4279 = vmatpush1.bf16.msra.mxu1 %v8428_v19  ;;  %v8438_v62 = vld [vmem:[#allocation51_spill] sm:$0xff]  ;;  %v8439_v19 = vld [vmem:[#allocation48_spill] sm:$0xff] }
 0x443   :  { %4217 = vmatprep.subr.bf16.mxu0 %v8429_v27  ;;  %4281 = vmatprep.subr.bf16.mxu1 %v8430_v9  ;;  %v8440_v27 = vld [vmem:[#allocation53_spill] sm:$0xff]  ;;  %v8441_v9 = vld [vmem:[#allocation50_spill] sm:$0xff] }
 0x446   :  { %4219 = vmatpush1.bf16.msra.mxu0 %v8431_v34  ;;  %4283 = vmatpush1.bf16.msra.mxu1 %v8432_v53  ;;  %v8442_v34 = vld [vmem:[#allocation55_spill] sm:$0xff]  ;;  %v8443_v53 = vld [vmem:[#allocation52_spill] sm:$0xff] }
 0x447   :  { %4221 = vmatprep.subr.bf16.mxu0 %v8433_v38  ;;  %4285 = vmatprep.subr.bf16.mxu1 %v8434_v58  ;;  %v8444_v38 = vld [vmem:[#allocation57_spill] sm:$0xff]  ;;  %v8445_v58 = vld [vmem:[#allocation54_spill] sm:$0xff] }
 0x44a   :  { %4223 = vmatpush1.bf16.msra.mxu0 %v8435_v17  ;;  %4287 = vmatpush1.bf16.msra.mxu1 %v8436_v10  ;;  %v8446_v17 = vld [vmem:[#allocation59_spill] sm:$0xff]  ;;  %v8447_v10 = vld [vmem:[#allocation56_spill] sm:$0xff] }
 0x44b   :  { %4225 = vmatprep.subr.bf16.mxu0 %v8437_v41  ;;  %4289 = vmatprep.subr.bf16.mxu1 %v8438_v62  ;;  %v8448_v41 = vld [vmem:[#allocation61_spill] sm:$0xff]  ;;  %v8449_v62 = vld [vmem:[#allocation58_spill] sm:$0xff] }
 0x44e   :  { %4227 = vmatpush1.bf16.msra.mxu0 %v8439_v19  ;;  %4291 = vmatpush1.bf16.msra.mxu1 %v8440_v27  ;;  %v8450_v19 = vld [vmem:[#allocation63_spill] sm:$0xff]  ;;  %v8451_v27 = vld [vmem:[#allocation60_spill] sm:$0xff] }
 0x44f   :  { %4229 = vmatprep.subr.bf16.mxu0 %v8441_v9  ;;  %4293 = vmatprep.subr.bf16.mxu1 %v8442_v34  ;;  %v8452_v9 = vld [vmem:[#allocation65_spill] sm:$0xff]  ;;  %v8453_v34 = vld [vmem:[#allocation62_spill] sm:$0xff] }
 0x452   :  { %4231 = vmatpush1.bf16.msra.mxu0 %v8443_v53  ;;  %4295 = vmatpush1.bf16.msra.mxu1 %v8444_v38  ;;  %v8454_v53 = vld [vmem:[#allocation67_spill] sm:$0xff]  ;;  %v8455_v38 = vld [vmem:[#allocation64_spill] sm:$0xff] }
 0x453   :  { %4233 = vmatprep.subr.bf16.mxu0 %v8445_v58  ;;  %4297 = vmatprep.subr.bf16.mxu1 %v8446_v17  ;;  %v8456_v58 = vld [vmem:[#allocation69_spill] sm:$0xff]  ;;  %v8457_v17 = vld [vmem:[#allocation66_spill] sm:$0xff] }
 0x456   :  { %4235 = vmatpush1.bf16.msra.mxu0 %v8447_v10  ;;  %4299 = vmatpush1.bf16.msra.mxu1 %v8448_v41  ;;  %v8458_v10 = vld [vmem:[#allocation71_spill] sm:$0xff] }
 0x457   :  { %4237 = vmatprep.subr.bf16.mxu0 %v8449_v62  ;;  %4301 = vmatprep.subr.bf16.mxu1 %v8450_v19 }
 0x45a   :  { %4239 = vmatpush1.bf16.msra.mxu0 %v8451_v27  ;;  %4303 = vmatpush1.bf16.msra.mxu1 %v8452_v9  ;;  %v3137_v9 = vld [vmem:[%s7726_s0 + $0x68] sm:$0xff] }
 0x45b   :  { %4241 = vmatprep.subr.bf16.mxu0 %v8453_v34  ;;  %4305 = vmatprep.subr.bf16.mxu1 %v8454_v53  ;;  %v3136_v53 = vld [vmem:[%s7726_s0 + $0x60] sm:$0xff]  ;;  %v1377_v34 = vunpack.c.l.bf16 %v3137_v9 }
 0x45c   :  { %v1375_v27 = vunpack.c.l.bf16 %v3136_v53 }
 0x45e   :  { %4243 = vmatpush1.bf16.msra.mxu0 %v8455_v38  ;;  %4307 = vmatpush1.bf16.msra.mxu1 %v8456_v58  ;;  %v1378_v38 = vunpack.c.h.bf16 %v3137_v9  ;;  %v1376_v58 = vunpack.c.h.bf16 %v3136_v53  ;;  %v1383_v23 = vadd.f32 %v1375_v27, %v8460_v18  ;;  %v3138_v9 = vld [vmem:[%s7726_s0 + $0x70] sm:$0xff] }
 0x45f   :  { %4309 = vmatprep.subr.bf16.mxu0 %v8457_v17  ;;  %4373 = vmatprep.subr.bf16.mxu1 %v8458_v10  ;;  %v1385_v17 = vadd.f32 %v1377_v34, %v6621_v54  ;;  %v1379_v27 = vunpack.c.l.bf16 %v3138_v9 }
 0x460   :  { %v1386_v10 = vadd.f32 %v1378_v38, %v8459_v56  ;;  %v1384_v47 = vadd.f32 %v1376_v58, %v8461_v32  ;;  %v3139_v38 = vld [vmem:[%s7726_s0 + $0x78] sm:$0xff]  ;;  %v1380_v58 = vunpack.c.h.bf16 %v3138_v9 }
 0x4b4   :  { %v1457_v41 = vpop.f32.mrb[12].mxu0  ;;  %v1528_v62 = vpop.f32.mrb[12].mxu1 }
 0x4b5   :  { %v1459_v43 = vpop.f32.mrb[13].mxu0  ;;  %v1530_v19 = vpop.f32.mrb[13].mxu1  ;;  %v1677_v21 = vadd.f32 %v1528_v62, %v1385_v17  ;;  %v1675_v28 = vadd.f32 %v1457_v41, %v1383_v23  ;;  %v1382_v17 = vunpack.c.h.bf16 %v3139_v38  ;;  %v8463_v23 = vld [vmem:[#allocation136_spill] sm:$0xff] }
 0x4b6   :  { %v1678_v6 = vadd.f32 %v1530_v19, %v1386_v10  ;;  %v1676_v36 = vadd.f32 %v1459_v43, %v1384_v47  ;;  %v1381_v47 = vunpack.c.l.bf16 %v3139_v38  ;;  %v1388_v10 = vadd.f32 %v1380_v58, %v8463_v23  ;;  %v8464_v43 = vld [vmem:[#allocation138_spill] sm:$0xff] }
 0x4b7   :  { %v1685_v16 = vmul.f32 0.5, %v1677_v21  ;;  %v1683_v51 = vmul.f32 0.5, %v1675_v28  ;;  %v8462_v21 = vld [vmem:[#allocation135_spill] sm:$0xff]  ;;  %v1390_v41 = vadd.f32 %v1382_v17, %v8464_v43 }
 0x4b8   :  { %v1686_v0 = vmul.f32 0.5, %v1678_v6  ;;  %v1684_v53 = vmul.f32 0.5, %v1676_v36  ;;  %v1387_v6 = vadd.f32 %v1379_v27, %v8462_v21  ;;  %v8465_v36 = vld [vmem:[#allocation137_spill] sm:$0xff] }
 0x4b9   :  { %5265 = vtanh.f32 %v1685_v16  ;;  %v1389_v19 = vadd.f32 %v1381_v47, %v8465_v36 }
 0x4ba   :  { %5267 = vtanh.f32 %v1686_v0 }
 0x4bb   :  { %5269 = vtanh.f32 %v1683_v51 }
 0x4bc   :  { %5271 = vtanh.f32 %v1684_v53 }
 0x4c3   :  { %v5266_v0 = vpop.eup %5265 }
 0x4c4   :  { %v5268_v9 = vpop.eup %5267  ;;  %v1693_v21 = vmul.f32 0.5, %v5266_v0 }
 0x4c5   :  { %v5270_v38 = vpop.eup %5269  ;;  %v1694_v58 = vmul.f32 0.5, %v5268_v9 }
 0x4c6   :  { %v5272_v27 = vpop.eup %5271  ;;  %v1691_v17 = vmul.f32 0.5, %v5270_v38  ;;  %v1697_v47 = vadd.f32 0.5, %v1693_v21 }
 0x4c7   :  { %v1692_v56 = vmul.f32 0.5, %v5272_v27  ;;  %v1698_v36 = vadd.f32 0.5, %v1694_v58  ;;  %v8468_v27 = vld [vmem:[#allocation111_spill] sm:$0xff]  ;;  %v8469_v58 = vld [vmem:[#allocation108_spill] sm:$0xff] }
 0x4f4   :  { %v1599_v28 = vpop.f32.mrb[14].mxu0  ;;  %v1670_v34 = vpop.f32.mrb[14].mxu1 }
 0x4f5   :  { %v1679_v62 = vadd.f32 %v1599_v28, %v1387_v6  ;;  %v1601_v32 = vpop.f32.mrb[15].mxu0  ;;  %v1672_v16 = vpop.f32.mrb[15].mxu1  ;;  %v1681_v53 = vadd.f32 %v1670_v34, %v1389_v19  ;;  %v1695_v6 = vadd.f32 0.5, %v1691_v17  ;;  %v8470_v17 = vld [vmem:[#allocation113_spill] sm:$0xff] }
 0x4f6   :  { %v1680_v18 = vadd.f32 %v1601_v32, %v1388_v10  ;;  %v1682_v51 = vadd.f32 %v1672_v16, %v1390_v41  ;;  %v1696_v10 = vadd.f32 0.5, %v1692_v56  ;;  %v1709_v41 = vmul.f32 %v1697_v47, %v6975_v49  ;;  %v8471_v47 = vld [vmem:[#allocation110_spill] sm:$0xff] }
 0x4f7   :  { %5273 = vtanh.f32 %v1679_v62  ;;  %v1701_v43 = vmul.f32 0.5, %v1681_v53 }
 0x4f8   :  { %5275 = vtanh.f32 %v1680_v18  ;;  %v1702_v23 = vmul.f32 0.5, %v1682_v51  ;;  %v1710_v18 = vmul.f32 %v1698_v36, %v6977_v5  ;;  %v8466_v5 = vld [vmem:[#allocation109_spill] sm:$0xff]  ;;  %v8467_v36 = vld [vmem:[#allocation106_spill] sm:$0xff] }
 0x4fa   :  { %5277 = vtanh.f32 %v1702_v23 }
 0x4fb   :  { %5279 = vtanh.f32 %v1701_v43 }
 0x501   :  { %v5274_v32 = vpop.eup %5273 }
 0x502   :  { %v5276_v28 = vpop.eup %5275  ;;  %v1711_v19 = vmul.f32 %v5274_v32, %v1695_v6  ;;  %v8472_v6 = vld [vmem:[#allocation115_spill] sm:$0xff]  ;;  %v8473_v32 = vld [vmem:[#allocation112_spill] sm:$0xff] }
 0x503   :  { %v1712_v34 = vmul.f32 %v5276_v28, %v1696_v10  ;;  %v8474_v10 = vld [vmem:[#allocation117_spill] sm:$0xff]  ;;  %v8475_v28 = vld [vmem:[#allocation114_spill] sm:$0xff] }
 0x504   :  { %v7137_v62 = vadd.f32 %v1711_v19, %v1709_v41  ;;  %v5278_v21 = vpop.eup %5277  ;;  %v8476_v41 = vld [vmem:[#allocation119_spill] sm:$0xff]  ;;  %v8477_v19 = vld [vmem:[#allocation116_spill] sm:$0xff] }
 0x505   :  { %v7139_v16 = vadd.f32 %v1712_v34, %v1710_v18  ;;  %v5280_v23 = vpop.eup %5279  ;;  %v1706_v43 = vmul.f32 0.5, %v5278_v21  ;;  %v8478_v18 = vld [vmem:[#allocation121_spill] sm:$0xff]  ;;  %v8479_v34 = vld [vmem:[#allocation118_spill] sm:$0xff]  ;;  %v8480_v21 = vld [vmem:[#allocation123_spill] sm:$0xff] }
 0x506   :  { %5281 = vtanh.f32 %v7137_v62  ;;  %v1705_v0 = vmul.f32 0.5, %v5280_v23  ;;  %v8481_v23 = vld [vmem:[#allocation120_spill] sm:$0xff] }
 0x507   :  { %5283 = vtanh.f32 %v7139_v16  ;;  %v1708_v51 = vadd.f32 0.5, %v1706_v43  ;;  %v8482_v43 = vld [vmem:[#allocation125_spill] sm:$0xff] }
 0x508   :  { %v1707_v49 = vadd.f32 0.5, %v1705_v0  ;;  %v8483_v0 = vld [vmem:[#allocation122_spill] sm:$0xff] }
 0x510   :  { %v5282_v56 = vpop.eup %5281 }
 0x511   :  { %v5284_v9 = vpop.eup %5283  ;;  %v7143_v38 = vmul.f32 %v5282_v56, %v1707_v49  ;;  %v8484_v56 = vld [vmem:[#allocation127_spill] sm:$0xff]  ;;  %v8487_v49 = vld [vmem:[#allocation126_spill] sm:$0xff] }
 0x512   :  { %v1718_v53 = vmul.f32 %v5284_v9, %v1708_v51  ;;  %v8485_v51 = vld [vmem:[#allocation124_spill] sm:$0xff]  ;;  %v8486_v9 = vld [vmem:[#allocation129_spill] sm:$0xff] }
 0x514   :  { %1804 = vmatprep.mubr.f32.mxu0 %v1718_v53  ;;  %1875 = vmatprep.mubr.f32.mxu1 %v1718_v53 }
 0x515   :  { %1805 = vmatmul.mubr.f32.vlgmr.msra.gmra.mrb[16].mxu0 %v7143_v38  ;;  %1876 = vmatmul.mubr.f32.vlgmr.msra.gmra.mrb[16].mxu1 %v7143_v38 }
 0x516   :  { %4311 = vmatpush1.bf16.msra.mxu0 %v8173_v26  ;;  %4375 = vmatpush1.bf16.msra.mxu1 %v8174_v14 }
 0x517   :  { %1946 = vmatprep.mubr.f32.mxu0 %v1718_v53  ;;  %2017 = vmatprep.mubr.f32.mxu1 %v1718_v53  ;;  %v8488_v53 = vld [vmem:[#allocation130_spill] sm:$0xff] }
 0x518   :  { %4313 = vmatprep.subr.bf16.mxu0 %v8175_v52  ;;  %4377 = vmatprep.subr.bf16.mxu1 %v8176_v1 }
 0x51a   :  { %4315 = vmatpush1.bf16.msra.mxu0 %v8177_v25  ;;  %4379 = vmatpush1.bf16.msra.mxu1 %v8178_v30 }
 0x51b   :  { %4317 = vmatprep.subr.bf16.mxu0 %v8179_v46  ;;  %4381 = vmatprep.subr.bf16.mxu1 %v8180_v44 }
 0x51e   :  { %4319 = vmatpush1.bf16.msra.mxu0 %v8181_v22  ;;  %4383 = vmatpush1.bf16.msra.mxu1 %v8182_v50 }
 0x51f   :  { %4321 = vmatprep.subr.bf16.mxu0 %v8183_v39  ;;  %4385 = vmatprep.subr.bf16.mxu1 %v8270_v37 }
 0x522   :  { %4323 = vmatpush1.bf16.msra.mxu0 %v8271_v20  ;;  %4387 = vmatpush1.bf16.msra.mxu1 %v8272_v57 }
 0x523   :  { %4325 = vmatprep.subr.bf16.mxu0 %v8273_v12  ;;  %4389 = vmatprep.subr.bf16.mxu1 %v8274_v61 }
 0x526   :  { %4327 = vmatpush1.bf16.msra.mxu0 %v8275_v35  ;;  %4391 = vmatpush1.bf16.msra.mxu1 %v8276_v31 }
 0x527   :  { %4329 = vmatprep.subr.bf16.mxu0 %v8277_v59  ;;  %4393 = vmatprep.subr.bf16.mxu1 %v8278_v60 }
 0x52a   :  { %4331 = vmatpush1.bf16.msra.mxu0 %v8279_v40  ;;  %4395 = vmatpush1.bf16.msra.mxu1 %v8280_v13 }
 0x52b   :  { %4333 = vmatprep.subr.bf16.mxu0 %v8281_v15  ;;  %4397 = vmatprep.subr.bf16.mxu1 %v8282_v2 }
 0x52e   :  { %4335 = vmatpush1.bf16.msra.mxu0 %v8368_v33  ;;  %4399 = vmatpush1.bf16.msra.mxu1 %v8369_v55 }
 0x52f   :  { %4337 = vmatprep.subr.bf16.mxu0 %v8370_v24  ;;  %4401 = vmatprep.subr.bf16.mxu1 %v8286_v7 }
 0x532   :  { %4339 = vmatpush1.bf16.msra.mxu0 %v8371_v3  ;;  %4403 = vmatpush1.bf16.msra.mxu1 %v8288_v45 }
 0x533   :  { %4341 = vmatprep.subr.bf16.mxu0 %v8372_v4  ;;  %4405 = vmatprep.subr.bf16.mxu1 %v8290_v42 }
 0x536   :  { %4343 = vmatpush1.bf16.msra.mxu0 %v8373_v8  ;;  %4407 = vmatpush1.bf16.msra.mxu1 %v8292_v63 }
 0x537   :  { %4345 = vmatprep.subr.bf16.mxu0 %v8374_v11  ;;  %4409 = vmatprep.subr.bf16.mxu1 %v8293_v29 }
 0x53a   :  { %4347 = vmatpush1.bf16.msra.mxu0 %v8294_v48  ;;  %4411 = vmatpush1.bf16.msra.mxu1 %v8466_v5 }
 0x53b   :  { %4349 = vmatprep.subr.bf16.mxu0 %v8467_v36  ;;  %4413 = vmatprep.subr.bf16.mxu1 %v8468_v27 }
 0x53e   :  { %4351 = vmatpush1.bf16.msra.mxu0 %v8469_v58  ;;  %4415 = vmatpush1.bf16.msra.mxu1 %v8470_v17 }
 0x53f   :  { %4353 = vmatprep.subr.bf16.mxu0 %v8471_v47  ;;  %4417 = vmatprep.subr.bf16.mxu1 %v8472_v6 }
 0x542   :  { %4355 = vmatpush1.bf16.msra.mxu0 %v8473_v32  ;;  %4419 = vmatpush1.bf16.msra.mxu1 %v8474_v10  ;;  %v8559_v10 = vld [vmem:[#allocation134_spill] sm:$0xff] }
 0x543   :  { %4357 = vmatprep.subr.bf16.mxu0 %v8475_v28  ;;  %4421 = vmatprep.subr.bf16.mxu1 %v8476_v41  ;;  %v8558_v41 = vld [vmem:[#allocation133_spill] sm:$0xff] }
 0x546   :  { %4359 = vmatpush1.bf16.msra.mxu0 %v8477_v19  ;;  %4423 = vmatpush1.bf16.msra.mxu1 %v8478_v18  ;;  %v8489_v18 = vld [vmem:[#allocation128_spill] sm:$0xff] }
 0x547   :  { %4361 = vmatprep.subr.bf16.mxu0 %v8479_v34  ;;  %4425 = vmatprep.subr.bf16.mxu1 %v8480_v21  ;;  %v8490_v34 = vld [vmem:[#allocation131_spill] sm:$0xff]  ;;  %v8491_v21 = vld [vmem:[#allocation4_spill] sm:$0xff] }
 0x548   :  { %v8557_v19 = vld [vmem:[#allocation132_spill] sm:$0xff] }
 0x54a   :  { %4363 = vmatpush1.bf16.msra.mxu0 %v8481_v23  ;;  %4427 = vmatpush1.bf16.msra.mxu1 %v8482_v43  ;;  %v8492_v23 = vld [vmem:[#allocation8_spill] sm:$0xff] }
 0x54b   :  { %4365 = vmatprep.subr.bf16.mxu0 %v8483_v0  ;;  %4429 = vmatprep.subr.bf16.mxu1 %v8484_v56  ;;  %v8493_v56 = vld [vmem:[#allocation5_spill] sm:$0xff] }
 0x54c   :  { %v8502_v0 = vld [vmem:[#allocation17_spill] sm:$0xff] }
 0x54e   :  { %4367 = vmatpush1.bf16.msra.mxu0 %v8485_v51  ;;  %4431 = vmatpush1.bf16.msra.mxu1 %v8486_v9  ;;  %v8494_v51 = vld [vmem:[#allocation10_spill] sm:$0xff] }
 0x54f   :  { %4369 = vmatprep.subr.bf16.mxu0 %v8487_v49  ;;  %4433 = vmatprep.subr.bf16.mxu1 %v8488_v53  ;;  %v8495_v9 = vld [vmem:[#allocation6_spill] sm:$0xff]  ;;  %v8496_v49 = vld [vmem:[#allocation11_spill] sm:$0xff] }
 0x550   :  { %v8497_v53 = vld [vmem:[#allocation7_spill] sm:$0xff] }
 0x552   :  { %4371 = vmatpush1.bf16.msra.mxu0 %v8489_v18  ;;  %4435 = vmatpush1.bf16.msra.mxu1 %v8490_v34  ;;  %v8498_v18 = vld [vmem:[#allocation13_spill] sm:$0xff] }
 0x553   :  { %4437 = vmatprep.subr.bf16.mxu0 %v8491_v21  ;;  %4501 = vmatprep.subr.bf16.mxu1 %v8492_v23  ;;  %v8499_v34 = vld [vmem:[#allocation9_spill] sm:$0xff]  ;;  %v8500_v21 = vld [vmem:[#allocation15_spill] sm:$0xff]  ;;  %v8501_v23 = vld [vmem:[#allocation12_spill] sm:$0xff] }
 0x555   :  { %1947 = vmatmul.mubr.f32.vlgmr.msra.gmra.mrb[18].mxu0 %v7143_v38  ;;  %2018 = vmatmul.mubr.f32.vlgmr.msra.gmra.mrb[18].mxu1 %v7143_v38  ;;  %v8503_v38 = vld [vmem:[#allocation14_spill] sm:$0xff] }
 0x556   :  { %4439 = vmatpush1.bf16.msra.mxu0 %v8493_v56  ;;  %4503 = vmatpush1.bf16.msra.mxu1 %v8494_v51  ;;  %v8504_v56 = vld [vmem:[#allocation19_spill] sm:$0xff]  ;;  %v8505_v51 = vld [vmem:[#allocation16_spill] sm:$0xff] }
 0x557   :  { %4441 = vmatprep.subr.bf16.mxu0 %v8495_v9  ;;  %4505 = vmatprep.subr.bf16.mxu1 %v8496_v49  ;;  %v8506_v9 = vld [vmem:[#allocation21_spill] sm:$0xff]  ;;  %v8507_v49 = vld [vmem:[#allocation18_spill] sm:$0xff] }
 0x55a   :  { %4443 = vmatpush1.bf16.msra.mxu0 %v8497_v53  ;;  %4507 = vmatpush1.bf16.msra.mxu1 %v8498_v18  ;;  %v8508_v53 = vld [vmem:[#allocation23_spill] sm:$0xff]  ;;  %v8509_v18 = vld [vmem:[#allocation20_spill] sm:$0xff] }
 0x55b   :  { %4445 = vmatprep.subr.bf16.mxu0 %v8499_v34  ;;  %4509 = vmatprep.subr.bf16.mxu1 %v8500_v21  ;;  %v8510_v34 = vld [vmem:[#allocation25_spill] sm:$0xff]  ;;  %v8511_v21 = vld [vmem:[#allocation22_spill] sm:$0xff] }
 0x55e   :  { %4447 = vmatpush1.bf16.msra.mxu0 %v8501_v23  ;;  %4511 = vmatpush1.bf16.msra.mxu1 %v8502_v0  ;;  %v8512_v23 = vld [vmem:[#allocation27_spill] sm:$0xff]  ;;  %v8513_v0 = vld [vmem:[#allocation24_spill] sm:$0xff] }
 0x55f   :  { %4449 = vmatprep.subr.bf16.mxu0 %v8503_v38  ;;  %4513 = vmatprep.subr.bf16.mxu1 %v8504_v56  ;;  %v8514_v38 = vld [vmem:[#allocation29_spill] sm:$0xff]  ;;  %v8515_v56 = vld [vmem:[#allocation26_spill] sm:$0xff] }
 0x562   :  { %4451 = vmatpush1.bf16.msra.mxu0 %v8505_v51  ;;  %4515 = vmatpush1.bf16.msra.mxu1 %v8506_v9  ;;  %v8516_v51 = vld [vmem:[#allocation31_spill] sm:$0xff]  ;;  %v8517_v9 = vld [vmem:[#allocation28_spill] sm:$0xff] }
 0x563   :  { %4453 = vmatprep.subr.bf16.mxu0 %v8507_v49  ;;  %4517 = vmatprep.subr.bf16.mxu1 %v8508_v53  ;;  %v8518_v49 = vld [vmem:[#allocation33_spill] sm:$0xff]  ;;  %v8519_v53 = vld [vmem:[#allocation30_spill] sm:$0xff] }
 0x566   :  { %4455 = vmatpush1.bf16.msra.mxu0 %v8509_v18  ;;  %4519 = vmatpush1.bf16.msra.mxu1 %v8510_v34  ;;  %v8520_v18 = vld [vmem:[#allocation35_spill] sm:$0xff]  ;;  %v8521_v34 = vld [vmem:[#allocation32_spill] sm:$0xff] }
 0x567   :  { %4457 = vmatprep.subr.bf16.mxu0 %v8511_v21  ;;  %4521 = vmatprep.subr.bf16.mxu1 %v8512_v23  ;;  %v8522_v21 = vld [vmem:[#allocation37_spill] sm:$0xff]  ;;  %v8523_v23 = vld [vmem:[#allocation34_spill] sm:$0xff] }
 0x56a   :  { %4459 = vmatpush1.bf16.msra.mxu0 %v8513_v0  ;;  %4523 = vmatpush1.bf16.msra.mxu1 %v8514_v38  ;;  %v8524_v0 = vld [vmem:[#allocation39_spill] sm:$0xff]  ;;  %v8525_v38 = vld [vmem:[#allocation36_spill] sm:$0xff] }
 0x56b   :  { %4461 = vmatprep.subr.bf16.mxu0 %v8515_v56  ;;  %4525 = vmatprep.subr.bf16.mxu1 %v8516_v51  ;;  %v8526_v56 = vld [vmem:[#allocation41_spill] sm:$0xff]  ;;  %v8527_v51 = vld [vmem:[#allocation38_spill] sm:$0xff] }
 0x56e   :  { %4463 = vmatpush1.bf16.msra.mxu0 %v8517_v9  ;;  %4527 = vmatpush1.bf16.msra.mxu1 %v8518_v49  ;;  %v8528_v9 = vld [vmem:[#allocation43_spill] sm:$0xff]  ;;  %v8529_v49 = vld [vmem:[#allocation40_spill] sm:$0xff] }
 0x56f   :  { %4465 = vmatprep.subr.bf16.mxu0 %v8519_v53  ;;  %4529 = vmatprep.subr.bf16.mxu1 %v8520_v18  ;;  %v8530_v53 = vld [vmem:[#allocation45_spill] sm:$0xff]  ;;  %v8531_v18 = vld [vmem:[#allocation42_spill] sm:$0xff] }
 0x572   :  { %4467 = vmatpush1.bf16.msra.mxu0 %v8521_v34  ;;  %4531 = vmatpush1.bf16.msra.mxu1 %v8522_v21  ;;  %v8532_v34 = vld [vmem:[#allocation47_spill] sm:$0xff]  ;;  %v8533_v21 = vld [vmem:[#allocation44_spill] sm:$0xff] }
 0x573   :  { %4469 = vmatprep.subr.bf16.mxu0 %v8523_v23  ;;  %4533 = vmatprep.subr.bf16.mxu1 %v8524_v0  ;;  %v8534_v23 = vld [vmem:[#allocation49_spill] sm:$0xff]  ;;  %v8535_v0 = vld [vmem:[#allocation46_spill] sm:$0xff] }
 0x576   :  { %4471 = vmatpush1.bf16.msra.mxu0 %v8525_v38  ;;  %4535 = vmatpush1.bf16.msra.mxu1 %v8526_v56  ;;  %v8536_v38 = vld [vmem:[#allocation51_spill] sm:$0xff]  ;;  %v8537_v56 = vld [vmem:[#allocation48_spill] sm:$0xff] }
 0x577   :  { %4473 = vmatprep.subr.bf16.mxu0 %v8527_v51  ;;  %4537 = vmatprep.subr.bf16.mxu1 %v8528_v9  ;;  %v8538_v51 = vld [vmem:[#allocation53_spill] sm:$0xff]  ;;  %v8539_v9 = vld [vmem:[#allocation50_spill] sm:$0xff] }
 0x57a   :  { %4475 = vmatpush1.bf16.msra.mxu0 %v8529_v49  ;;  %4539 = vmatpush1.bf16.msra.mxu1 %v8530_v53  ;;  %v8540_v49 = vld [vmem:[#allocation55_spill] sm:$0xff]  ;;  %v8541_v53 = vld [vmem:[#allocation52_spill] sm:$0xff] }
 0x57b   :  { %4477 = vmatprep.subr.bf16.mxu0 %v8531_v18  ;;  %4541 = vmatprep.subr.bf16.mxu1 %v8532_v34  ;;  %v8542_v18 = vld [vmem:[#allocation57_spill] sm:$0xff]  ;;  %v8543_v34 = vld [vmem:[#allocation54_spill] sm:$0xff] }
 0x57e   :  { %4479 = vmatpush1.bf16.msra.mxu0 %v8533_v21  ;;  %4543 = vmatpush1.bf16.msra.mxu1 %v8534_v23  ;;  %v8544_v21 = vld [vmem:[#allocation59_spill] sm:$0xff]  ;;  %v8545_v23 = vld [vmem:[#allocation56_spill] sm:$0xff] }
 0x57f   :  { %4481 = vmatprep.subr.bf16.mxu0 %v8535_v0  ;;  %4545 = vmatprep.subr.bf16.mxu1 %v8536_v38  ;;  %v8546_v0 = vld [vmem:[#allocation61_spill] sm:$0xff]  ;;  %v8547_v38 = vld [vmem:[#allocation58_spill] sm:$0xff] }
 0x582   :  { %4483 = vmatpush1.bf16.msra.mxu0 %v8537_v56  ;;  %4547 = vmatpush1.bf16.msra.mxu1 %v8538_v51  ;;  %v8548_v56 = vld [vmem:[#allocation63_spill] sm:$0xff]  ;;  %v8549_v51 = vld [vmem:[#allocation60_spill] sm:$0xff] }
 0x583   :  { %4485 = vmatprep.subr.bf16.mxu0 %v8539_v9  ;;  %4549 = vmatprep.subr.bf16.mxu1 %v8540_v49  ;;  %v8550_v9 = vld [vmem:[#allocation65_spill] sm:$0xff]  ;;  %v8551_v49 = vld [vmem:[#allocation62_spill] sm:$0xff] }
 0x586   :  { %4487 = vmatpush1.bf16.msra.mxu0 %v8541_v53  ;;  %4551 = vmatpush1.bf16.msra.mxu1 %v8542_v18  ;;  %v8552_v53 = vld [vmem:[#allocation67_spill] sm:$0xff]  ;;  %v8553_v18 = vld [vmem:[#allocation64_spill] sm:$0xff] }
 0x587   :  { %4489 = vmatprep.subr.bf16.mxu0 %v8543_v34  ;;  %4553 = vmatprep.subr.bf16.mxu1 %v8544_v21  ;;  %v8554_v34 = vld [vmem:[#allocation69_spill] sm:$0xff]  ;;  %v8555_v21 = vld [vmem:[#allocation66_spill] sm:$0xff] }
 0x58a   :  { %4491 = vmatpush1.bf16.msra.mxu0 %v8545_v23  ;;  %4555 = vmatpush1.bf16.msra.mxu1 %v8546_v0  ;;  %v8556_v23 = vld [vmem:[#allocation71_spill] sm:$0xff] }
 0x58b   :  { %4493 = vmatprep.subr.bf16.mxu0 %v8547_v38  ;;  %4557 = vmatprep.subr.bf16.mxu1 %v8548_v56 }
 0x58e   :  { %4495 = vmatpush1.bf16.msra.mxu0 %v8549_v51  ;;  %4559 = vmatpush1.bf16.msra.mxu1 %v8550_v9  ;;  %v3141_v9 = vld [vmem:[%s7726_s0 + $0x88] sm:$0xff] }
 0x58f   :  { %4497 = vmatprep.subr.bf16.mxu0 %v8551_v49  ;;  %4561 = vmatprep.subr.bf16.mxu1 %v8552_v53  ;;  %v3140_v53 = vld [vmem:[%s7726_s0 + $0x80] sm:$0xff]  ;;  %v1726_v49 = vunpack.c.l.bf16 %v3141_v9 }
 0x590   :  { %v1724_v51 = vunpack.c.l.bf16 %v3140_v53 }
 0x592   :  { %4499 = vmatpush1.bf16.msra.mxu0 %v8553_v18  ;;  %4563 = vmatpush1.bf16.msra.mxu1 %v8554_v34  ;;  %v1727_v18 = vunpack.c.h.bf16 %v3141_v9  ;;  %v1725_v34 = vunpack.c.h.bf16 %v3140_v53  ;;  %v1732_v28 = vadd.f32 %v1724_v51, %v8558_v41  ;;  %v3142_v9 = vld [vmem:[%s7726_s0 + $0x90] sm:$0xff] }
 0x593   :  { %4565 = vmatprep.subr.bf16.mxu0 %v8555_v21  ;;  %4629 = vmatprep.subr.bf16.mxu1 %v8556_v23  ;;  %v1734_v21 = vadd.f32 %v1726_v49, %v6621_v54  ;;  %v1728_v51 = vunpack.c.l.bf16 %v3142_v9 }
 0x594   :  { %v1735_v23 = vadd.f32 %v1727_v18, %v8557_v19  ;;  %v1733_v32 = vadd.f32 %v1725_v34, %v8559_v10  ;;  %v3143_v18 = vld [vmem:[%s7726_s0 + $0x98] sm:$0xff]  ;;  %v1729_v34 = vunpack.c.h.bf16 %v3142_v9 }
 0x5e8   :  { %v1806_v0 = vpop.f32.mrb[16].mxu0  ;;  %v1877_v38 = vpop.f32.mrb[16].mxu1 }
 0x5e9   :  { %v1808_v43 = vpop.f32.mrb[17].mxu0  ;;  %v1879_v56 = vpop.f32.mrb[17].mxu1  ;;  %v2026_v6 = vadd.f32 %v1877_v38, %v1734_v21  ;;  %v2024_v17 = vadd.f32 %v1806_v0, %v1732_v28  ;;  %v1731_v21 = vunpack.c.h.bf16 %v3143_v18  ;;  %v8561_v28 = vld [vmem:[#allocation136_spill] sm:$0xff] }
 0x5ea   :  { %v2027_v47 = vadd.f32 %v1879_v56, %v1735_v23  ;;  %v2025_v58 = vadd.f32 %v1808_v43, %v1733_v32  ;;  %v1730_v32 = vunpack.c.l.bf16 %v3143_v18  ;;  %v1737_v23 = vadd.f32 %v1729_v34, %v8561_v28  ;;  %v8562_v43 = vld [vmem:[#allocation138_spill] sm:$0xff] }
 0x5eb   :  { %v2034_v27 = vmul.f32 0.5, %v2026_v6  ;;  %v2032_v5 = vmul.f32 0.5, %v2024_v17  ;;  %v8560_v6 = vld [vmem:[#allocation135_spill] sm:$0xff]  ;;  %v1739_v0 = vadd.f32 %v1731_v21, %v8562_v43 }
 0x5ec   :  { %v2035_v36 = vmul.f32 0.5, %v2027_v47  ;;  %v2033_v53 = vmul.f32 0.5, %v2025_v58  ;;  %v1736_v47 = vadd.f32 %v1728_v51, %v8560_v6  ;;  %v8563_v58 = vld [vmem:[#allocation137_spill] sm:$0xff] }
 0x5ed   :  { %5285 = vtanh.f32 %v2034_v27  ;;  %v1738_v56 = vadd.f32 %v1730_v32, %v8563_v58 }
 0x5ee   :  { %5287 = vtanh.f32 %v2035_v36 }
 0x5ef   :  { %5289 = vtanh.f32 %v2032_v5 }
 0x5f0   :  { %5291 = vtanh.f32 %v2033_v53 }
 0x5f7   :  { %v5286_v36 = vpop.eup %5285 }
 0x5f8   :  { %v5288_v9 = vpop.eup %5287  ;;  %v2042_v6 = vmul.f32 0.5, %v5286_v36 }
 0x5f9   :  { %v5290_v18 = vpop.eup %5289  ;;  %v2043_v34 = vmul.f32 0.5, %v5288_v9 }
 0x5fa   :  { %v5292_v51 = vpop.eup %5291  ;;  %v2040_v21 = vmul.f32 0.5, %v5290_v18  ;;  %v2046_v32 = vadd.f32 0.5, %v2042_v6 }
 0x5fb   :  { %v2041_v19 = vmul.f32 0.5, %v5292_v51  ;;  %v2047_v58 = vadd.f32 0.5, %v2043_v34  ;;  %v8566_v51 = vld [vmem:[#allocation111_spill] sm:$0xff]  ;;  %v8567_v34 = vld [vmem:[#allocation108_spill] sm:$0xff] }
 0x628   :  { %v1948_v17 = vpop.f32.mrb[18].mxu0  ;;  %v2019_v49 = vpop.f32.mrb[18].mxu1 }
 0x629   :  { %v2028_v38 = vadd.f32 %v1948_v17, %v1736_v47  ;;  %v1950_v10 = vpop.f32.mrb[19].mxu0  ;;  %v2021_v27 = vpop.f32.mrb[19].mxu1  ;;  %v2030_v53 = vadd.f32 %v2019_v49, %v1738_v56  ;;  %v2044_v47 = vadd.f32 0.5, %v2040_v21  ;;  %v8568_v21 = vld [vmem:[#allocation113_spill] sm:$0xff] }
 0x62a   :  { %v2029_v41 = vadd.f32 %v1950_v10, %v1737_v23  ;;  %v2031_v5 = vadd.f32 %v2021_v27, %v1739_v0  ;;  %v2045_v23 = vadd.f32 0.5, %v2041_v19  ;;  %v2058_v0 = vmul.f32 %v2046_v32, %v7137_v62  ;;  %v8569_v32 = vld [vmem:[#allocation110_spill] sm:$0xff] }
 0x62b   :  { %5293 = vtanh.f32 %v2028_v38  ;;  %v2050_v43 = vmul.f32 0.5, %v2030_v53 }
 0x62c   :  { %5295 = vtanh.f32 %v2029_v41  ;;  %v2051_v28 = vmul.f32 0.5, %v2031_v5  ;;  %v2059_v41 = vmul.f32 %v2047_v58, %v7139_v16  ;;  %v8564_v16 = vld [vmem:[#allocation109_spill] sm:$0xff]  ;;  %v8565_v58 = vld [vmem:[#allocation106_spill] sm:$0xff] }
 0x62e   :  { %5297 = vtanh.f32 %v2051_v28 }
 0x62f   :  { %5299 = vtanh.f32 %v2050_v43 }
 0x635   :  { %v5294_v10 = vpop.eup %5293 }
 0x636   :  { %v5296_v17 = vpop.eup %5295  ;;  %v2060_v56 = vmul.f32 %v5294_v10, %v2044_v47  ;;  %v8570_v47 = vld [vmem:[#allocation115_spill] sm:$0xff]  ;;  %v8571_v10 = vld [vmem:[#allocation112_spill] sm:$0xff] }
 0x637   :  { %v2061_v49 = vmul.f32 %v5296_v17, %v2045_v23  ;;  %v8572_v23 = vld [vmem:[#allocation117_spill] sm:$0xff]  ;;  %v8573_v17 = vld [vmem:[#allocation114_spill] sm:$0xff] }
 0x638   :  { %v7299_v38 = vadd.f32 %v2060_v56, %v2058_v0  ;;  %v5298_v6 = vpop.eup %5297  ;;  %v8574_v0 = vld [vmem:[#allocation119_spill] sm:$0xff]  ;;  %v8575_v56 = vld [vmem:[#allocation116_spill] sm:$0xff] }
 0x639   :  { %v7301_v27 = vadd.f32 %v2061_v49, %v2059_v41  ;;  %v5300_v28 = vpop.eup %5299  ;;  %v2055_v43 = vmul.f32 0.5, %v5298_v6  ;;  %v8576_v41 = vld [vmem:[#allocation121_spill] sm:$0xff]  ;;  %v8577_v49 = vld [vmem:[#allocation118_spill] sm:$0xff]  ;;  %v8578_v6 = vld [vmem:[#allocation123_spill] sm:$0xff] }
 0x63a   :  { %5301 = vtanh.f32 %v7299_v38  ;;  %v2054_v36 = vmul.f32 0.5, %v5300_v28  ;;  %v8579_v28 = vld [vmem:[#allocation120_spill] sm:$0xff] }
 0x63b   :  { %5303 = vtanh.f32 %v7301_v27  ;;  %v2057_v5 = vadd.f32 0.5, %v2055_v43  ;;  %v8580_v43 = vld [vmem:[#allocation125_spill] sm:$0xff] }
 0x63c   :  { %v2056_v62 = vadd.f32 0.5, %v2054_v36  ;;  %v8581_v36 = vld [vmem:[#allocation122_spill] sm:$0xff] }
 0x644   :  { %v5302_v19 = vpop.eup %5301 }
 0x645   :  { %v5304_v9 = vpop.eup %5303  ;;  %v7305_v18 = vmul.f32 %v5302_v19, %v2056_v62  ;;  %v8582_v19 = vld [vmem:[#allocation127_spill] sm:$0xff]  ;;  %v8585_v62 = vld [vmem:[#allocation126_spill] sm:$0xff] }
 0x646   :  { %v2067_v53 = vmul.f32 %v5304_v9, %v2057_v5  ;;  %v8583_v5 = vld [vmem:[#allocation124_spill] sm:$0xff]  ;;  %v8584_v9 = vld [vmem:[#allocation129_spill] sm:$0xff] }
 0x648   :  { %2153 = vmatprep.mubr.f32.mxu0 %v2067_v53  ;;  %2224 = vmatprep.mubr.f32.mxu1 %v2067_v53 }
 0x649   :  { %2154 = vmatmul.mubr.f32.vlgmr.msra.gmra.mrb[20].mxu0 %v7305_v18  ;;  %2225 = vmatmul.mubr.f32.vlgmr.msra.gmra.mrb[20].mxu1 %v7305_v18 }
 0x64a   :  { %4567 = vmatpush1.bf16.msra.mxu0 %v8173_v26  ;;  %4631 = vmatpush1.bf16.msra.mxu1 %v8174_v14 }
 0x64b   :  { %2295 = vmatprep.mubr.f32.mxu0 %v2067_v53  ;;  %2366 = vmatprep.mubr.f32.mxu1 %v2067_v53  ;;  %v8586_v53 = vld [vmem:[#allocation130_spill] sm:$0xff] }
 0x64c   :  { %4569 = vmatprep.subr.bf16.mxu0 %v8175_v52  ;;  %4633 = vmatprep.subr.bf16.mxu1 %v8176_v1 }
 0x64e   :  { %4571 = vmatpush1.bf16.msra.mxu0 %v8177_v25  ;;  %4635 = vmatpush1.bf16.msra.mxu1 %v8178_v30 }
 0x64f   :  { %4573 = vmatprep.subr.bf16.mxu0 %v8179_v46  ;;  %4637 = vmatprep.subr.bf16.mxu1 %v8180_v44 }
 0x652   :  { %4575 = vmatpush1.bf16.msra.mxu0 %v8181_v22  ;;  %4639 = vmatpush1.bf16.msra.mxu1 %v8182_v50 }
 0x653   :  { %4577 = vmatprep.subr.bf16.mxu0 %v8183_v39  ;;  %4641 = vmatprep.subr.bf16.mxu1 %v8270_v37 }
 0x656   :  { %4579 = vmatpush1.bf16.msra.mxu0 %v8271_v20  ;;  %4643 = vmatpush1.bf16.msra.mxu1 %v8272_v57 }
 0x657   :  { %4581 = vmatprep.subr.bf16.mxu0 %v8273_v12  ;;  %4645 = vmatprep.subr.bf16.mxu1 %v8274_v61 }
 0x65a   :  { %4583 = vmatpush1.bf16.msra.mxu0 %v8275_v35  ;;  %4647 = vmatpush1.bf16.msra.mxu1 %v8276_v31 }
 0x65b   :  { %4585 = vmatprep.subr.bf16.mxu0 %v8277_v59  ;;  %4649 = vmatprep.subr.bf16.mxu1 %v8278_v60 }
 0x65e   :  { %4587 = vmatpush1.bf16.msra.mxu0 %v8279_v40  ;;  %4651 = vmatpush1.bf16.msra.mxu1 %v8280_v13 }
 0x65f   :  { %4589 = vmatprep.subr.bf16.mxu0 %v8281_v15  ;;  %4653 = vmatprep.subr.bf16.mxu1 %v8282_v2 }
 0x662   :  { %4591 = vmatpush1.bf16.msra.mxu0 %v8368_v33  ;;  %4655 = vmatpush1.bf16.msra.mxu1 %v8369_v55 }
 0x663   :  { %4593 = vmatprep.subr.bf16.mxu0 %v8370_v24  ;;  %4657 = vmatprep.subr.bf16.mxu1 %v8286_v7 }
 0x666   :  { %4595 = vmatpush1.bf16.msra.mxu0 %v8371_v3  ;;  %4659 = vmatpush1.bf16.msra.mxu1 %v8288_v45 }
 0x667   :  { %4597 = vmatprep.subr.bf16.mxu0 %v8372_v4  ;;  %4661 = vmatprep.subr.bf16.mxu1 %v8290_v42 }
 0x66a   :  { %4599 = vmatpush1.bf16.msra.mxu0 %v8373_v8  ;;  %4663 = vmatpush1.bf16.msra.mxu1 %v8292_v63 }
 0x66b   :  { %4601 = vmatprep.subr.bf16.mxu0 %v8374_v11  ;;  %4665 = vmatprep.subr.bf16.mxu1 %v8293_v29 }
 0x66e   :  { %4603 = vmatpush1.bf16.msra.mxu0 %v8294_v48  ;;  %4667 = vmatpush1.bf16.msra.mxu1 %v8564_v16 }
 0x66f   :  { %4605 = vmatprep.subr.bf16.mxu0 %v8565_v58  ;;  %4669 = vmatprep.subr.bf16.mxu1 %v8566_v51 }
 0x672   :  { %4607 = vmatpush1.bf16.msra.mxu0 %v8567_v34  ;;  %4671 = vmatpush1.bf16.msra.mxu1 %v8568_v21 }
 0x673   :  { %4609 = vmatprep.subr.bf16.mxu0 %v8569_v32  ;;  %4673 = vmatprep.subr.bf16.mxu1 %v8570_v47 }
 0x676   :  { %4611 = vmatpush1.bf16.msra.mxu0 %v8571_v10  ;;  %4675 = vmatpush1.bf16.msra.mxu1 %v8572_v23  ;;  %v8657_v23 = vld [vmem:[#allocation134_spill] sm:$0xff] }
 0x677   :  { %4613 = vmatprep.subr.bf16.mxu0 %v8573_v17  ;;  %4677 = vmatprep.subr.bf16.mxu1 %v8574_v0  ;;  %v8656_v0 = vld [vmem:[#allocation133_spill] sm:$0xff] }
 0x67a   :  { %4615 = vmatpush1.bf16.msra.mxu0 %v8575_v56  ;;  %4679 = vmatpush1.bf16.msra.mxu1 %v8576_v41  ;;  %v8587_v41 = vld [vmem:[#allocation128_spill] sm:$0xff] }
 0x67b   :  { %4617 = vmatprep.subr.bf16.mxu0 %v8577_v49  ;;  %4681 = vmatprep.subr.bf16.mxu1 %v8578_v6  ;;  %v8588_v49 = vld [vmem:[#allocation131_spill] sm:$0xff]  ;;  %v8589_v6 = vld [vmem:[#allocation4_spill] sm:$0xff] }
 0x67c   :  { %v8655_v56 = vld [vmem:[#allocation132_spill] sm:$0xff] }
 0x67e   :  { %4619 = vmatpush1.bf16.msra.mxu0 %v8579_v28  ;;  %4683 = vmatpush1.bf16.msra.mxu1 %v8580_v43  ;;  %v8590_v28 = vld [vmem:[#allocation8_spill] sm:$0xff] }
 0x67f   :  { %4621 = vmatprep.subr.bf16.mxu0 %v8581_v36  ;;  %4685 = vmatprep.subr.bf16.mxu1 %v8582_v19  ;;  %v8591_v19 = vld [vmem:[#allocation5_spill] sm:$0xff] }
 0x680   :  { %v8600_v36 = vld [vmem:[#allocation17_spill] sm:$0xff] }
 0x682   :  { %4623 = vmatpush1.bf16.msra.mxu0 %v8583_v5  ;;  %4687 = vmatpush1.bf16.msra.mxu1 %v8584_v9  ;;  %v8592_v5 = vld [vmem:[#allocation10_spill] sm:$0xff] }
 0x683   :  { %4625 = vmatprep.subr.bf16.mxu0 %v8585_v62  ;;  %4689 = vmatprep.subr.bf16.mxu1 %v8586_v53  ;;  %v8593_v9 = vld [vmem:[#allocation6_spill] sm:$0xff]  ;;  %v8594_v62 = vld [vmem:[#allocation11_spill] sm:$0xff] }
 0x684   :  { %v8595_v53 = vld [vmem:[#allocation7_spill] sm:$0xff] }
 0x686   :  { %4627 = vmatpush1.bf16.msra.mxu0 %v8587_v41  ;;  %4691 = vmatpush1.bf16.msra.mxu1 %v8588_v49  ;;  %v8596_v41 = vld [vmem:[#allocation13_spill] sm:$0xff] }
 0x687   :  { %4693 = vmatprep.subr.bf16.mxu0 %v8589_v6  ;;  %4757 = vmatprep.subr.bf16.mxu1 %v8590_v28  ;;  %v8597_v49 = vld [vmem:[#allocation9_spill] sm:$0xff]  ;;  %v8598_v6 = vld [vmem:[#allocation15_spill] sm:$0xff]  ;;  %v8599_v28 = vld [vmem:[#allocation12_spill] sm:$0xff] }
 0x689   :  { %2296 = vmatmul.mubr.f32.vlgmr.msra.gmra.mrb[22].mxu0 %v7305_v18  ;;  %2367 = vmatmul.mubr.f32.vlgmr.msra.gmra.mrb[22].mxu1 %v7305_v18  ;;  %v8601_v18 = vld [vmem:[#allocation14_spill] sm:$0xff] }
 0x68a   :  { %4695 = vmatpush1.bf16.msra.mxu0 %v8591_v19  ;;  %4759 = vmatpush1.bf16.msra.mxu1 %v8592_v5  ;;  %v8602_v19 = vld [vmem:[#allocation19_spill] sm:$0xff]  ;;  %v8603_v5 = vld [vmem:[#allocation16_spill] sm:$0xff] }
 0x68b   :  { %4697 = vmatprep.subr.bf16.mxu0 %v8593_v9  ;;  %4761 = vmatprep.subr.bf16.mxu1 %v8594_v62  ;;  %v8604_v9 = vld [vmem:[#allocation21_spill] sm:$0xff]  ;;  %v8605_v62 = vld [vmem:[#allocation18_spill] sm:$0xff] }
 0x68e   :  { %4699 = vmatpush1.bf16.msra.mxu0 %v8595_v53  ;;  %4763 = vmatpush1.bf16.msra.mxu1 %v8596_v41  ;;  %v8606_v53 = vld [vmem:[#allocation23_spill] sm:$0xff]  ;;  %v8607_v41 = vld [vmem:[#allocation20_spill] sm:$0xff] }
 0x68f   :  { %4701 = vmatprep.subr.bf16.mxu0 %v8597_v49  ;;  %4765 = vmatprep.subr.bf16.mxu1 %v8598_v6  ;;  %v8608_v49 = vld [vmem:[#allocation25_spill] sm:$0xff]  ;;  %v8609_v6 = vld [vmem:[#allocation22_spill] sm:$0xff] }
 0x692   :  { %4703 = vmatpush1.bf16.msra.mxu0 %v8599_v28  ;;  %4767 = vmatpush1.bf16.msra.mxu1 %v8600_v36  ;;  %v8610_v28 = vld [vmem:[#allocation27_spill] sm:$0xff]  ;;  %v8611_v36 = vld [vmem:[#allocation24_spill] sm:$0xff] }
 0x693   :  { %4705 = vmatprep.subr.bf16.mxu0 %v8601_v18  ;;  %4769 = vmatprep.subr.bf16.mxu1 %v8602_v19  ;;  %v8612_v18 = vld [vmem:[#allocation29_spill] sm:$0xff]  ;;  %v8613_v19 = vld [vmem:[#allocation26_spill] sm:$0xff] }
 0x696   :  { %4707 = vmatpush1.bf16.msra.mxu0 %v8603_v5  ;;  %4771 = vmatpush1.bf16.msra.mxu1 %v8604_v9  ;;  %v8614_v5 = vld [vmem:[#allocation31_spill] sm:$0xff]  ;;  %v8615_v9 = vld [vmem:[#allocation28_spill] sm:$0xff] }
 0x697   :  { %4709 = vmatprep.subr.bf16.mxu0 %v8605_v62  ;;  %4773 = vmatprep.subr.bf16.mxu1 %v8606_v53  ;;  %v8616_v62 = vld [vmem:[#allocation33_spill] sm:$0xff]  ;;  %v8617_v53 = vld [vmem:[#allocation30_spill] sm:$0xff] }
 0x69a   :  { %4711 = vmatpush1.bf16.msra.mxu0 %v8607_v41  ;;  %4775 = vmatpush1.bf16.msra.mxu1 %v8608_v49  ;;  %v8618_v41 = vld [vmem:[#allocation35_spill] sm:$0xff]  ;;  %v8619_v49 = vld [vmem:[#allocation32_spill] sm:$0xff] }
 0x69b   :  { %4713 = vmatprep.subr.bf16.mxu0 %v8609_v6  ;;  %4777 = vmatprep.subr.bf16.mxu1 %v8610_v28  ;;  %v8620_v6 = vld [vmem:[#allocation37_spill] sm:$0xff]  ;;  %v8621_v28 = vld [vmem:[#allocation34_spill] sm:$0xff] }
 0x69e   :  { %4715 = vmatpush1.bf16.msra.mxu0 %v8611_v36  ;;  %4779 = vmatpush1.bf16.msra.mxu1 %v8612_v18  ;;  %v8622_v36 = vld [vmem:[#allocation39_spill] sm:$0xff]  ;;  %v8623_v18 = vld [vmem:[#allocation36_spill] sm:$0xff] }
 0x69f   :  { %4717 = vmatprep.subr.bf16.mxu0 %v8613_v19  ;;  %4781 = vmatprep.subr.bf16.mxu1 %v8614_v5  ;;  %v8624_v19 = vld [vmem:[#allocation41_spill] sm:$0xff]  ;;  %v8625_v5 = vld [vmem:[#allocation38_spill] sm:$0xff] }
 0x6a2   :  { %4719 = vmatpush1.bf16.msra.mxu0 %v8615_v9  ;;  %4783 = vmatpush1.bf16.msra.mxu1 %v8616_v62  ;;  %v8626_v9 = vld [vmem:[#allocation43_spill] sm:$0xff]  ;;  %v8627_v62 = vld [vmem:[#allocation40_spill] sm:$0xff] }
 0x6a3   :  { %4721 = vmatprep.subr.bf16.mxu0 %v8617_v53  ;;  %4785 = vmatprep.subr.bf16.mxu1 %v8618_v41  ;;  %v8628_v53 = vld [vmem:[#allocation45_spill] sm:$0xff]  ;;  %v8629_v41 = vld [vmem:[#allocation42_spill] sm:$0xff] }
 0x6a6   :  { %4723 = vmatpush1.bf16.msra.mxu0 %v8619_v49  ;;  %4787 = vmatpush1.bf16.msra.mxu1 %v8620_v6  ;;  %v8630_v49 = vld [vmem:[#allocation47_spill] sm:$0xff]  ;;  %v8631_v6 = vld [vmem:[#allocation44_spill] sm:$0xff] }
 0x6a7   :  { %4725 = vmatprep.subr.bf16.mxu0 %v8621_v28  ;;  %4789 = vmatprep.subr.bf16.mxu1 %v8622_v36  ;;  %v8632_v28 = vld [vmem:[#allocation49_spill] sm:$0xff]  ;;  %v8633_v36 = vld [vmem:[#allocation46_spill] sm:$0xff] }
 0x6aa   :  { %4727 = vmatpush1.bf16.msra.mxu0 %v8623_v18  ;;  %4791 = vmatpush1.bf16.msra.mxu1 %v8624_v19  ;;  %v8634_v18 = vld [vmem:[#allocation51_spill] sm:$0xff]  ;;  %v8635_v19 = vld [vmem:[#allocation48_spill] sm:$0xff] }
 0x6ab   :  { %4729 = vmatprep.subr.bf16.mxu0 %v8625_v5  ;;  %4793 = vmatprep.subr.bf16.mxu1 %v8626_v9  ;;  %v8636_v5 = vld [vmem:[#allocation53_spill] sm:$0xff]  ;;  %v8637_v9 = vld [vmem:[#allocation50_spill] sm:$0xff] }
 0x6ae   :  { %4731 = vmatpush1.bf16.msra.mxu0 %v8627_v62  ;;  %4795 = vmatpush1.bf16.msra.mxu1 %v8628_v53  ;;  %v8638_v62 = vld [vmem:[#allocation55_spill] sm:$0xff]  ;;  %v8639_v53 = vld [vmem:[#allocation52_spill] sm:$0xff] }
 0x6af   :  { %4733 = vmatprep.subr.bf16.mxu0 %v8629_v41  ;;  %4797 = vmatprep.subr.bf16.mxu1 %v8630_v49  ;;  %v8640_v41 = vld [vmem:[#allocation57_spill] sm:$0xff]  ;;  %v8641_v49 = vld [vmem:[#allocation54_spill] sm:$0xff] }
 0x6b2   :  { %4735 = vmatpush1.bf16.msra.mxu0 %v8631_v6  ;;  %4799 = vmatpush1.bf16.msra.mxu1 %v8632_v28  ;;  %v8642_v6 = vld [vmem:[#allocation59_spill] sm:$0xff]  ;;  %v8643_v28 = vld [vmem:[#allocation56_spill] sm:$0xff] }
 0x6b3   :  { %4737 = vmatprep.subr.bf16.mxu0 %v8633_v36  ;;  %4801 = vmatprep.subr.bf16.mxu1 %v8634_v18  ;;  %v8644_v36 = vld [vmem:[#allocation61_spill] sm:$0xff]  ;;  %v8645_v18 = vld [vmem:[#allocation58_spill] sm:$0xff] }
 0x6b6   :  { %4739 = vmatpush1.bf16.msra.mxu0 %v8635_v19  ;;  %4803 = vmatpush1.bf16.msra.mxu1 %v8636_v5  ;;  %v8646_v19 = vld [vmem:[#allocation63_spill] sm:$0xff]  ;;  %v8647_v5 = vld [vmem:[#allocation60_spill] sm:$0xff] }
 0x6b7   :  { %4741 = vmatprep.subr.bf16.mxu0 %v8637_v9  ;;  %4805 = vmatprep.subr.bf16.mxu1 %v8638_v62  ;;  %v8648_v9 = vld [vmem:[#allocation65_spill] sm:$0xff]  ;;  %v8649_v62 = vld [vmem:[#allocation62_spill] sm:$0xff] }
 0x6ba   :  { %4743 = vmatpush1.bf16.msra.mxu0 %v8639_v53  ;;  %4807 = vmatpush1.bf16.msra.mxu1 %v8640_v41  ;;  %v8650_v53 = vld [vmem:[#allocation67_spill] sm:$0xff]  ;;  %v8651_v41 = vld [vmem:[#allocation64_spill] sm:$0xff] }
 0x6bb   :  { %4745 = vmatprep.subr.bf16.mxu0 %v8641_v49  ;;  %4809 = vmatprep.subr.bf16.mxu1 %v8642_v6  ;;  %v8652_v49 = vld [vmem:[#allocation69_spill] sm:$0xff]  ;;  %v8653_v6 = vld [vmem:[#allocation66_spill] sm:$0xff] }
 0x6be   :  { %4747 = vmatpush1.bf16.msra.mxu0 %v8643_v28  ;;  %4811 = vmatpush1.bf16.msra.mxu1 %v8644_v36  ;;  %v8654_v28 = vld [vmem:[#allocation71_spill] sm:$0xff] }
 0x6bf   :  { %4749 = vmatprep.subr.bf16.mxu0 %v8645_v18  ;;  %4813 = vmatprep.subr.bf16.mxu1 %v8646_v19 }
 0x6c2   :  { %4751 = vmatpush1.bf16.msra.mxu0 %v8647_v5  ;;  %4815 = vmatpush1.bf16.msra.mxu1 %v8648_v9  ;;  %v3145_v9 = vld [vmem:[%s7726_s0 + $0xa8] sm:$0xff] }
 0x6c3   :  { %4753 = vmatprep.subr.bf16.mxu0 %v8649_v62  ;;  %4817 = vmatprep.subr.bf16.mxu1 %v8650_v53  ;;  %v3144_v53 = vld [vmem:[%s7726_s0 + $0xa0] sm:$0xff]  ;;  %v2075_v62 = vunpack.c.l.bf16 %v3145_v9 }
 0x6c4   :  { %v2073_v5 = vunpack.c.l.bf16 %v3144_v53 }
 0x6c6   :  { %4755 = vmatpush1.bf16.msra.mxu0 %v8651_v41  ;;  %4819 = vmatpush1.bf16.msra.mxu1 %v8652_v49  ;;  %v2076_v41 = vunpack.c.h.bf16 %v3145_v9  ;;  %v2074_v49 = vunpack.c.h.bf16 %v3144_v53  ;;  %v2081_v17 = vadd.f32 %v2073_v5, %v8656_v0  ;;  %v3146_v9 = vld [vmem:[%s7726_s0 + $0xb0] sm:$0xff] }
 0x6c7   :  { %4821 = vmatprep.subr.bf16.mxu0 %v8653_v6  ;;  %4885 = vmatprep.subr.bf16.mxu1 %v8654_v28  ;;  %v2083_v6 = vadd.f32 %v2075_v62, %v6621_v54  ;;  %v2077_v5 = vunpack.c.l.bf16 %v3146_v9 }
 0x6c8   :  { %v2084_v28 = vadd.f32 %v2076_v41, %v8655_v56  ;;  %v2082_v10 = vadd.f32 %v2074_v49, %v8657_v23  ;;  %v3147_v41 = vld [vmem:[%s7726_s0 + $0xb8] sm:$0xff]  ;;  %v2078_v49 = vunpack.c.h.bf16 %v3146_v9 }
 0x71c   :  { %v2155_v36 = vpop.f32.mrb[20].mxu0  ;;  %v2226_v18 = vpop.f32.mrb[20].mxu1 }
 0x71d   :  { %v2157_v43 = vpop.f32.mrb[21].mxu0  ;;  %v2228_v19 = vpop.f32.mrb[21].mxu1  ;;  %v2375_v47 = vadd.f32 %v2226_v18, %v2083_v6  ;;  %v2373_v21 = vadd.f32 %v2155_v36, %v2081_v17  ;;  %v2080_v6 = vunpack.c.h.bf16 %v3147_v41  ;;  %v8659_v17 = vld [vmem:[#allocation136_spill] sm:$0xff] }
 0x71e   :  { %v2376_v32 = vadd.f32 %v2228_v19, %v2084_v28  ;;  %v2374_v34 = vadd.f32 %v2157_v43, %v2082_v10  ;;  %v2079_v10 = vunpack.c.l.bf16 %v3147_v41  ;;  %v2086_v28 = vadd.f32 %v2078_v49, %v8659_v17  ;;  %v8660_v43 = vld [vmem:[#allocation138_spill] sm:$0xff] }
 0x71f   :  { %v2383_v51 = vmul.f32 0.5, %v2375_v47  ;;  %v2381_v16 = vmul.f32 0.5, %v2373_v21  ;;  %v8658_v47 = vld [vmem:[#allocation135_spill] sm:$0xff]  ;;  %v2088_v36 = vadd.f32 %v2080_v6, %v8660_v43 }
 0x720   :  { %v2384_v58 = vmul.f32 0.5, %v2376_v32  ;;  %v2382_v53 = vmul.f32 0.5, %v2374_v34  ;;  %v2085_v32 = vadd.f32 %v2077_v5, %v8658_v47  ;;  %v8661_v34 = vld [vmem:[#allocation137_spill] sm:$0xff] }
 0x721   :  { %5305 = vtanh.f32 %v2383_v51  ;;  %v2087_v19 = vadd.f32 %v2079_v10, %v8661_v34 }
 0x722   :  { %5307 = vtanh.f32 %v2384_v58 }
 0x723   :  { %5309 = vtanh.f32 %v2381_v16 }
 0x724   :  { %5311 = vtanh.f32 %v2382_v53 }
 0x72b   :  { %v5306_v58 = vpop.eup %5305 }
 0x72c   :  { %v5308_v9 = vpop.eup %5307  ;;  %v2391_v47 = vmul.f32 0.5, %v5306_v58 }
 0x72d   :  { %v5310_v41 = vpop.eup %5309  ;;  %v2392_v49 = vmul.f32 0.5, %v5308_v9 }
 0x72e   :  { %v5312_v5 = vpop.eup %5311  ;;  %v2389_v6 = vmul.f32 0.5, %v5310_v41  ;;  %v2395_v10 = vadd.f32 0.5, %v2391_v47 }
 0x72f   :  { %v2390_v56 = vmul.f32 0.5, %v5312_v5  ;;  %v2396_v34 = vadd.f32 0.5, %v2392_v49  ;;  %v8664_v5 = vld [vmem:[#allocation111_spill] sm:$0xff]  ;;  %v8665_v49 = vld [vmem:[#allocation108_spill] sm:$0xff] }
 0x75c   :  { %v2297_v21 = vpop.f32.mrb[22].mxu0  ;;  %v2368_v62 = vpop.f32.mrb[22].mxu1 }
 0x75d   :  { %v2377_v18 = vadd.f32 %v2297_v21, %v2085_v32  ;;  %v2299_v23 = vpop.f32.mrb[23].mxu0  ;;  %v2370_v51 = vpop.f32.mrb[23].mxu1  ;;  %v2379_v53 = vadd.f32 %v2368_v62, %v2087_v19  ;;  %v2393_v32 = vadd.f32 0.5, %v2389_v6  ;;  %v8666_v6 = vld [vmem:[#allocation113_spill] sm:$0xff] }
 0x75e   :  { %v2378_v0 = vadd.f32 %v2299_v23, %v2086_v28  ;;  %v2380_v16 = vadd.f32 %v2370_v51, %v2088_v36  ;;  %v2394_v28 = vadd.f32 0.5, %v2390_v56  ;;  %v2407_v36 = vmul.f32 %v2395_v10, %v7299_v38  ;;  %v8667_v10 = vld [vmem:[#allocation110_spill] sm:$0xff] }
 0x75f   :  { %5313 = vtanh.f32 %v2377_v18  ;;  %v2399_v43 = vmul.f32 0.5, %v2379_v53 }
 0x760   :  { %5315 = vtanh.f32 %v2378_v0  ;;  %v2400_v17 = vmul.f32 0.5, %v2380_v16  ;;  %v2408_v0 = vmul.f32 %v2396_v34, %v7301_v27  ;;  %v8662_v27 = vld [vmem:[#allocation109_spill] sm:$0xff]  ;;  %v8663_v34 = vld [vmem:[#allocation106_spill] sm:$0xff] }
 0x762   :  { %5317 = vtanh.f32 %v2400_v17 }
 0x763   :  { %5319 = vtanh.f32 %v2399_v43 }
 0x769   :  { %v5314_v23 = vpop.eup %5313 }
 0x76a   :  { %v5316_v21 = vpop.eup %5315  ;;  %v2409_v19 = vmul.f32 %v5314_v23, %v2393_v32  ;;  %v8668_v32 = vld [vmem:[#allocation115_spill] sm:$0xff]  ;;  %v8669_v23 = vld [vmem:[#allocation112_spill] sm:$0xff] }
 0x76b   :  { %v2410_v62 = vmul.f32 %v5316_v21, %v2394_v28  ;;  %v8670_v28 = vld [vmem:[#allocation117_spill] sm:$0xff]  ;;  %v8671_v21 = vld [vmem:[#allocation114_spill] sm:$0xff] }
 0x76c   :  { %v7461_v18 = vadd.f32 %v2409_v19, %v2407_v36  ;;  %v5318_v47 = vpop.eup %5317  ;;  %v8672_v36 = vld [vmem:[#allocation119_spill] sm:$0xff]  ;;  %v8673_v19 = vld [vmem:[#allocation116_spill] sm:$0xff] }
 0x76d   :  { %v7463_v51 = vadd.f32 %v2410_v62, %v2408_v0  ;;  %v5320_v17 = vpop.eup %5319  ;;  %v2404_v43 = vmul.f32 0.5, %v5318_v47  ;;  %v8674_v0 = vld [vmem:[#allocation121_spill] sm:$0xff]  ;;  %v8675_v62 = vld [vmem:[#allocation118_spill] sm:$0xff]  ;;  %v8676_v47 = vld [vmem:[#allocation123_spill] sm:$0xff] }
 0x76e   :  { %5321 = vtanh.f32 %v7461_v18  ;;  %v2403_v58 = vmul.f32 0.5, %v5320_v17  ;;  %v8677_v17 = vld [vmem:[#allocation120_spill] sm:$0xff] }
 0x76f   :  { %5323 = vtanh.f32 %v7463_v51  ;;  %v2406_v16 = vadd.f32 0.5, %v2404_v43  ;;  %v8678_v43 = vld [vmem:[#allocation125_spill] sm:$0xff] }
 0x770   :  { %v2405_v38 = vadd.f32 0.5, %v2403_v58  ;;  %v8679_v58 = vld [vmem:[#allocation122_spill] sm:$0xff] }
 0x778   :  { %v5322_v56 = vpop.eup %5321 }
 0x779   :  { %v5324_v9 = vpop.eup %5323  ;;  %v7467_v41 = vmul.f32 %v5322_v56, %v2405_v38  ;;  %v8680_v56 = vld [vmem:[#allocation127_spill] sm:$0xff]  ;;  %v8683_v38 = vld [vmem:[#allocation126_spill] sm:$0xff] }
 0x77a   :  { %v2416_v53 = vmul.f32 %v5324_v9, %v2406_v16  ;;  %v8681_v16 = vld [vmem:[#allocation124_spill] sm:$0xff]  ;;  %v8682_v9 = vld [vmem:[#allocation129_spill] sm:$0xff] }
 0x77c   :  { %2502 = vmatprep.mubr.f32.mxu0 %v2416_v53  ;;  %2573 = vmatprep.mubr.f32.mxu1 %v2416_v53 }
 0x77d   :  { %2503 = vmatmul.mubr.f32.vlgmr.msra.gmra.mrb[24].mxu0 %v7467_v41  ;;  %2574 = vmatmul.mubr.f32.vlgmr.msra.gmra.mrb[24].mxu1 %v7467_v41 }
 0x77e   :  { %4823 = vmatpush1.bf16.msra.mxu0 %v8173_v26  ;;  %4887 = vmatpush1.bf16.msra.mxu1 %v8174_v14 }
 0x77f   :  { %2644 = vmatprep.mubr.f32.mxu0 %v2416_v53  ;;  %2715 = vmatprep.mubr.f32.mxu1 %v2416_v53  ;;  %v8684_v53 = vld [vmem:[#allocation130_spill] sm:$0xff] }
 0x780   :  { %4825 = vmatprep.subr.bf16.mxu0 %v8175_v52  ;;  %4889 = vmatprep.subr.bf16.mxu1 %v8176_v1 }
 0x782   :  { %4827 = vmatpush1.bf16.msra.mxu0 %v8177_v25  ;;  %4891 = vmatpush1.bf16.msra.mxu1 %v8178_v30 }
 0x783   :  { %4829 = vmatprep.subr.bf16.mxu0 %v8179_v46  ;;  %4893 = vmatprep.subr.bf16.mxu1 %v8180_v44 }
 0x786   :  { %4831 = vmatpush1.bf16.msra.mxu0 %v8181_v22  ;;  %4895 = vmatpush1.bf16.msra.mxu1 %v8182_v50 }
 0x787   :  { %4833 = vmatprep.subr.bf16.mxu0 %v8183_v39  ;;  %4897 = vmatprep.subr.bf16.mxu1 %v8270_v37 }
 0x78a   :  { %4835 = vmatpush1.bf16.msra.mxu0 %v8271_v20  ;;  %4899 = vmatpush1.bf16.msra.mxu1 %v8272_v57 }
 0x78b   :  { %4837 = vmatprep.subr.bf16.mxu0 %v8273_v12  ;;  %4901 = vmatprep.subr.bf16.mxu1 %v8274_v61 }
 0x78e   :  { %4839 = vmatpush1.bf16.msra.mxu0 %v8275_v35  ;;  %4903 = vmatpush1.bf16.msra.mxu1 %v8276_v31 }
 0x78f   :  { %4841 = vmatprep.subr.bf16.mxu0 %v8277_v59  ;;  %4905 = vmatprep.subr.bf16.mxu1 %v8278_v60 }
 0x792   :  { %4843 = vmatpush1.bf16.msra.mxu0 %v8279_v40  ;;  %4907 = vmatpush1.bf16.msra.mxu1 %v8280_v13 }
 0x793   :  { %4845 = vmatprep.subr.bf16.mxu0 %v8281_v15  ;;  %4909 = vmatprep.subr.bf16.mxu1 %v8282_v2 }
 0x796   :  { %4847 = vmatpush1.bf16.msra.mxu0 %v8368_v33  ;;  %4911 = vmatpush1.bf16.msra.mxu1 %v8369_v55 }
 0x797   :  { %4849 = vmatprep.subr.bf16.mxu0 %v8370_v24  ;;  %4913 = vmatprep.subr.bf16.mxu1 %v8286_v7 }
 0x79a   :  { %4851 = vmatpush1.bf16.msra.mxu0 %v8371_v3  ;;  %4915 = vmatpush1.bf16.msra.mxu1 %v8288_v45 }
 0x79b   :  { %4853 = vmatprep.subr.bf16.mxu0 %v8372_v4  ;;  %4917 = vmatprep.subr.bf16.mxu1 %v8290_v42 }
 0x79e   :  { %4855 = vmatpush1.bf16.msra.mxu0 %v8373_v8  ;;  %4919 = vmatpush1.bf16.msra.mxu1 %v8292_v63 }
 0x79f   :  { %4857 = vmatprep.subr.bf16.mxu0 %v8374_v11  ;;  %4921 = vmatprep.subr.bf16.mxu1 %v8293_v29 }
 0x7a2   :  { %4859 = vmatpush1.bf16.msra.mxu0 %v8294_v48  ;;  %4923 = vmatpush1.bf16.msra.mxu1 %v8662_v27 }
 0x7a3   :  { %4861 = vmatprep.subr.bf16.mxu0 %v8663_v34  ;;  %4925 = vmatprep.subr.bf16.mxu1 %v8664_v5 }
 0x7a6   :  { %4863 = vmatpush1.bf16.msra.mxu0 %v8665_v49  ;;  %4927 = vmatpush1.bf16.msra.mxu1 %v8666_v6 }
 0x7a7   :  { %4865 = vmatprep.subr.bf16.mxu0 %v8667_v10  ;;  %4929 = vmatprep.subr.bf16.mxu1 %v8668_v32 }
 0x7aa   :  { %4867 = vmatpush1.bf16.msra.mxu0 %v8669_v23  ;;  %4931 = vmatpush1.bf16.msra.mxu1 %v8670_v28  ;;  %v8755_v28 = vld [vmem:[#allocation134_spill] sm:$0xff] }
 0x7ab   :  { %4869 = vmatprep.subr.bf16.mxu0 %v8671_v21  ;;  %4933 = vmatprep.subr.bf16.mxu1 %v8672_v36  ;;  %v8754_v36 = vld [vmem:[#allocation133_spill] sm:$0xff] }
 0x7ae   :  { %4871 = vmatpush1.bf16.msra.mxu0 %v8673_v19  ;;  %4935 = vmatpush1.bf16.msra.mxu1 %v8674_v0  ;;  %v8685_v0 = vld [vmem:[#allocation128_spill] sm:$0xff] }
 0x7af   :  { %4873 = vmatprep.subr.bf16.mxu0 %v8675_v62  ;;  %4937 = vmatprep.subr.bf16.mxu1 %v8676_v47  ;;  %v8686_v62 = vld [vmem:[#allocation131_spill] sm:$0xff]  ;;  %v8687_v47 = vld [vmem:[#allocation4_spill] sm:$0xff] }
 0x7b0   :  { %v8753_v19 = vld [vmem:[#allocation132_spill] sm:$0xff] }
 0x7b2   :  { %4875 = vmatpush1.bf16.msra.mxu0 %v8677_v17  ;;  %4939 = vmatpush1.bf16.msra.mxu1 %v8678_v43  ;;  %v8688_v17 = vld [vmem:[#allocation8_spill] sm:$0xff] }
 0x7b3   :  { %4877 = vmatprep.subr.bf16.mxu0 %v8679_v58  ;;  %4941 = vmatprep.subr.bf16.mxu1 %v8680_v56  ;;  %v8689_v56 = vld [vmem:[#allocation5_spill] sm:$0xff] }
 0x7b4   :  { %v8698_v58 = vld [vmem:[#allocation17_spill] sm:$0xff] }
 0x7b6   :  { %4879 = vmatpush1.bf16.msra.mxu0 %v8681_v16  ;;  %4943 = vmatpush1.bf16.msra.mxu1 %v8682_v9  ;;  %v8690_v16 = vld [vmem:[#allocation10_spill] sm:$0xff] }
 0x7b7   :  { %4881 = vmatprep.subr.bf16.mxu0 %v8683_v38  ;;  %4945 = vmatprep.subr.bf16.mxu1 %v8684_v53  ;;  %v8691_v9 = vld [vmem:[#allocation6_spill] sm:$0xff]  ;;  %v8692_v38 = vld [vmem:[#allocation11_spill] sm:$0xff] }
 0x7b8   :  { %v8693_v53 = vld [vmem:[#allocation7_spill] sm:$0xff] }
 0x7ba   :  { %4883 = vmatpush1.bf16.msra.mxu0 %v8685_v0  ;;  %4947 = vmatpush1.bf16.msra.mxu1 %v8686_v62  ;;  %v8694_v0 = vld [vmem:[#allocation13_spill] sm:$0xff] }
 0x7bb   :  { %4949 = vmatprep.subr.bf16.mxu0 %v8687_v47  ;;  %5013 = vmatprep.subr.bf16.mxu1 %v8688_v17  ;;  %v8695_v62 = vld [vmem:[#allocation9_spill] sm:$0xff]  ;;  %v8696_v47 = vld [vmem:[#allocation15_spill] sm:$0xff]  ;;  %v8697_v17 = vld [vmem:[#allocation12_spill] sm:$0xff] }
 0x7bd   :  { %2645 = vmatmul.mubr.f32.vlgmr.msra.gmra.mrb[26].mxu0 %v7467_v41  ;;  %2716 = vmatmul.mubr.f32.vlgmr.msra.gmra.mrb[26].mxu1 %v7467_v41  ;;  %v8699_v41 = vld [vmem:[#allocation14_spill] sm:$0xff] }
 0x7be   :  { %4951 = vmatpush1.bf16.msra.mxu0 %v8689_v56  ;;  %5015 = vmatpush1.bf16.msra.mxu1 %v8690_v16  ;;  %v8700_v56 = vld [vmem:[#allocation19_spill] sm:$0xff]  ;;  %v8701_v16 = vld [vmem:[#allocation16_spill] sm:$0xff] }
 0x7bf   :  { %4953 = vmatprep.subr.bf16.mxu0 %v8691_v9  ;;  %5017 = vmatprep.subr.bf16.mxu1 %v8692_v38  ;;  %v8702_v9 = vld [vmem:[#allocation21_spill] sm:$0xff]  ;;  %v8703_v38 = vld [vmem:[#allocation18_spill] sm:$0xff] }
 0x7c2   :  { %4955 = vmatpush1.bf16.msra.mxu0 %v8693_v53  ;;  %5019 = vmatpush1.bf16.msra.mxu1 %v8694_v0  ;;  %v8704_v53 = vld [vmem:[#allocation23_spill] sm:$0xff]  ;;  %v8705_v0 = vld [vmem:[#allocation20_spill] sm:$0xff] }
 0x7c3   :  { %4957 = vmatprep.subr.bf16.mxu0 %v8695_v62  ;;  %5021 = vmatprep.subr.bf16.mxu1 %v8696_v47  ;;  %v8706_v62 = vld [vmem:[#allocation25_spill] sm:$0xff]  ;;  %v8707_v47 = vld [vmem:[#allocation22_spill] sm:$0xff] }
 0x7c6   :  { %4959 = vmatpush1.bf16.msra.mxu0 %v8697_v17  ;;  %5023 = vmatpush1.bf16.msra.mxu1 %v8698_v58  ;;  %v8708_v17 = vld [vmem:[#allocation27_spill] sm:$0xff]  ;;  %v8709_v58 = vld [vmem:[#allocation24_spill] sm:$0xff] }
 0x7c7   :  { %4961 = vmatprep.subr.bf16.mxu0 %v8699_v41  ;;  %5025 = vmatprep.subr.bf16.mxu1 %v8700_v56  ;;  %v8710_v41 = vld [vmem:[#allocation29_spill] sm:$0xff]  ;;  %v8711_v56 = vld [vmem:[#allocation26_spill] sm:$0xff] }
 0x7ca   :  { %4963 = vmatpush1.bf16.msra.mxu0 %v8701_v16  ;;  %5027 = vmatpush1.bf16.msra.mxu1 %v8702_v9  ;;  %v8712_v16 = vld [vmem:[#allocation31_spill] sm:$0xff]  ;;  %v8713_v9 = vld [vmem:[#allocation28_spill] sm:$0xff] }
 0x7cb   :  { %4965 = vmatprep.subr.bf16.mxu0 %v8703_v38  ;;  %5029 = vmatprep.subr.bf16.mxu1 %v8704_v53  ;;  %v8714_v38 = vld [vmem:[#allocation33_spill] sm:$0xff]  ;;  %v8715_v53 = vld [vmem:[#allocation30_spill] sm:$0xff] }
 0x7ce   :  { %4967 = vmatpush1.bf16.msra.mxu0 %v8705_v0  ;;  %5031 = vmatpush1.bf16.msra.mxu1 %v8706_v62  ;;  %v8716_v0 = vld [vmem:[#allocation35_spill] sm:$0xff]  ;;  %v8717_v62 = vld [vmem:[#allocation32_spill] sm:$0xff] }
 0x7cf   :  { %4969 = vmatprep.subr.bf16.mxu0 %v8707_v47  ;;  %5033 = vmatprep.subr.bf16.mxu1 %v8708_v17  ;;  %v8718_v47 = vld [vmem:[#allocation37_spill] sm:$0xff]  ;;  %v8719_v17 = vld [vmem:[#allocation34_spill] sm:$0xff] }
 0x7d2   :  { %4971 = vmatpush1.bf16.msra.mxu0 %v8709_v58  ;;  %5035 = vmatpush1.bf16.msra.mxu1 %v8710_v41  ;;  %v8720_v58 = vld [vmem:[#allocation39_spill] sm:$0xff]  ;;  %v8721_v41 = vld [vmem:[#allocation36_spill] sm:$0xff] }
 0x7d3   :  { %4973 = vmatprep.subr.bf16.mxu0 %v8711_v56  ;;  %5037 = vmatprep.subr.bf16.mxu1 %v8712_v16  ;;  %v8722_v56 = vld [vmem:[#allocation41_spill] sm:$0xff]  ;;  %v8723_v16 = vld [vmem:[#allocation38_spill] sm:$0xff] }
 0x7d6   :  { %4975 = vmatpush1.bf16.msra.mxu0 %v8713_v9  ;;  %5039 = vmatpush1.bf16.msra.mxu1 %v8714_v38  ;;  %v8724_v9 = vld [vmem:[#allocation43_spill] sm:$0xff]  ;;  %v8725_v38 = vld [vmem:[#allocation40_spill] sm:$0xff] }
 0x7d7   :  { %4977 = vmatprep.subr.bf16.mxu0 %v8715_v53  ;;  %5041 = vmatprep.subr.bf16.mxu1 %v8716_v0  ;;  %v8726_v53 = vld [vmem:[#allocation45_spill] sm:$0xff]  ;;  %v8727_v0 = vld [vmem:[#allocation42_spill] sm:$0xff] }
 0x7da   :  { %4979 = vmatpush1.bf16.msra.mxu0 %v8717_v62  ;;  %5043 = vmatpush1.bf16.msra.mxu1 %v8718_v47  ;;  %v8728_v62 = vld [vmem:[#allocation47_spill] sm:$0xff]  ;;  %v8729_v47 = vld [vmem:[#allocation44_spill] sm:$0xff] }
 0x7db   :  { %4981 = vmatprep.subr.bf16.mxu0 %v8719_v17  ;;  %5045 = vmatprep.subr.bf16.mxu1 %v8720_v58  ;;  %v8730_v17 = vld [vmem:[#allocation49_spill] sm:$0xff]  ;;  %v8731_v58 = vld [vmem:[#allocation46_spill] sm:$0xff] }
 0x7de   :  { %4983 = vmatpush1.bf16.msra.mxu0 %v8721_v41  ;;  %5047 = vmatpush1.bf16.msra.mxu1 %v8722_v56  ;;  %v8732_v41 = vld [vmem:[#allocation51_spill] sm:$0xff]  ;;  %v8733_v56 = vld [vmem:[#allocation48_spill] sm:$0xff] }
 0x7df   :  { %4985 = vmatprep.subr.bf16.mxu0 %v8723_v16  ;;  %5049 = vmatprep.subr.bf16.mxu1 %v8724_v9  ;;  %v8734_v16 = vld [vmem:[#allocation53_spill] sm:$0xff]  ;;  %v8735_v9 = vld [vmem:[#allocation50_spill] sm:$0xff] }
 0x7e2   :  { %4987 = vmatpush1.bf16.msra.mxu0 %v8725_v38  ;;  %5051 = vmatpush1.bf16.msra.mxu1 %v8726_v53  ;;  %v8736_v38 = vld [vmem:[#allocation55_spill] sm:$0xff]  ;;  %v8737_v53 = vld [vmem:[#allocation52_spill] sm:$0xff] }
 0x7e3   :  { %4989 = vmatprep.subr.bf16.mxu0 %v8727_v0  ;;  %5053 = vmatprep.subr.bf16.mxu1 %v8728_v62  ;;  %v8738_v0 = vld [vmem:[#allocation57_spill] sm:$0xff]  ;;  %v8739_v62 = vld [vmem:[#allocation54_spill] sm:$0xff] }
 0x7e6   :  { %4991 = vmatpush1.bf16.msra.mxu0 %v8729_v47  ;;  %5055 = vmatpush1.bf16.msra.mxu1 %v8730_v17  ;;  %v8740_v47 = vld [vmem:[#allocation59_spill] sm:$0xff]  ;;  %v8741_v17 = vld [vmem:[#allocation56_spill] sm:$0xff] }
 0x7e7   :  { %4993 = vmatprep.subr.bf16.mxu0 %v8731_v58  ;;  %5057 = vmatprep.subr.bf16.mxu1 %v8732_v41  ;;  %v8742_v58 = vld [vmem:[#allocation61_spill] sm:$0xff]  ;;  %v8743_v41 = vld [vmem:[#allocation58_spill] sm:$0xff] }
 0x7ea   :  { %4995 = vmatpush1.bf16.msra.mxu0 %v8733_v56  ;;  %5059 = vmatpush1.bf16.msra.mxu1 %v8734_v16  ;;  %v8744_v56 = vld [vmem:[#allocation63_spill] sm:$0xff]  ;;  %v8745_v16 = vld [vmem:[#allocation60_spill] sm:$0xff] }
 0x7eb   :  { %4997 = vmatprep.subr.bf16.mxu0 %v8735_v9  ;;  %5061 = vmatprep.subr.bf16.mxu1 %v8736_v38  ;;  %v8746_v9 = vld [vmem:[#allocation65_spill] sm:$0xff]  ;;  %v8747_v38 = vld [vmem:[#allocation62_spill] sm:$0xff] }
 0x7ee   :  { %4999 = vmatpush1.bf16.msra.mxu0 %v8737_v53  ;;  %5063 = vmatpush1.bf16.msra.mxu1 %v8738_v0  ;;  %v8748_v53 = vld [vmem:[#allocation67_spill] sm:$0xff]  ;;  %v8749_v0 = vld [vmem:[#allocation64_spill] sm:$0xff] }
 0x7ef   :  { %5001 = vmatprep.subr.bf16.mxu0 %v8739_v62  ;;  %5065 = vmatprep.subr.bf16.mxu1 %v8740_v47  ;;  %v8750_v62 = vld [vmem:[#allocation69_spill] sm:$0xff]  ;;  %v8751_v47 = vld [vmem:[#allocation66_spill] sm:$0xff] }
 0x7f2   :  { %5003 = vmatpush1.bf16.msra.mxu0 %v8741_v17  ;;  %5067 = vmatpush1.bf16.msra.mxu1 %v8742_v58  ;;  %v8752_v17 = vld [vmem:[#allocation71_spill] sm:$0xff] }
 0x7f3   :  { %5005 = vmatprep.subr.bf16.mxu0 %v8743_v41  ;;  %5069 = vmatprep.subr.bf16.mxu1 %v8744_v56 }
 0x7f6   :  { %5007 = vmatpush1.bf16.msra.mxu0 %v8745_v16  ;;  %5071 = vmatpush1.bf16.msra.mxu1 %v8746_v9  ;;  %v3149_v16 = vld [vmem:[%s7726_s0 + $0xc8] sm:$0xff]  ;;  %v3148_v9 = vld [vmem:[%s7726_s0 + $0xc0] sm:$0xff] }
 0x7f7   :  { %5009 = vmatprep.subr.bf16.mxu0 %v8747_v38  ;;  %5073 = vmatprep.subr.bf16.mxu1 %v8748_v53  ;;  %v2424_v38 = vunpack.c.l.bf16 %v3149_v16  ;;  %v2425_v53 = vunpack.c.h.bf16 %v3149_v16  ;;  %v3150_v16 = vld [vmem:[%s7726_s0 + $0xd0] sm:$0xff] }
 0x7fa   :  { %5011 = vmatpush1.bf16.msra.mxu0 %v8749_v0  ;;  %5075 = vmatpush1.bf16.msra.mxu1 %v8750_v62  ;;  %v2422_v0 = vunpack.c.l.bf16 %v3148_v9  ;;  %v2423_v62 = vunpack.c.h.bf16 %v3148_v9 }
 0x7fb   :  { %5077 = vmatprep.subr.bf16.mxu0 %v8751_v47  ;;  %5141 = vmatprep.subr.bf16.mxu1 %v8752_v17  ;;  %v2432_v47 = vadd.f32 %v2424_v38, %v6621_v54  ;;  %v2433_v17 = vadd.f32 %v2425_v53, %v8753_v19  ;;  %v3151_v38 = vld [vmem:[%s7726_s0 + $0xd8] sm:$0xff]  ;;  %v2426_v53 = vunpack.c.l.bf16 %v3150_v16 }
 0x7fc   :  { %v2430_v21 = vadd.f32 %v2422_v0, %v8754_v36  ;;  %v2431_v23 = vadd.f32 %v2423_v62, %v8755_v28  ;;  %v2427_v0 = vunpack.c.h.bf16 %v3150_v16 }
 0x850   :  { %v2504_v58 = vpop.f32.mrb[24].mxu0  ;;  %v2575_v41 = vpop.f32.mrb[24].mxu1 }
 0x851   :  { %v2506_v43 = vpop.f32.mrb[25].mxu0  ;;  %v2577_v56 = vpop.f32.mrb[25].mxu1  ;;  %v2724_v32 = vadd.f32 %v2575_v41, %v2432_v47  ;;  %v2722_v6 = vadd.f32 %v2504_v58, %v2430_v21  ;;  %v2429_v41 = vunpack.c.h.bf16 %v3151_v38  ;;  %v8757_v21 = vld [vmem:[#allocation136_spill] sm:$0xff]  ;;  %v8758_v58 = vld [vmem:[#allocation138_spill] sm:$0xff] }
 0x852   :  { %v2725_v10 = vadd.f32 %v2577_v56, %v2433_v17  ;;  %v2723_v49 = vadd.f32 %v2506_v43, %v2431_v23  ;;  %v2428_v23 = vunpack.c.l.bf16 %v3151_v38  ;;  %v2435_v43 = vadd.f32 %v2427_v0, %v8757_v21 }
 0x853   :  { %v2732_v5 = vmul.f32 0.5, %v2724_v32  ;;  %v2730_v27 = vmul.f32 0.5, %v2722_v6  ;;  %v8756_v32 = vld [vmem:[#allocation135_spill] sm:$0xff]  ;;  %v2437_v56 = vadd.f32 %v2429_v41, %v8758_v58 }
 0x854   :  { %v2733_v34 = vmul.f32 0.5, %v2725_v10  ;;  %v2731_v9 = vmul.f32 0.5, %v2723_v49  ;;  %v2434_v10 = vadd.f32 %v2426_v53, %v8756_v32  ;;  %v8759_v49 = vld [vmem:[#allocation137_spill] sm:$0xff] }
 0x855   :  { %5325 = vtanh.f32 %v2732_v5  ;;  %v2436_v62 = vadd.f32 %v2428_v23, %v8759_v49 }
 0x856   :  { %5327 = vtanh.f32 %v2733_v34 }
 0x857   :  { %5329 = vtanh.f32 %v2730_v27 }
 0x858   :  { %5331 = vtanh.f32 %v2731_v9 }
 0x85f   :  { %v5326_v34 = vpop.eup %5325 }
 0x860   :  { %v5328_v16 = vpop.eup %5327  ;;  %v2740_v32 = vmul.f32 0.5, %v5326_v34 }
 0x861   :  { %v5330_v38 = vpop.eup %5329  ;;  %v2741_v0 = vmul.f32 0.5, %v5328_v16 }
 0x862   :  { %v5332_v53 = vpop.eup %5331  ;;  %v2738_v41 = vmul.f32 0.5, %v5330_v38  ;;  %v2744_v23 = vadd.f32 0.5, %v2740_v32 }
 0x863   :  { %v2739_v19 = vmul.f32 0.5, %v5332_v53  ;;  %v2745_v49 = vadd.f32 0.5, %v2741_v0  ;;  %v8787_v0 = vld [vmem:[#allocation134_spill] sm:$0xff] }
 0x890   :  { %v2646_v6 = vpop.f32.mrb[26].mxu0  ;;  %v2717_v47 = vpop.f32.mrb[26].mxu1 }
 0x891   :  { %v2726_v17 = vadd.f32 %v2646_v6, %v2434_v10  ;;  %v2648_v28 = vpop.f32.mrb[27].mxu0  ;;  %v2719_v5 = vpop.f32.mrb[27].mxu1  ;;  %v2728_v9 = vadd.f32 %v2717_v47, %v2436_v62  ;;  %v2742_v10 = vadd.f32 0.5, %v2738_v41 }
 0x892   :  { %v2727_v36 = vadd.f32 %v2648_v28, %v2435_v43  ;;  %v2729_v27 = vadd.f32 %v2719_v5, %v2437_v56  ;;  %v2743_v43 = vadd.f32 0.5, %v2739_v19  ;;  %v2756_v56 = vmul.f32 %v2744_v23, %v7461_v18 }
 0x893   :  { %5333 = vtanh.f32 %v2726_v17  ;;  %v2748_v58 = vmul.f32 0.5, %v2728_v9 }
 0x894   :  { %5335 = vtanh.f32 %v2727_v36  ;;  %v2749_v21 = vmul.f32 0.5, %v2729_v27  ;;  %v2757_v36 = vmul.f32 %v2745_v49, %v7463_v51  ;;  %v8786_v49 = vld [vmem:[#allocation133_spill] sm:$0xff] }
 0x896   :  { %5337 = vtanh.f32 %v2749_v21 }
 0x897   :  { %5339 = vtanh.f32 %v2748_v58 }
 0x89d   :  { %v5334_v28 = vpop.eup %5333 }
 0x89e   :  { %v5336_v6 = vpop.eup %5335  ;;  %v2758_v62 = vmul.f32 %v5334_v28, %v2742_v10 }
 0x89f   :  { %v2759_v47 = vmul.f32 %v5336_v6, %v2743_v43 }
 0x8a0   :  { %v7623_v17 = vadd.f32 %v2758_v62, %v2756_v56  ;;  %v5338_v32 = vpop.eup %5337  ;;  %v3154_v62 = vld [vmem:[%s7726_s0 + $0xf0] sm:$0xff] }
 0x8a1   :  { %v7625_v5 = vadd.f32 %v2759_v47, %v2757_v36  ;;  %v5340_v21 = vpop.eup %5339  ;;  %v2753_v58 = vmul.f32 0.5, %v5338_v32  ;;  %v2775_v32 = vunpack.c.l.bf16 %v3154_v62 }
 0x8a2   :  { %5341 = vtanh.f32 %v7623_v17  ;;  %v2752_v34 = vmul.f32 0.5, %v5340_v21 }
 0x8a3   :  { %5343 = vtanh.f32 %v7625_v5  ;;  %v2755_v27 = vadd.f32 0.5, %v2753_v58  ;;  %v2776_v58 = vunpack.c.h.bf16 %v3154_v62 }
 0x8a4   :  { %v2754_v18 = vadd.f32 0.5, %v2752_v34 }
 0x8ac   :  { %v5342_v19 = vpop.eup %5341 }
 0x8ad   :  { %v5344_v16 = vpop.eup %5343  ;;  %v7629_v38 = vmul.f32 %v5342_v19, %v2754_v18  ;;  %v8788_v19 = vld [vmem:[#allocation135_spill] sm:$0xff] }
 0x8ae   :  { %v2765_v9 = vmul.f32 %v5344_v16, %v2755_v27  ;;  %v2783_v27 = vadd.f32 %v2775_v32, %v8788_v19  ;;  %v8789_v16 = vld [vmem:[#allocation137_spill] sm:$0xff] }
 0x8b0   :  { %2851 = vmatprep.mubr.f32.mxu0 %v2765_v9  ;;  %2922 = vmatprep.mubr.f32.mxu1 %v2765_v9 }
 0x8b1   :  { %2852 = vmatmul.mubr.f32.vlgmr.msra.gmra.mrb[28].mxu0 %v7629_v38  ;;  %2923 = vmatmul.mubr.f32.vlgmr.msra.gmra.mrb[28].mxu1 %v7629_v38 }
 0x8b2   :  { %5079 = vmatpush1.bf16.msra.mxu0 %v8173_v26  ;;  %5143 = vmatpush1.bf16.msra.mxu1 %v8174_v14  ;;  %v8760_v26 = vld [vmem:[#allocation109_spill] sm:$0xff]  ;;  %v8761_v14 = vld [vmem:[#allocation106_spill] sm:$0xff] }
 0x8b3   :  { %2993 = vmatprep.mubr.f32.mxu0 %v2765_v9  ;;  %3064 = vmatprep.mubr.f32.mxu1 %v2765_v9  ;;  %v8790_v9 = vld [vmem:[#allocation136_spill] sm:$0xff] }
 0x8b4   :  { %5081 = vmatprep.subr.bf16.mxu0 %v8175_v52  ;;  %5145 = vmatprep.subr.bf16.mxu1 %v8176_v1  ;;  %v8762_v52 = vld [vmem:[#allocation111_spill] sm:$0xff]  ;;  %v8763_v1 = vld [vmem:[#allocation108_spill] sm:$0xff] }
 0x8b6   :  { %5083 = vmatpush1.bf16.msra.mxu0 %v8177_v25  ;;  %5147 = vmatpush1.bf16.msra.mxu1 %v8178_v30  ;;  %v8764_v25 = vld [vmem:[#allocation113_spill] sm:$0xff]  ;;  %v8765_v30 = vld [vmem:[#allocation110_spill] sm:$0xff] }
 0x8b7   :  { %5085 = vmatprep.subr.bf16.mxu0 %v8179_v46  ;;  %5149 = vmatprep.subr.bf16.mxu1 %v8180_v44  ;;  %v8766_v46 = vld [vmem:[#allocation115_spill] sm:$0xff]  ;;  %v8767_v44 = vld [vmem:[#allocation112_spill] sm:$0xff] }
 0x8ba   :  { %5087 = vmatpush1.bf16.msra.mxu0 %v8181_v22  ;;  %5151 = vmatpush1.bf16.msra.mxu1 %v8182_v50  ;;  %v8768_v22 = vld [vmem:[#allocation117_spill] sm:$0xff]  ;;  %v8769_v50 = vld [vmem:[#allocation114_spill] sm:$0xff] }
 0x8bb   :  { %5089 = vmatprep.subr.bf16.mxu0 %v8183_v39  ;;  %5153 = vmatprep.subr.bf16.mxu1 %v8270_v37  ;;  %v8770_v39 = vld [vmem:[#allocation119_spill] sm:$0xff]  ;;  %v8771_v37 = vld [vmem:[#allocation116_spill] sm:$0xff] }
 0x8be   :  { %5091 = vmatpush1.bf16.msra.mxu0 %v8271_v20  ;;  %5155 = vmatpush1.bf16.msra.mxu1 %v8272_v57  ;;  %v8772_v20 = vld [vmem:[#allocation121_spill] sm:$0xff]  ;;  %v8773_v57 = vld [vmem:[#allocation118_spill] sm:$0xff] }
 0x8bf   :  { %5093 = vmatprep.subr.bf16.mxu0 %v8273_v12  ;;  %5157 = vmatprep.subr.bf16.mxu1 %v8274_v61  ;;  %v8774_v12 = vld [vmem:[#allocation123_spill] sm:$0xff]  ;;  %v8775_v61 = vld [vmem:[#allocation120_spill] sm:$0xff] }
 0x8c2   :  { %5095 = vmatpush1.bf16.msra.mxu0 %v8275_v35  ;;  %5159 = vmatpush1.bf16.msra.mxu1 %v8276_v31  ;;  %v8776_v35 = vld [vmem:[#allocation125_spill] sm:$0xff]  ;;  %v8777_v31 = vld [vmem:[#allocation122_spill] sm:$0xff] }
 0x8c3   :  { %5097 = vmatprep.subr.bf16.mxu0 %v8277_v59  ;;  %5161 = vmatprep.subr.bf16.mxu1 %v8278_v60  ;;  %v8778_v59 = vld [vmem:[#allocation127_spill] sm:$0xff]  ;;  %v8779_v60 = vld [vmem:[#allocation124_spill] sm:$0xff] }
 0x8c6   :  { %5099 = vmatpush1.bf16.msra.mxu0 %v8279_v40  ;;  %5163 = vmatpush1.bf16.msra.mxu1 %v8280_v13  ;;  %v8780_v40 = vld [vmem:[#allocation129_spill] sm:$0xff]  ;;  %v8781_v13 = vld [vmem:[#allocation126_spill] sm:$0xff] }
 0x8c7   :  { %5101 = vmatprep.subr.bf16.mxu0 %v8281_v15  ;;  %5165 = vmatprep.subr.bf16.mxu1 %v8282_v2  ;;  %v8782_v15 = vld [vmem:[#allocation130_spill] sm:$0xff]  ;;  %v8783_v2 = vld [vmem:[#allocation128_spill] sm:$0xff] }
 0x8ca   :  { %5103 = vmatpush1.bf16.msra.mxu0 %v8368_v33  ;;  %5167 = vmatpush1.bf16.msra.mxu1 %v8369_v55  ;;  %v3152_v33 = vld [vmem:[%s7726_s0 + $0xe0] sm:$0xff] }
 0x8cb   :  { %5105 = vmatprep.subr.bf16.mxu0 %v8370_v24  ;;  %5169 = vmatprep.subr.bf16.mxu1 %v8286_v7 }
 0x8ce   :  { %5107 = vmatpush1.bf16.msra.mxu0 %v8371_v3  ;;  %5171 = vmatpush1.bf16.msra.mxu1 %v8288_v45  ;;  %v2771_v3 = vunpack.c.l.bf16 %v3152_v33 }
 0x8cf   :  { %5109 = vmatprep.subr.bf16.mxu0 %v8372_v4  ;;  %5173 = vmatprep.subr.bf16.mxu1 %v8290_v42  ;;  %v2772_v4 = vunpack.c.h.bf16 %v3152_v33 }
 0x8d0   :  { %v2779_v53 = vadd.f32 %v2771_v3, %v8786_v49 }
 0x8d1   :  { %v2780_v41 = vadd.f32 %v2772_v4, %v8787_v0 }
 0x8d2   :  { %5111 = vmatpush1.bf16.msra.mxu0 %v8373_v8  ;;  %5175 = vmatpush1.bf16.msra.mxu1 %v8292_v63  ;;  %v3153_v63 = vld [vmem:[%s7726_s0 + $0xe8] sm:$0xff] }
 0x8d3   :  { %5113 = vmatprep.subr.bf16.mxu0 %v8374_v11  ;;  %5177 = vmatprep.subr.bf16.mxu1 %v8293_v29  ;;  %v8784_v29 = vld [vmem:[#allocation131_spill] sm:$0xff]  ;;  %v2773_v55 = vunpack.c.l.bf16 %v3153_v63  ;;  %v2774_v24 = vunpack.c.h.bf16 %v3153_v63  ;;  %v8785_v11 = vld [vmem:[#allocation132_spill] sm:$0xff] }
 0x8d5   :  { %v2781_v8 = vadd.f32 %v2773_v55, %v6621_v54  ;;  %v2782_v51 = vadd.f32 %v2774_v24, %v8785_v11  ;;  %v3155_v54 = vld [vmem:[%s7726_s0 + $0xf8] sm:$0xff] }
 0x8d6   :  { %5115 = vmatpush1.bf16.msra.mxu0 %v8294_v48  ;;  %5179 = vmatpush1.bf16.msra.mxu1 %v8760_v26  ;;  %v2777_v21 = vunpack.c.l.bf16 %v3155_v54  ;;  %v2778_v34 = vunpack.c.h.bf16 %v3155_v54  ;;  %v8791_v26 = vld [vmem:[#allocation138_spill] sm:$0xff] }
 0x8d7   :  { %5117 = vmatprep.subr.bf16.mxu0 %v8761_v14  ;;  %5181 = vmatprep.subr.bf16.mxu1 %v8762_v52 }
 0x8d8   :  { %v2785_v18 = vadd.f32 %v2777_v21, %v8789_v16  ;;  %v2786_v14 = vadd.f32 %v2778_v34, %v8791_v26 }
 0x8da   :  { %5119 = vmatpush1.bf16.msra.mxu0 %v8763_v1  ;;  %5183 = vmatpush1.bf16.msra.mxu1 %v8764_v25 }
 0x8db   :  { %5121 = vmatprep.subr.bf16.mxu0 %v8765_v30  ;;  %5185 = vmatprep.subr.bf16.mxu1 %v8766_v46 }
 0x8de   :  { %5123 = vmatpush1.bf16.msra.mxu0 %v8767_v44  ;;  %5187 = vmatpush1.bf16.msra.mxu1 %v8768_v22 }
 0x8df   :  { %5125 = vmatprep.subr.bf16.mxu0 %v8769_v50  ;;  %5189 = vmatprep.subr.bf16.mxu1 %v8770_v39 }
 0x8e2   :  { %5127 = vmatpush1.bf16.msra.mxu0 %v8771_v37  ;;  %5191 = vmatpush1.bf16.msra.mxu1 %v8772_v20 }
 0x8e3   :  { %5129 = vmatprep.subr.bf16.mxu0 %v8773_v57  ;;  %5193 = vmatprep.subr.bf16.mxu1 %v8774_v12 }
 0x8e6   :  { %5131 = vmatpush1.bf16.msra.mxu0 %v8775_v61  ;;  %5195 = vmatpush1.bf16.msra.mxu1 %v8776_v35 }
 0x8e7   :  { %5133 = vmatprep.subr.bf16.mxu0 %v8777_v31  ;;  %5197 = vmatprep.subr.bf16.mxu1 %v8778_v59 }
 0x8ea   :  { %5135 = vmatpush1.bf16.msra.mxu0 %v8779_v60  ;;  %5199 = vmatpush1.bf16.msra.mxu1 %v8780_v40 }
 0x8eb   :  { %5137 = vmatprep.subr.bf16.mxu0 %v8781_v13  ;;  %5201 = vmatprep.subr.bf16.mxu1 %v8782_v15 }
 0x8ee   :  { %5139 = vmatpush1.bf16.msra.mxu0 %v8783_v2  ;;  %5203 = vmatpush1.bf16.msra.mxu1 %v8784_v29 }
 0x8f1   :  { %2994 = vmatmul.mubr.f32.vlgmr.msra.gmra.mrb[30].mxu0 %v7629_v38  ;;  %3065 = vmatmul.mubr.f32.vlgmr.msra.gmra.mrb[30].mxu1 %v7629_v38  ;;  %v2784_v38 = vadd.f32 %v2776_v58, %v8790_v9 }
 0x984   :  { %v2853_v48 = vpop.f32.mrb[28].mxu0  ;;  %v2924_v7 = vpop.f32.mrb[28].mxu1 }
 0x985   :  { %v2855_v45 = vpop.f32.mrb[29].mxu0  ;;  %v2926_v42 = vpop.f32.mrb[29].mxu1  ;;  %v3073_v23 = vadd.f32 %v2924_v7, %v2781_v8  ;;  %v3071_v28 = vadd.f32 %v2853_v48, %v2779_v53 }
 0x986   :  { %v3074_v10 = vadd.f32 %v2926_v42, %v2782_v51  ;;  %v3072_v43 = vadd.f32 %v2855_v45, %v2780_v41 }
 0x987   :  { %v3081_v6 = vmul.f32 0.5, %v3073_v23  ;;  %v3079_v36 = vmul.f32 0.5, %v3071_v28 }
 0x988   :  { %v3082_v56 = vmul.f32 0.5, %v3074_v10  ;;  %v3080_v47 = vmul.f32 0.5, %v3072_v43 }
 0x989   :  { %5345 = vtanh.f32 %v3081_v6 }
 0x98a   :  { %5347 = vtanh.f32 %v3082_v56 }
 0x98b   :  { %5349 = vtanh.f32 %v3079_v36 }
 0x98c   :  { %5351 = vtanh.f32 %v3080_v47 }
 0x993   :  { %v5346_v50 = vpop.eup %5345 }
 0x994   :  { %v5348_v37 = vpop.eup %5347  ;;  %v3089_v12 = vmul.f32 0.5, %v5346_v50 }
 0x995   :  { %v5350_v20 = vpop.eup %5349  ;;  %v3090_v35 = vmul.f32 0.5, %v5348_v37 }
 0x996   :  { %v5352_v57 = vpop.eup %5351  ;;  %v3087_v59 = vmul.f32 0.5, %v5350_v20  ;;  %v3093_v40 = vadd.f32 0.5, %v3089_v12 }
 0x997   :  { %v3088_v60 = vmul.f32 0.5, %v5352_v57  ;;  %v3094_v13 = vadd.f32 0.5, %v3090_v35 }
 0x998   :  { %v3091_v15 = vadd.f32 0.5, %v3087_v59  ;;  %v3105_v7 = vmul.f32 %v3093_v40, %v7623_v17 }
 0x999   :  { %v3092_v29 = vadd.f32 0.5, %v3088_v60  ;;  %v3106_v42 = vmul.f32 %v3094_v13, %v7625_v5 }
 0x9c4   :  { %v2995_v52 = vpop.f32.mrb[30].mxu0  ;;  %v3066_v1 = vpop.f32.mrb[30].mxu1 }
 0x9c5   :  { %v3075_v25 = vadd.f32 %v2995_v52, %v2783_v27  ;;  %v2997_v30 = vpop.f32.mrb[31].mxu0  ;;  %v3068_v46 = vpop.f32.mrb[31].mxu1  ;;  %v3077_v44 = vadd.f32 %v3066_v1, %v2785_v18 }
 0x9c6   :  { %v3076_v22 = vadd.f32 %v2997_v30, %v2784_v38  ;;  %v3078_v39 = vadd.f32 %v3068_v46, %v2786_v14 }
 0x9c7   :  { %5353 = vtanh.f32 %v3075_v25  ;;  %v3097_v61 = vmul.f32 0.5, %v3077_v44 }
 0x9c8   :  { %5355 = vtanh.f32 %v3076_v22  ;;  %v3098_v31 = vmul.f32 0.5, %v3078_v39 }
 0x9c9   :  { %5357 = vtanh.f32 %v3097_v61 }
 0x9ca   :  { %5359 = vtanh.f32 %v3098_v31 }
 0x9d1   :  { %v5354_v2 = vpop.eup %5353 }
 0x9d2   :  { %v5356_v48 = vpop.eup %5355  ;;  %v3107_v45 = vmul.f32 %v5354_v2, %v3091_v15 }
 0x9d3   :  { %v3108_v63 = vmul.f32 %v5356_v48, %v3092_v29  ;;  %v5358_v24 = vpop.eup %5357 }
 0x9d4   :  { %v3109_v33 = vadd.f32 %v3107_v45, %v3105_v7  ;;  %v5360_v3 = vpop.eup %5359  ;;  %v3101_v4 = vmul.f32 0.5, %v5358_v24 }
 0x9d5   :  { %v3110_v55 = vadd.f32 %v3108_v63, %v3106_v42  ;;  %v3102_v8 = vmul.f32 0.5, %v5360_v3 }
 0x9d6   :  { %5361 = vtanh.f32 %v3109_v33  ;;  %v3103_v11 = vadd.f32 0.5, %v3101_v4 }
 0x9d7   :  { %5363 = vtanh.f32 %v3110_v55  ;;  %v3104_v49 = vadd.f32 0.5, %v3102_v8 }
 0x9e0   :  { %v5362_v51 = vpop.eup %5361 }
 0x9e1   :  { %v5364_v53 = vpop.eup %5363  ;;  %v3113_v0 = vmul.f32 %v5362_v51, %v3103_v11 }
 0x9e2   :  { %v3114_v41 = vmul.f32 %v5364_v53, %v3104_v49 }
 0x9e3   :  { %3122 = vst [vmem:[%s7728_s3] sm:$0xff] %v3113_v0 }
 0x9e4   :  { %3123 = vst [vmem:[%s7728_s3 + $0x8] sm:$0xff] %v3114_v41 }

</bundles_post_ra>
